<compile_context>
chip_gen: v7x
topology: tpu7x:2x2x1
jax: 0.10.0
libtpu: 0.0.40
codegen_flags: <defaults>
</compile_context>

<pallas_src>
import jax
import jax.numpy as jnp
from jax import lax
from jax.experimental import pallas as pl
from jax.experimental.pallas import tpu as pltpu

# MXU input dtype: bf16 -> single-pass MXU issue + half the DMA bytes for the
# dominant im2col inputs (review recommendation; f32 dots were not bit-faithful
# anyway at default precision).  Set to jnp.float32 for f32-ish numerics.
MXU_DTYPE = jnp.bfloat16


# ------------------------------ Pallas kernels ------------------------------

def _stage1_kernel(c_ref, w_ref, b_ref, o_ref):
    """Conv1 + bias + ReLU + 2x2 avg pool, transposed (lane-dense) layout.

    c_ref: (4, 25, M)  im2col cols of the four pool phases (K = 5*5*1 = 25 on
                       sublanes, M = N*14*14 on lanes, columns ordered (n,a,b)).
    w_ref: (6, 25)     conv1 weights as (Cout, kh*kw*Cin).
    b_ref: (6, 1)      f32 bias.
    o_ref: (6, M)      pooled activation, channel x (n, a, b)  -- lane dense.
    """
    w = w_ref[...]
    b = b_ref[...]
    acc = None
    for ph in range(4):                    # static unroll; weights stay resident
        r = jnp.dot(w, c_ref[ph], preferred_element_type=jnp.float32)   # (6, M)
        r = jnp.maximum(r + b, 0.0)        # conv + bias + ReLU (f32 epilogue)
        acc = r if acc is None else acc + r
    # 2x2 average pool = mean over the four phases; post-pool ReLU is a no-op.
    o_ref[...] = (acc * 0.25).astype(o_ref.dtype)


def _stage2_tail_kernel(c_ref, w2_ref, b2_ref, w3_ref, b3_ref,
                        wf1_ref, bf1_ref, wf2_ref, bf2_ref, o_ref):
    """Conv2+ReLU+pool, Conv3(5x5->1x1)+ReLU, Flatten, FC1+ReLU, FC2 — one kernel.

    c_ref: (4*M2, 150)  stage-2 im2col, four pool-phase blocks of M2 = 5*5*N
                        rows each; rows within a block ordered (a, b, n).
    """
    n = o_ref.shape[0]                      # batch (8 -> slices stay 8-sublane aligned)
    c2 = w2_ref.shape[1]                    # 16
    m2 = c_ref.shape[0] // 4                # 5*5*N

    # Conv2 as ONE stacked matmul over all four pool phases.
    s = jnp.dot(c_ref[...], w2_ref[...], preferred_element_type=jnp.float32)
    s = jnp.maximum(s + b2_ref[...], 0.0)                               # (4*M2, 16)
    pooled = (s[0:m2] + s[m2:2 * m2] + s[2 * m2:3 * m2] + s[3 * m2:4 * m2]) * 0.25
    pooled = pooled.astype(MXU_DTYPE)                                   # (M2, 16)

    # Conv3: 5x5 spatial collapses to 1x1 -> 25 accumulated per-tap matmuls on
    # contiguous static row slices (no sublane-crossing reshape needed).
    n_taps = w3_ref.shape[0] // c2                                      # 25
    acc = jnp.zeros((n, w3_ref.shape[1]), jnp.float32)
    for t in range(n_taps):
        acc = acc + jnp.dot(pooled[t * n:(t + 1) * n, :],
                            w3_ref[t * c2:(t + 1) * c2, :],
                            preferred_element_type=jnp.float32)
    h = jnp.maximum(acc + b3_ref[...], 0.0).astype(MXU_DTYPE)           # (N, 120)

    # Flatten is the identity here (1x1 spatial); FC1 + ReLU + FC2.
    h = jnp.maximum(jnp.dot(h, wf1_ref[...], preferred_element_type=jnp.float32)
                    + bf1_ref[...], 0.0).astype(MXU_DTYPE)              # (N, 84)
    out = jnp.dot(h, wf2_ref[...], preferred_element_type=jnp.float32) + bf2_ref[...]
    o_ref[...] = out.astype(o_ref.dtype)                                # (N, 10)


# -------------------------------- wrappers ----------------------------------

def _vmem_spec():
    # Whole-array block resident in VMEM; no grid -> no pipeline buffers.
    return pl.BlockSpec(memory_space=pltpu.MemorySpace.VMEM)


def stage1_conv_relu_pool(cols, w, b):
    """cols: (4, K, M); returns (Cout, M) pooled activation (lane-dense)."""
    cout, m = w.shape[0], cols.shape[-1]
    return pl.pallas_call(
        _stage1_kernel,
        out_shape=jax.ShapeDtypeStruct((cout, m), cols.dtype),
        in_specs=[_vmem_spec() for _ in range(3)],
        out_specs=_vmem_spec(),
    )(cols, w, b)


def stage2_and_tail(cols, kp, n):
    operands = (cols, kp['w2'], kp['b2'], kp['w3'], kp['b3'],
                kp['wf1'], kp['bf1'], kp['wf2'], kp['bf2'])
    n_out = kp['wf2'].shape[1]
    return pl.pallas_call(
        _stage2_tail_kernel,
        out_shape=jax.ShapeDtypeStruct((n, n_out), jnp.float32),
        in_specs=[_vmem_spec() for _ in operands],
        out_specs=_vmem_spec(),
    )(*operands)


# ------------------------------ im2col glue ---------------------------------

def _stage1_cols(x, k, ph, pw):
    """Transposed stage-1 im2col: (4, k*k, N*ph*pw), one block per pool phase.

    x: (N, H, W) single-channel input.  25 tap slices + 1 stack, then the four
    2x2-pool phases as cheap strided views; no zero padding, no transposes.
    """
    n = x.shape[0]
    taps = jnp.stack([x[:, i:i + 2 * ph, j:j + 2 * pw]
                      for i in range(k) for j in range(k)], axis=0)    # (25,N,2ph,2pw)
    return jnp.stack([taps[:, :, p::2, q::2].reshape(k * k, n * ph * pw)
                      for p in (0, 1) for q in (0, 1)], axis=0)        # (4,25,N*ph*pw)


def _stage2_cols(h1, k, ph, pw):
    """Stage-2 im2col stacked over pool phases: (4*ph*pw*N, k*k*C).

    h1: (C, N, H, W) stage-1 pooled activation (kernel-1 output layout).
    Rows within each phase block are ordered (a, b, n) so conv3's per-tap
    slices in the fused kernel are contiguous; columns are (i, j, c), matching
    conv weights reshaped (kh, kw, cin, cout) -> (kh*kw*cin, cout).
    """
    c, n = h1.shape[0], h1.shape[1]
    taps = jnp.stack([h1[:, :, i:i + 2 * ph, j:j + 2 * pw]
                      for i in range(k) for j in range(k)], axis=0)    # (25,C,N,2ph,2pw)
    taps = jnp.transpose(taps, (3, 4, 2, 0, 1))                        # (2ph,2pw,N,25,C)
    m = ph * pw * n
    return jnp.concatenate([taps[p::2, q::2].reshape(m, k * k * c)
                            for p in (0, 1) for q in (0, 1)], axis=0)  # (4m, k*k*C)


def lenet5_forward(x_nchw, kp):
    """LeNet-5 forward; x_nchw is (N, 1, 32, 32) like the PyTorch module."""
    n, _, hh, ww = x_nchw.shape
    k = 5
    x = x_nchw.reshape(n, hh, ww).astype(MXU_DTYPE)       # single channel; free squeeze

    # Stage 1: Conv(1->6,5x5) + ReLU + AvgPool(2,2)  [post-pool ReLU folded away]
    ph1, pw1 = (hh - k + 1) // 2, (ww - k + 1) // 2       # 14, 14
    h1 = stage1_conv_relu_pool(_stage1_cols(x, k, ph1, pw1), kp['w1'], kp['b1'])
    h1 = h1.reshape(kp['w1'].shape[0], n, ph1, pw1)       # (6, N, 14, 14), free reshape

    # Stage 2 + tail: Conv(6->16)+ReLU+pool, Conv(16->120, 5x5->1x1)+ReLU,
    # Flatten, FC(120->84)+ReLU, FC(84->10) -- fused into one kernel.
    ph2, pw2 = (ph1 - k + 1) // 2, (pw1 - k + 1) // 2     # 5, 5
    return stage2_and_tail(_stage2_cols(h1, k, ph2, pw2), kp, n)


# ---------------------- deterministic parameters / prep ---------------------

def init_params(key):
    ks = jax.random.split(key, 10)

    def u(kk, shape, fan_in):
        bound = 1.0 / (fan_in ** 0.5)
        return jax.random.uniform(kk, shape, jnp.float32, -bound, bound)

    return dict(
        w1=u(ks[0], (6, 1, 5, 5), 25),       b1=u(ks[1], (6,), 25),
        w2=u(ks[2], (16, 6, 5, 5), 150),     b2=u(ks[3], (16,), 150),
        w3=u(ks[4], (120, 16, 5, 5), 400),   b3=u(ks[5], (120,), 400),
        wf1=u(ks[6], (84, 120), 120),        bf1=u(ks[7], (84,), 120),
        wf2=u(ks[8], (10, 84), 84),          bf2=u(ks[9], (10,), 84),
    )


def prepare_params(raw):
    """One-time conversion from PyTorch layout to kernel-ready layout."""
    def conv_mat(w):                 # (Cout, Cin, kh, kw) -> (kh*kw*Cin, Cout)
        cout, cin, kh, kw = w.shape
        return jnp.transpose(w, (2, 3, 1, 0)).reshape(kh * kw * cin, cout)

    return dict(
        w1=conv_mat(raw['w1']).T.astype(MXU_DTYPE),      # (6, 25)  transposed stage 1
        b1=raw['b1'].reshape(-1, 1),                     # (6, 1)   f32
        w2=conv_mat(raw['w2']).astype(MXU_DTYPE),        # (150, 16)
        b2=raw['b2'].reshape(1, -1),
        w3=conv_mat(raw['w3']).astype(MXU_DTYPE),        # (400, 120)
        b3=raw['b3'].reshape(1, -1),
        wf1=raw['wf1'].T.astype(MXU_DTYPE),              # (120, 84)
        bf1=raw['bf1'].reshape(1, -1),
        wf2=raw['wf2'].T.astype(MXU_DTYPE),              # (84, 10)
        bf2=raw['bf2'].reshape(1, -1),
    )


def lenet5_reference(x, raw):
    """Pure-XLA reference of the PyTorch module (numerical sanity check)."""
    def conv(z, w, b):
        y = lax.conv_general_dilated(z, w, (1, 1), 'VALID',
                                     dimension_numbers=('NCHW', 'OIHW', 'NCHW'),
                                     precision=lax.Precision.HIGHEST)
        return y + b.reshape(1, -1, 1, 1)

    def pool(z):
        return lax.reduce_window(z, 0.0, lax.add, (1, 1, 2, 2),
                                 (1, 1, 2, 2), 'VALID') * 0.25

    h = jnp.maximum(conv(x, raw['w1'], raw['b1']), 0.0)
    h = jnp.maximum(pool(h), 0.0)
    h = jnp.maximum(conv(h, raw['w2'], raw['b2']), 0.0)
    h = jnp.maximum(pool(h), 0.0)
    h = jnp.maximum(conv(h, raw['w3'], raw['b3']), 0.0)
    h = h.reshape(h.shape[0], -1)
    h = jnp.maximum(h @ raw['wf1'].T + raw['bf1'], 0.0)
    return h @ raw['wf2'].T + raw['bf2']


if __name__ == "__main__":
    key = jax.random.PRNGKey(0)
    k_param, k_x = jax.random.split(key)
    raw_params = init_params(k_param)
    kparams = prepare_params(raw_params)       # pre-reshaped / pre-cast once

    # LeNet-5 expects 32x32 single-channel images; batch 8 = one sublane tile,
    # which keeps every static row slice in the fused kernel tile-aligned.
    x = jax.random.normal(k_x, (8, 1, 32, 32), dtype=jnp.float32)

    fwd = jax.jit(lenet5_forward)
    out = jax.block_until_ready(fwd(x, kparams))
    assert out.shape == (8, 10), out.shape
    assert out.dtype == jnp.float32

    # Sanity check against the pure-XLA reference of the PyTorch module.
    ref = jax.block_until_ready(jax.jit(lenet5_reference)(x, raw_params))
    tol = 2e-2 if MXU_DTYPE == jnp.float32 else 2.5e-1
    err = float(jnp.max(jnp.abs(out - ref)))
    assert err < tol, f"max abs err {err}"

    print("KERNEL_OK")
</pallas_src>

<mosaic_0001>
module attributes {stable_mosaic.version = 11 : i64} {
  func.func @_stage1_kernel(%arg0: memref<4x25x1568xbf16, #tpu.memory_space<vmem>>, %arg1: memref<6x25xbf16, #tpu.memory_space<vmem>>, %arg2: memref<6x1xf32, #tpu.memory_space<vmem>>, %arg3: memref<6x1568xbf16, #tpu.memory_space<vmem>>) attributes {dimension_semantics = [], scalar_prefetch = 0 : i64, scratch_operands = 0 : i64, tpu.core_type = #tpu.core_type<tc>} {
    %c0 = arith.constant 0 : index
    %c0_0 = arith.constant 0 : index
    %0 = vector.load %arg1[%c0, %c0_0] : memref<6x25xbf16, #tpu.memory_space<vmem>>, vector<6x25xbf16>
    %c0_1 = arith.constant 0 : index
    %c0_2 = arith.constant 0 : index
    %1 = vector.load %arg2[%c0_1, %c0_2] : memref<6x1xf32, #tpu.memory_space<vmem>>, vector<6x1xf32>
    %c0_3 = arith.constant 0 : index
    %c0_4 = arith.constant 0 : index
    %c0_5 = arith.constant 0 : index
    %2 = vector.load %arg0[%c0_3, %c0_4, %c0_5] : memref<4x25x1568xbf16, #tpu.memory_space<vmem>>, vector<1x25x1568xbf16>
    %3 = vector.shape_cast %2 : vector<1x25x1568xbf16> to vector<25x1568xbf16>
    %cst = arith.constant dense<0.000000e+00> : vector<6x1568xf32>
    %4 = tpu.matmul %0, %3, %cst {dimension_numbers = #tpu.dot_dimension_numbers<[1], [0], [0], [1], [0, 0, 1, 1], [], []>} : vector<6x25xbf16>, vector<25x1568xbf16>, vector<6x1568xf32> -> vector<6x1568xf32>
    %5 = vector.broadcast %1 : vector<6x1xf32> to vector<6x1568xf32>
    %6 = arith.addf %4, %5 : vector<6x1568xf32>
    %cst_6 = arith.constant 0.000000e+00 : f32
    %7 = vector.broadcast %cst_6 : f32 to vector<6x1568xf32>
    %8 = arith.maximumf %6, %7 : vector<6x1568xf32>
    %c1 = arith.constant 1 : index
    %c0_7 = arith.constant 0 : index
    %c0_8 = arith.constant 0 : index
    %9 = vector.load %arg0[%c1, %c0_7, %c0_8] : memref<4x25x1568xbf16, #tpu.memory_space<vmem>>, vector<1x25x1568xbf16>
    %10 = vector.shape_cast %9 : vector<1x25x1568xbf16> to vector<25x1568xbf16>
    %cst_9 = arith.constant dense<0.000000e+00> : vector<6x1568xf32>
    %11 = tpu.matmul %0, %10, %cst_9 {dimension_numbers = #tpu.dot_dimension_numbers<[1], [0], [0], [1], [0, 0, 1, 1], [], []>} : vector<6x25xbf16>, vector<25x1568xbf16>, vector<6x1568xf32> -> vector<6x1568xf32>
    %12 = vector.broadcast %1 : vector<6x1xf32> to vector<6x1568xf32>
    %13 = arith.addf %11, %12 : vector<6x1568xf32>
    %cst_10 = arith.constant 0.000000e+00 : f32
    %14 = vector.broadcast %cst_10 : f32 to vector<6x1568xf32>
    %15 = arith.maximumf %13, %14 : vector<6x1568xf32>
    %16 = arith.addf %8, %15 : vector<6x1568xf32>
    %c2 = arith.constant 2 : index
    %c0_11 = arith.constant 0 : index
    %c0_12 = arith.constant 0 : index
    %17 = vector.load %arg0[%c2, %c0_11, %c0_12] : memref<4x25x1568xbf16, #tpu.memory_space<vmem>>, vector<1x25x1568xbf16>
    %18 = vector.shape_cast %17 : vector<1x25x1568xbf16> to vector<25x1568xbf16>
    %cst_13 = arith.constant dense<0.000000e+00> : vector<6x1568xf32>
    %19 = tpu.matmul %0, %18, %cst_13 {dimension_numbers = #tpu.dot_dimension_numbers<[1], [0], [0], [1], [0, 0, 1, 1], [], []>} : vector<6x25xbf16>, vector<25x1568xbf16>, vector<6x1568xf32> -> vector<6x1568xf32>
    %20 = vector.broadcast %1 : vector<6x1xf32> to vector<6x1568xf32>
    %21 = arith.addf %19, %20 : vector<6x1568xf32>
    %cst_14 = arith.constant 0.000000e+00 : f32
    %22 = vector.broadcast %cst_14 : f32 to vector<6x1568xf32>
    %23 = arith.maximumf %21, %22 : vector<6x1568xf32>
    %24 = arith.addf %16, %23 : vector<6x1568xf32>
    %c3 = arith.constant 3 : index
    %c0_15 = arith.constant 0 : index
    %c0_16 = arith.constant 0 : index
    %25 = vector.load %arg0[%c3, %c0_15, %c0_16] : memref<4x25x1568xbf16, #tpu.memory_space<vmem>>, vector<1x25x1568xbf16>
    %26 = vector.shape_cast %25 : vector<1x25x1568xbf16> to vector<25x1568xbf16>
    %cst_17 = arith.constant dense<0.000000e+00> : vector<6x1568xf32>
    %27 = tpu.matmul %0, %26, %cst_17 {dimension_numbers = #tpu.dot_dimension_numbers<[1], [0], [0], [1], [0, 0, 1, 1], [], []>} : vector<6x25xbf16>, vector<25x1568xbf16>, vector<6x1568xf32> -> vector<6x1568xf32>
    %28 = vector.broadcast %1 : vector<6x1xf32> to vector<6x1568xf32>
    %29 = arith.addf %27, %28 : vector<6x1568xf32>
    %cst_18 = arith.constant 0.000000e+00 : f32
    %30 = vector.broadcast %cst_18 : f32 to vector<6x1568xf32>
    %31 = arith.maximumf %29, %30 : vector<6x1568xf32>
    %32 = arith.addf %24, %31 : vector<6x1568xf32>
    %cst_19 = arith.constant 2.500000e-01 : f32
    %33 = vector.broadcast %cst_19 : f32 to vector<6x1568xf32>
    %34 = arith.mulf %32, %33 : vector<6x1568xf32>
    %35 = arith.truncf %34 : vector<6x1568xf32> to vector<6x1568xbf16>
    %c0_20 = arith.constant 0 : index
    %c0_21 = arith.constant 0 : index
    %36 = vector.load %arg3[%c0_20, %c0_21] : memref<6x1568xbf16, #tpu.memory_space<vmem>>, vector<6x1568xbf16>
    tpu.vector_store %arg3[%c0_20, %c0_21], %35 {strides = array<i32>} : memref<6x1568xbf16, #tpu.memory_space<vmem>>, vector<6x1568xbf16>,
    return
  }
}

module attributes {stable_mosaic.version = 11 : i64} {
  func.func @_stage2_tail_kernel(%arg0: memref<800x150xbf16, #tpu.memory_space<vmem>>, %arg1: memref<150x16xbf16, #tpu.memory_space<vmem>>, %arg2: memref<1x16xf32, #tpu.memory_space<vmem>>, %arg3: memref<400x120xbf16, #tpu.memory_space<vmem>>, %arg4: memref<1x120xf32, #tpu.memory_space<vmem>>, %arg5: memref<120x84xbf16, #tpu.memory_space<vmem>>, %arg6: memref<1x84xf32, #tpu.memory_space<vmem>>, %arg7: memref<84x10xbf16, #tpu.memory_space<vmem>>, %arg8: memref<1x10xf32, #tpu.memory_space<vmem>>, %arg9: memref<8x10xf32, #tpu.memory_space<vmem>>) attributes {dimension_semantics = [], scalar_prefetch = 0 : i64, scratch_operands = 0 : i64, tpu.core_type = #tpu.core_type<tc>} {
    %c0 = arith.constant 0 : index
    %c0_0 = arith.constant 0 : index
    %0 = vector.load %arg0[%c0, %c0_0] : memref<800x150xbf16, #tpu.memory_space<vmem>>, vector<800x150xbf16>
    %c0_1 = arith.constant 0 : index
    %c0_2 = arith.constant 0 : index
    %1 = vector.load %arg1[%c0_1, %c0_2] : memref<150x16xbf16, #tpu.memory_space<vmem>>, vector<150x16xbf16>
    %cst = arith.constant dense<0.000000e+00> : vector<800x16xf32>
    %2 = tpu.matmul %0, %1, %cst {dimension_numbers = #tpu.dot_dimension_numbers<[1], [0], [0], [1], [0, 0, 1, 1], [], []>} : vector<800x150xbf16>, vector<150x16xbf16>, vector<800x16xf32> -> vector<800x16xf32>
    %c0_3 = arith.constant 0 : index
    %c0_4 = arith.constant 0 : index
    %3 = vector.load %arg2[%c0_3, %c0_4] : memref<1x16xf32, #tpu.memory_space<vmem>>, vector<1x16xf32>
    %4 = vector.broadcast %3 : vector<1x16xf32> to vector<800x16xf32>
    %5 = arith.addf %2, %4 : vector<800x16xf32>
    %cst_5 = arith.constant 0.000000e+00 : f32
    %6 = vector.broadcast %cst_5 : f32 to vector<800x16xf32>
    %7 = arith.maximumf %5, %6 : vector<800x16xf32>
    %8 = vector.extract_strided_slice %7 {offsets = [0, 0], sizes = [200, 16], strides = [1, 1]} : vector<800x16xf32> to vector<200x16xf32>
    %9 = vector.extract_strided_slice %7 {offsets = [200, 0], sizes = [200, 16], strides = [1, 1]} : vector<800x16xf32> to vector<200x16xf32>
    %10 = arith.addf %8, %9 : vector<200x16xf32>
    %11 = vector.extract_strided_slice %7 {offsets = [400, 0], sizes = [200, 16], strides = [1, 1]} : vector<800x16xf32> to vector<200x16xf32>
    %12 = arith.addf %10, %11 : vector<200x16xf32>
    %13 = vector.extract_strided_slice %7 {offsets = [600, 0], sizes = [200, 16], strides = [1, 1]} : vector<800x16xf32> to vector<200x16xf32>
    %14 = arith.addf %12, %13 : vector<200x16xf32>
    %cst_6 = arith.constant 2.500000e-01 : f32
    %15 = vector.broadcast %cst_6 : f32 to vector<200x16xf32>
    %16 = arith.mulf %14, %15 : vector<200x16xf32>
    %17 = arith.truncf %16 : vector<200x16xf32> to vector<200x16xbf16>
    %cst_7 = arith.constant 0.000000e+00 : f32
    %18 = vector.broadcast %cst_7 : f32 to vector<8x120xf32>
    %19 = vector.extract_strided_slice %17 {offsets = [0, 0], sizes = [8, 16], strides = [1, 1]} : vector<200x16xbf16> to vector<8x16xbf16>
    %c0_8 = arith.constant 0 : index
    %c0_9 = arith.constant 0 : index
    %20 = vector.load %arg3[%c0_8, %c0_9] : memref<400x120xbf16, #tpu.memory_space<vmem>>, vector<16x120xbf16>
    %cst_10 = arith.constant dense<0.000000e+00> : vector<8x120xf32>
    %21 = tpu.matmul %19, %20, %cst_10 {dimension_numbers = #tpu.dot_dimension_numbers<[1], [0], [0], [1], [0, 0, 1, 1], [], []>} : vector<8x16xbf16>, vector<16x120xbf16>, vector<8x120xf32> -> vector<8x120xf32>
    %22 = arith.addf %18, %21 : vector<8x120xf32>
    %23 = vector.extract_strided_slice %17 {offsets = [8, 0], sizes = [8, 16], strides = [1, 1]} : vector<200x16xbf16> to vector<8x16xbf16>
    %c16 = arith.constant 16 : index
    %c0_11 = arith.constant 0 : index
    %24 = vector.load %arg3[%c16, %c0_11] : memref<400x120xbf16, #tpu.memory_space<vmem>>, vector<16x120xbf16>
    %cst_12 = arith.constant dense<0.000000e+00> : vector<8x120xf32>
    %25 = tpu.matmul %23, %24, %cst_12 {dimension_numbers = #tpu.dot_dimension_numbers<[1], [0], [0], [1], [0, 0, 1, 1], [], []>} : vector<8x16xbf16>, vector<16x120xbf16>, vector<8x120xf32> -> vector<8x120xf32>
    %26 = arith.addf %22, %25 : vector<8x120xf32>
    %27 = vector.extract_strided_slice %17 {offsets = [16, 0], sizes = [8, 16], strides = [1, 1]} : vector<200x16xbf16> to vector<8x16xbf16>
    %c32 = arith.constant 32 : index
    %c0_13 = arith.constant 0 : index
    %28 = vector.load %arg3[%c32, %c0_13] : memref<400x120xbf16, #tpu.memory_space<vmem>>, vector<16x120xbf16>
    %cst_14 = arith.constant dense<0.000000e+00> : vector<8x120xf32>
    %29 = tpu.matmul %27, %28, %cst_14 {dimension_numbers = #tpu.dot_dimension_numbers<[1], [0], [0], [1], [0, 0, 1, 1], [], []>} : vector<8x16xbf16>, vector<16x120xbf16>, vector<8x120xf32> -> vector<8x120xf32>
    %30 = arith.addf %26, %29 : vector<8x120xf32>
    %31 = vector.extract_strided_slice %17 {offsets = [24, 0], sizes = [8, 16], strides = [1, 1]} : vector<200x16xbf16> to vector<8x16xbf16>
    %c48 = arith.constant 48 : index
    %c0_15 = arith.constant 0 : index
    %32 = vector.load %arg3[%c48, %c0_15] : memref<400x120xbf16, #tpu.memory_space<vmem>>, vector<16x120xbf16>
    %cst_16 = arith.constant dense<0.000000e+00> : vector<8x120xf32>
    %33 = tpu.matmul %31, %32, %cst_16 {dimension_numbers = #tpu.dot_dimension_numbers<[1], [0], [0], [1], [0, 0, 1, 1], [], []>} : vector<8x16xbf16>, vector<16x120xbf16>, vector<8x120xf32> -> vector<8x120xf32>
    %34 = arith.addf %30, %33 : vector<8x120xf32>
    %35 = vector.extract_strided_slice %17 {offsets = [32, 0], sizes = [8, 16], strides = [1, 1]} : vector<200x16xbf16> to vector<8x16xbf16>
    %c64 = arith.constant 64 : index
    %c0_17 = arith.constant 0 : index
    %36 = vector.load %arg3[%c64, %c0_17] : memref<400x120xbf16, #tpu.memory_space<vmem>>, vector<16x120xbf16>
    %cst_18 = arith.constant dense<0.000000e+00> : vector<8x120xf32>
    %37 = tpu.matmul %35, %36, %cst_18 {dimension_numbers = #tpu.dot_dimension_numbers<[1], [0], [0], [1], [0, 0, 1, 1], [], []>} : vector<8x16xbf16>, vector<16x120xbf16>, vector<8x120xf32> -> vector<8x120xf32>
    %38 = arith.addf %34, %37 : vector<8x120xf32>
    %39 = vector.extract_strided_slice %17 {offsets = [40, 0], sizes = [8, 16], strides = [1, 1]} : vector<200x16xbf16> to vector<8x16xbf16>
    %c80 = arith.constant 80 : index
    %c0_19 = arith.constant 0 : index
    %40 = vector.load %arg3[%c80, %c0_19] : memref<400x120xbf16, #tpu.memory_space<vmem>>, vector<16x120xbf16>
    %cst_20 = arith.constant dense<0.000000e+00> : vector<8x120xf32>
    %41 = tpu.matmul %39, %40, %cst_20 {dimension_numbers = #tpu.dot_dimension_numbers<[1], [0], [0], [1], [0, 0, 1, 1], [], []>} : vector<8x16xbf16>, vector<16x120xbf16>, vector<8x120xf32> -> vector<8x120xf32>
    %42 = arith.addf %38, %41 : vector<8x120xf32>
    %43 = vector.extract_strided_slice %17 {offsets = [48, 0], sizes = [8, 16], strides = [1, 1]} : vector<200x16xbf16> to vector<8x16xbf16>
    %c96 = arith.constant 96 : index
    %c0_21 = arith.constant 0 : index
    %44 = vector.load %arg3[%c96, %c0_21] : memref<400x120xbf16, #tpu.memory_space<vmem>>, vector<16x120xbf16>
    %cst_22 = arith.constant dense<0.000000e+00> : vector<8x120xf32>
    %45 = tpu.matmul %43, %44, %cst_22 {dimension_numbers = #tpu.dot_dimension_numbers<[1], [0], [0], [1], [0, 0, 1, 1], [], []>} : vector<8x16xbf16>, vector<16x120xbf16>, vector<8x120xf32> -> vector<8x120xf32>
    %46 = arith.addf %42, %45 : vector<8x120xf32>
    %47 = vector.extract_strided_slice %17 {offsets = [56, 0], sizes = [8, 16], strides = [1, 1]} : vector<200x16xbf16> to vector<8x16xbf16>
    %c112 = arith.constant 112 : index
    %c0_23 = arith.constant 0 : index
    %48 = vector.load %arg3[%c112, %c0_23] : memref<400x120xbf16, #tpu.memory_space<vmem>>, vector<16x120xbf16>
    %cst_24 = arith.constant dense<0.000000e+00> : vector<8x120xf32>
    %49 = tpu.matmul %47, %48, %cst_24 {dimension_numbers = #tpu.dot_dimension_numbers<[1], [0], [0], [1], [0, 0, 1, 1], [], []>} : vector<8x16xbf16>, vector<16x120xbf16>, vector<8x120xf32> -> vector<8x120xf32>
    %50 = arith.addf %46, %49 : vector<8x120xf32>
    %51 = vector.extract_strided_slice %17 {offsets = [64, 0], sizes = [8, 16], strides = [1, 1]} : vector<200x16xbf16> to vector<8x16xbf16>
    %c128 = arith.constant 128 : index
    %c0_25 = arith.constant 0 : index
    %52 = vector.load %arg3[%c128, %c0_25] : memref<400x120xbf16, #tpu.memory_space<vmem>>, vector<16x120xbf16>
    %cst_26 = arith.constant dense<0.000000e+00> : vector<8x120xf32>
    %53 = tpu.matmul %51, %52, %cst_26 {dimension_numbers = #tpu.dot_dimension_numbers<[1], [0], [0], [1], [0, 0, 1, 1], [], []>} : vector<8x16xbf16>, vector<16x120xbf16>, vector<8x120xf32> -> vector<8x120xf32>
    %54 = arith.addf %50, %53 : vector<8x120xf32>
    %55 = vector.extract_strided_slice %17 {offsets = [72, 0], sizes = [8, 16], strides = [1, 1]} : vector<200x16xbf16> to vector<8x16xbf16>
    %c144 = arith.constant 144 : index
    %c0_27 = arith.constant 0 : index
    %56 = vector.load %arg3[%c144, %c0_27] : memref<400x120xbf16, #tpu.memory_space<vmem>>, vector<16x120xbf16>
    %cst_28 = arith.constant dense<0.000000e+00> : vector<8x120xf32>
    %57 = tpu.matmul %55, %56, %cst_28 {dimension_numbers = #tpu.dot_dimension_numbers<[1], [0], [0], [1], [0, 0, 1, 1], [], []>} : vector<8x16xbf16>, vector<16x120xbf16>, vector<8x120xf32> -> vector<8x120xf32>
    %58 = arith.addf %54, %57 : vector<8x120xf32>
    %59 = vector.extract_strided_slice %17 {offsets = [80, 0], sizes = [8, 16], strides = [1, 1]} : vector<200x16xbf16> to vector<8x16xbf16>
    %c160 = arith.constant 160 : index
    %c0_29 = arith.constant 0 : index
    %60 = vector.load %arg3[%c160, %c0_29] : memref<400x120xbf16, #tpu.memory_space<vmem>>, vector<16x120xbf16>
    %cst_30 = arith.constant dense<0.000000e+00> : vector<8x120xf32>
    %61 = tpu.matmul %59, %60, %cst_30 {dimension_numbers = #tpu.dot_dimension_numbers<[1], [0], [0], [1], [0, 0, 1, 1], [], []>} : vector<8x16xbf16>, vector<16x120xbf16>, vector<8x120xf32> -> vector<8x120xf32>
    %62 = arith.addf %58, %61 : vector<8x120xf32>
    %63 = vector.extract_strided_slice %17 {offsets = [88, 0], sizes = [8, 16], strides = [1, 1]} : vector<200x16xbf16> to vector<8x16xbf16>
    %c176 = arith.constant 176 : index
    %c0_31 = arith.constant 0 : index
    %64 = vector.load %arg3[%c176, %c0_31] : memref<400x120xbf16, #tpu.memory_space<vmem>>, vector<16x120xbf16>
    %cst_32 = arith.constant dense<0.000000e+00> : vector<8x120xf32>
    %65 = tpu.matmul %63, %64, %cst_32 {dimension_numbers = #tpu.dot_dimension_numbers<[1], [0], [0], [1], [0, 0, 1, 1], [], []>} : vector<8x16xbf16>, vector<16x120xbf16>, vector<8x120xf32> -> vector<8x120xf32>
    %66 = arith.addf %62, %65 : vector<8x120xf32>
    %67 = vector.extract_strided_slice %17 {offsets = [96, 0], sizes = [8, 16], strides = [1, 1]} : vector<200x16xbf16> to vector<8x16xbf16>
    %c192 = arith.constant 192 : index
    %c0_33 = arith.constant 0 : index
    %68 = vector.load %arg3[%c192, %c0_33] : memref<400x120xbf16, #tpu.memory_space<vmem>>, vector<16x120xbf16>
    %cst_34 = arith.constant dense<0.000000e+00> : vector<8x120xf32>
    %69 = tpu.matmul %67, %68, %cst_34 {dimension_numbers = #tpu.dot_dimension_numbers<[1], [0], [0], [1], [0, 0, 1, 1], [], []>} : vector<8x16xbf16>, vector<16x120xbf16>, vector<8x120xf32> -> vector<8x120xf32>
    %70 = arith.addf %66, %69 : vector<8x120xf32>
    %71 = vector.extract_strided_slice %17 {offsets = [104, 0], sizes = [8, 16], strides = [1, 1]} : vector<200x16xbf16> to vector<8x16xbf16>
    %c208 = arith.constant 208 : index
    %c0_35 = arith.constant 0 : index
    %72 = vector.load %arg3[%c208, %c0_35] : memref<400x120xbf16, #tpu.memory_space<vmem>>, vector<16x120xbf16>
    %cst_36 = arith.constant dense<0.000000e+00> : vector<8x120xf32>
    %73 = tpu.matmul %71, %72, %cst_36 {dimension_numbers = #tpu.dot_dimension_numbers<[1], [0], [0], [1], [0, 0, 1, 1], [], []>} : vector<8x16xbf16>, vector<16x120xbf16>, vector<8x120xf32> -> vector<8x120xf32>
    %74 = arith.addf %70, %73 : vector<8x120xf32>
    %75 = vector.extract_strided_slice %17 {offsets = [112, 0], sizes = [8, 16], strides = [1, 1]} : vector<200x16xbf16> to vector<8x16xbf16>
    %c224 = arith.constant 224 : index
    %c0_37 = arith.constant 0 : index
    %76 = vector.load %arg3[%c224, %c0_37] : memref<400x120xbf16, #tpu.memory_space<vmem>>, vector<16x120xbf16>
    %cst_38 = arith.constant dense<0.000000e+00> : vector<8x120xf32>
    %77 = tpu.matmul %75, %76, %cst_38 {dimension_numbers = #tpu.dot_dimension_numbers<[1], [0], [0], [1], [0, 0, 1, 1], [], []>} : vector<8x16xbf16>, vector<16x120xbf16>, vector<8x120xf32> -> vector<8x120xf32>
    %78 = arith.addf %74, %77 : vector<8x120xf32>
    %79 = vector.extract_strided_slice %17 {offsets = [120, 0], sizes = [8, 16], strides = [1, 1]} : vector<200x16xbf16> to vector<8x16xbf16>
    %c240 = arith.constant 240 : index
    %c0_39 = arith.constant 0 : index
    %80 = vector.load %arg3[%c240, %c0_39] : memref<400x120xbf16, #tpu.memory_space<vmem>>, vector<16x120xbf16>
    %cst_40 = arith.constant dense<0.000000e+00> : vector<8x120xf32>
    %81 = tpu.matmul %79, %80, %cst_40 {dimension_numbers = #tpu.dot_dimension_numbers<[1], [0], [0], [1], [0, 0, 1, 1], [], []>} : vector<8x16xbf16>, vector<16x120xbf16>, vector<8x120xf32> -> vector<8x120xf32>
    %82 = arith.addf %78, %81 : vector<8x120xf32>
    %83 = vector.extract_strided_slice %17 {offsets = [128, 0], sizes = [8, 16], strides = [1, 1]} : vector<200x16xbf16> to vector<8x16xbf16>
    %c256 = arith.constant 256 : index
    %c0_41 = arith.constant 0 : index
    %84 = vector.load %arg3[%c256, %c0_41] : memref<400x120xbf16, #tpu.memory_space<vmem>>, vector<16x120xbf16>
    %cst_42 = arith.constant dense<0.000000e+00> : vector<8x120xf32>
    %85 = tpu.matmul %83, %84, %cst_42 {dimension_numbers = #tpu.dot_dimension_numbers<[1], [0], [0], [1], [0, 0, 1, 1], [], []>} : vector<8x16xbf16>, vector<16x120xbf16>, vector<8x120xf32> -> vector<8x120xf32>
    %86 = arith.addf %82, %85 : vector<8x120xf32>
    %87 = vector.extract_strided_slice %17 {offsets = [136, 0], sizes = [8, 16], strides = [1, 1]} : vector<200x16xbf16> to vector<8x16xbf16>
    %c272 = arith.constant 272 : index
    %c0_43 = arith.constant 0 : index
    %88 = vector.load %arg3[%c272, %c0_43] : memref<400x120xbf16, #tpu.memory_space<vmem>>, vector<16x120xbf16>
    %cst_44 = arith.constant dense<0.000000e+00> : vector<8x120xf32>
    %89 = tpu.matmul %87, %88, %cst_44 {dimension_numbers = #tpu.dot_dimension_numbers<[1], [0], [0], [1], [0, 0, 1, 1], [], []>} : vector<8x16xbf16>, vector<16x120xbf16>, vector<8x120xf32> -> vector<8x120xf32>
    %90 = arith.addf %86, %89 : vector<8x120xf32>
    %91 = vector.extract_strided_slice %17 {offsets = [144, 0], sizes = [8, 16], strides = [1, 1]} : vector<200x16xbf16> to vector<8x16xbf16>
    %c288 = arith.constant 288 : index
    %c0_45 = arith.constant 0 : index
    %92 = vector.load %arg3[%c288, %c0_45] : memref<400x120xbf16, #tpu.memory_space<vmem>>, vector<16x120xbf16>
    %cst_46 = arith.constant dense<0.000000e+00> : vector<8x120xf32>
    %93 = tpu.matmul %91, %92, %cst_46 {dimension_numbers = #tpu.dot_dimension_numbers<[1], [0], [0], [1], [0, 0, 1, 1], [], []>} : vector<8x16xbf16>, vector<16x120xbf16>, vector<8x120xf32> -> vector<8x120xf32>
    %94 = arith.addf %90, %93 : vector<8x120xf32>
    %95 = vector.extract_strided_slice %17 {offsets = [152, 0], sizes = [8, 16], strides = [1, 1]} : vector<200x16xbf16> to vector<8x16xbf16>
    %c304 = arith.constant 304 : index
    %c0_47 = arith.constant 0 : index
    %96 = vector.load %arg3[%c304, %c0_47] : memref<400x120xbf16, #tpu.memory_space<vmem>>, vector<16x120xbf16>
    %cst_48 = arith.constant dense<0.000000e+00> : vector<8x120xf32>
    %97 = tpu.matmul %95, %96, %cst_48 {dimension_numbers = #tpu.dot_dimension_numbers<[1], [0], [0], [1], [0, 0, 1, 1], [], []>} : vector<8x16xbf16>, vector<16x120xbf16>, vector<8x120xf32> -> vector<8x120xf32>
    %98 = arith.addf %94, %97 : vector<8x120xf32>
    %99 = vector.extract_strided_slice %17 {offsets = [160, 0], sizes = [8, 16], strides = [1, 1]} : vector<200x16xbf16> to vector<8x16xbf16>
    %c320 = arith.constant 320 : index
    %c0_49 = arith.constant 0 : index
    %100 = vector.load %arg3[%c320, %c0_49] : memref<400x120xbf16, #tpu.memory_space<vmem>>, vector<16x120xbf16>
    %cst_50 = arith.constant dense<0.000000e+00> : vector<8x120xf32>
    %101 = tpu.matmul %99, %100, %cst_50 {dimension_numbers = #tpu.dot_dimension_numbers<[1], [0], [0], [1], [0, 0, 1, 1], [], []>} : vector<8x16xbf16>, vector<16x120xbf16>, vector<8x120xf32> -> vector<8x120xf32>
    %102 = arith.addf %98, %101 : vector<8x120xf32>
    %103 = vector.extract_strided_slice %17 {offsets = [168, 0], sizes = [8, 16], strides = [1, 1]} : vector<200x16xbf16> to vector<8x16xbf16>
    %c336 = arith.constant 336 : index
    %c0_51 = arith.constant 0 : index
    %104 = vector.load %arg3[%c336, %c0_51] : memref<400x120xbf16, #tpu.memory_space<vmem>>, vector<16x120xbf16>
    %cst_52 = arith.constant dense<0.000000e+00> : vector<8x120xf32>
    %105 = tpu.matmul %103, %104, %cst_52 {dimension_numbers = #tpu.dot_dimension_numbers<[1], [0], [0], [1], [0, 0, 1, 1], [], []>} : vector<8x16xbf16>, vector<16x120xbf16>, vector<8x120xf32> -> vector<8x120xf32>
    %106 = arith.addf %102, %105 : vector<8x120xf32>
    %107 = vector.extract_strided_slice %17 {offsets = [176, 0], sizes = [8, 16], strides = [1, 1]} : vector<200x16xbf16> to vector<8x16xbf16>
    %c352 = arith.constant 352 : index
    %c0_53 = arith.constant 0 : index
    %108 = vector.load %arg3[%c352, %c0_53] : memref<400x120xbf16, #tpu.memory_space<vmem>>, vector<16x120xbf16>
    %cst_54 = arith.constant dense<0.000000e+00> : vector<8x120xf32>
    %109 = tpu.matmul %107, %108, %cst_54 {dimension_numbers = #tpu.dot_dimension_numbers<[1], [0], [0], [1], [0, 0, 1, 1], [], []>} : vector<8x16xbf16>, vector<16x120xbf16>, vector<8x120xf32> -> vector<8x120xf32>
    %110 = arith.addf %106, %109 : vector<8x120xf32>
    %111 = vector.extract_strided_slice %17 {offsets = [184, 0], sizes = [8, 16], strides = [1, 1]} : vector<200x16xbf16> to vector<8x16xbf16>
    %c368 = arith.constant 368 : index
    %c0_55 = arith.constant 0 : index
    %112 = vector.load %arg3[%c368, %c0_55] : memref<400x120xbf16, #tpu.memory_space<vmem>>, vector<16x120xbf16>
    %cst_56 = arith.constant dense<0.000000e+00> : vector<8x120xf32>
    %113 = tpu.matmul %111, %112, %cst_56 {dimension_numbers = #tpu.dot_dimension_numbers<[1], [0], [0], [1], [0, 0, 1, 1], [], []>} : vector<8x16xbf16>, vector<16x120xbf16>, vector<8x120xf32> -> vector<8x120xf32>
    %114 = arith.addf %110, %113 : vector<8x120xf32>
    %115 = vector.extract_strided_slice %17 {offsets = [192, 0], sizes = [8, 16], strides = [1, 1]} : vector<200x16xbf16> to vector<8x16xbf16>
    %c384 = arith.constant 384 : index
    %c0_57 = arith.constant 0 : index
    %116 = vector.load %arg3[%c384, %c0_57] : memref<400x120xbf16, #tpu.memory_space<vmem>>, vector<16x120xbf16>
    %cst_58 = arith.constant dense<0.000000e+00> : vector<8x120xf32>
    %117 = tpu.matmul %115, %116, %cst_58 {dimension_numbers = #tpu.dot_dimension_numbers<[1], [0], [0], [1], [0, 0, 1, 1], [], []>} : vector<8x16xbf16>, vector<16x120xbf16>, vector<8x120xf32> -> vector<8x120xf32>
    %118 = arith.addf %114, %117 : vector<8x120xf32>
    %c0_59 = arith.constant 0 : index
    %c0_60 = arith.constant 0 : index
    %119 = vector.load %arg4[%c0_59, %c0_60] : memref<1x120xf32, #tpu.memory_space<vmem>>, vector<1x120xf32>
    %120 = vector.broadcast %119 : vector<1x120xf32> to vector<8x120xf32>
    %121 = arith.addf %118, %120 : vector<8x120xf32>
    %cst_61 = arith.constant 0.000000e+00 : f32
    %122 = vector.broadcast %cst_61 : f32 to vector<8x120xf32>
    %123 = arith.maximumf %121, %122 : vector<8x120xf32>
    %124 = arith.truncf %123 : vector<8x120xf32> to vector<8x120xbf16>
    %c0_62 = arith.constant 0 : index
    %c0_63 = arith.constant 0 : index
    %125 = vector.load %arg5[%c0_62, %c0_63] : memref<120x84xbf16, #tpu.memory_space<vmem>>, vector<120x84xbf16>
    %cst_64 = arith.constant dense<0.000000e+00> : vector<8x84xf32>
    %126 = tpu.matmul %124, %125, %cst_64 {dimension_numbers = #tpu.dot_dimension_numbers<[1], [0], [0], [1], [0, 0, 1, 1], [], []>} : vector<8x120xbf16>, vector<120x84xbf16>, vector<8x84xf32> -> vector<8x84xf32>
    %c0_65 = arith.constant 0 : index
    %c0_66 = arith.constant 0 : index
    %127 = vector.load %arg6[%c0_65, %c0_66] : memref<1x84xf32, #tpu.memory_space<vmem>>, vector<1x84xf32>
    %128 = vector.broadcast %127 : vector<1x84xf32> to vector<8x84xf32>
    %129 = arith.addf %126, %128 : vector<8x84xf32>
    %cst_67 = arith.constant 0.000000e+00 : f32
    %130 = vector.broadcast %cst_67 : f32 to vector<8x84xf32>
    %131 = arith.maximumf %129, %130 : vector<8x84xf32>
    %132 = arith.truncf %131 : vector<8x84xf32> to vector<8x84xbf16>
    %c0_68 = arith.constant 0 : index
    %c0_69 = arith.constant 0 : index
    %133 = vector.load %arg7[%c0_68, %c0_69] : memref<84x10xbf16, #tpu.memory_space<vmem>>, vector<84x10xbf16>
    %cst_70 = arith.constant dense<0.000000e+00> : vector<8x10xf32>
    %134 = tpu.matmul %132, %133, %cst_70 {dimension_numbers = #tpu.dot_dimension_numbers<[1], [0], [0], [1], [0, 0, 1, 1], [], []>} : vector<8x84xbf16>, vector<84x10xbf16>, vector<8x10xf32> -> vector<8x10xf32>
    %c0_71 = arith.constant 0 : index
    %c0_72 = arith.constant 0 : index
    %135 = vector.load %arg8[%c0_71, %c0_72] : memref<1x10xf32, #tpu.memory_space<vmem>>, vector<1x10xf32>
    %136 = vector.broadcast %135 : vector<1x10xf32> to vector<8x10xf32>
    %137 = arith.addf %134, %136 : vector<8x10xf32>
    %c0_73 = arith.constant 0 : index
    %c0_74 = arith.constant 0 : index
    %138 = vector.load %arg9[%c0_73, %c0_74] : memref<8x10xf32, #tpu.memory_space<vmem>>, vector<8x10xf32>
    tpu.vector_store %arg9[%c0_73, %c0_74], %137 {strides = array<i32>} : memref<8x10xf32, #tpu.memory_space<vmem>>, vector<8x10xf32>,
    return
  }
}

</mosaic_0001>

<bundles_post_ra>
// kernel: lenet5_forward.2
= control target key start
LH: loop header
LB: loop body
LE: loop exit
PB: predicated region body
PF: predicated region fallthrough
CT: control target
= control target key end

     0   :  { %vm173_vm0 = vcmask 1043456   ;;  %vm174_vm1 = vcmask 1044480   ;;  %v2521_v1 = vmov 65535   ;;  %v2522_v3 = vmov 0   ;;  %s3166_s0 = inlined_call_operand.vmem [shape: bf16[4,25,1568], index: 0, kind: input, shape index: {}]   ;;  %s3167_s1 = inlined_call_operand.vmem [shape: bf16[6,25], index: 1, kind: input, shape index: {}]   ;;  %s3168_s2 = inlined_call_operand.vmem [shape: f32[6,1], index: 2, kind: input, shape index: {}]   ;;  %s3169_s3 = inlined_call_operand.vmem [shape: bf16[6,1568], index: 3, kind: output, shape index: {}]  }
   0x1   :  { %v2369_v0 = vld [vmem:[%s3166_s0 + $0x4] ss:$52 sps:$4 sm:$0xff]   ;;  %v175_v2 = vsel %vm173_vm0, 4294967295, %v2521_v1  ;;  %248 = vmatprep.mubr.bf16.mxu0 %v2522_v3  ;;  %289 = vmatprep.mubr.bf16.mxu1 %v2522_v3  ;;  %v2371_v4 = vld [vmem:[%s3166_s0 + $0xc] ss:$52 sps:$4 sm:$0xff]   ;;  %vm169_vm2 = vcmask 203776  }
   0x2   :  { %2368 = vset.pattern.permute.xlu0 %v2522_v3  ;;  %216 = vmatprep.subr.bf16.mxu0 %v2369_v0  ;;  %v2373_v5 = vld [vmem:[%s3166_s0] ss:$52 sps:$4 sm:$0xff]   ;;  %v2374_v6 = vld [vmem:[%s3166_s0 + $0x8] ss:$52 sps:$4 sm:$0xff]   ;;  %v2560_v7 = vsel %vm174_vm1, %v175_v2, 0  ;;  %v2523_v47 = vmov 0.0  }
   0x3   :  { %257 = vmatprep.subr.bf16.mxu1 %v2371_v4  ;;  %v2375_v8 = vld [vmem:[%s3166_s0 + $0x6c] ss:$52 sps:$4 sm:$0x1f]   ;;  %217 = vmatpush1.bf16.msra.mxu0 %v2373_v5  ;;  %v2377_v9 = vld [vmem:[%s3166_s0 + $0x74] ss:$52 sps:$4 sm:$0x1f]  }
   0x4   :  { %258 = vmatpush1.bf16.msra.mxu1 %v2374_v6  ;;  %v181_v10 = vand.u32 %v2375_v8, %v2560_v7  ;;  %v2379_v11 = vld [vmem:[%s3166_s0 + $0x68] ss:$52 sps:$4 sm:$0x1f]   ;;  %v2380_v12 = vld [vmem:[%s3166_s0 + $0x70] ss:$52 sps:$4 sm:$0x1f]   ;;  %v187_v13 = vand.u32 %v2377_v9, %v2560_v7 }
   0x5   :  { %v178_v14 = vand.u32 %v2379_v11, %v2560_v7  ;;  %v184_v15 = vand.u32 %v2380_v12, %v2560_v7  ;;  %v2581_v16 = vld [vmem:[%s3167_s1] sm:$0x7]  ;;  %v2381_v17 = vld [vmem:[%s3166_s0 + $0x10] ss:$52 sps:$4 sm:$0xff]   ;;  %v2383_v18 = vld [vmem:[%s3166_s0 + $0x14] ss:$52 sps:$4 sm:$0xff]  }
   0x6   :  { %218 = vmatprep.subr.bf16.mxu0 %v181_v10  ;;  %259 = vmatprep.subr.bf16.mxu1 %v187_v13  ;;  %v2384_v19 = vld [vmem:[%s3166_s0 + $0x18] ss:$52 sps:$4 sm:$0xff]   ;;  %v2386_v20 = vld [vmem:[%s3166_s0 + $0x1c] ss:$52 sps:$4 sm:$0xff]   ;;  %v2393_v31 = vld [vmem:[%s3166_s0 + $0x20] ss:$52 sps:$4 sm:$0xff]  }
   0x7   :  { %219 = vmatpush1.bf16.msra.mxu0 %v178_v14  ;;  %v2387_v21 = vld [vmem:[%s3166_s0 + $0x78] ss:$52 sps:$4 sm:$0x1f]   ;;  %v2389_v22 = vld [vmem:[%s3166_s0 + $0x7c] ss:$52 sps:$4 sm:$0x1f]  }
   0x8   :  { %260 = vmatpush1.bf16.msra.mxu1 %v184_v15  ;;  %298 = vmatprep.subr.bf16.mxu0 %v2383_v18  ;;  %v2390_v23 = vld [vmem:[%s3166_s0 + $0x80] ss:$52 sps:$4 sm:$0x1f]   ;;  %v2392_v24 = vld [vmem:[%s3166_s0 + $0x84] ss:$52 sps:$4 sm:$0x1f]   ;;  %v193_v25 = vand.u32 %v2389_v22, %v2560_v7  ;;  %v190_v27 = vand.u32 %v2387_v21, %v2560_v7 }
   0x9   :  { %339 = vmatprep.subr.bf16.mxu1 %v2386_v20  ;;  %v199_v26 = vand.u32 %v2392_v24, %v2560_v7  ;;  %v196_v28 = vand.u32 %v2390_v23, %v2560_v7  ;;  %v2395_v29 = vld [vmem:[%s3166_s0 + $0x24] ss:$52 sps:$4 sm:$0xff]   ;;  %v2398_v30 = vld [vmem:[%s3166_s0 + $0x2c] ss:$52 sps:$4 sm:$0xff]   ;;  %v2396_v32 = vld [vmem:[%s3166_s0 + $0x28] ss:$52 sps:$4 sm:$0xff]  }
   0xa   :  { %2116 = vmatmul.mubr.msk.bf16.vlgmr.msra.gmra.mrb[0].mxu0 %vm169_vm2, %v2581_v16  ;;  %v2399_v33 = vld [vmem:[%s3166_s0 + $0x88] ss:$52 sps:$4 sm:$0x1f]   ;;  %v2401_v34 = vld [vmem:[%s3166_s0 + $0x8c] ss:$52 sps:$4 sm:$0x1f]  }
   0xb   :  { %2117 = vmatmul.mubr.msk.bf16.vlgmr.msra.gmra.mrb[0].mxu1 %vm169_vm2, %v2581_v16  ;;  %299 = vmatpush1.bf16.msra.mxu0 %v2381_v17  ;;  %v2402_v35 = vld [vmem:[%s3166_s0 + $0x90] ss:$52 sps:$4 sm:$0x1f]   ;;  %v2404_v36 = vld [vmem:[%s3166_s0 + $0x94] ss:$52 sps:$4 sm:$0x1f]   ;;  %v205_v37 = vand.u32 %v2401_v34, %v2560_v7  ;;  %v202_v39 = vand.u32 %v2399_v33, %v2560_v7 }
   0xc   :  { %340 = vmatpush1.bf16.msra.mxu1 %v2384_v19  ;;  %300 = vmatprep.subr.bf16.mxu0 %v193_v25  ;;  %v211_v38 = vand.u32 %v2404_v36, %v2560_v7  ;;  %v208_v40 = vand.u32 %v2402_v35, %v2560_v7  ;;  %v2407_v41 = vld [vmem:[%s3166_s0 + $0xd4] ss:$52 sps:$4 sm:$0xff]   ;;  %v2411_v42 = vld [vmem:[%s3166_s0 + $0x13c] ss:$52 sps:$4 sm:$0x1f]   ;;  %vm2524_vm3 = vmmov 0  }
   0xd   :  { %330 = vmatprep.mubr.bf16.mxu0 %v2522_v3  ;;  %341 = vmatprep.subr.bf16.mxu1 %v199_v26  ;;  %v2405_v43 = vld [vmem:[%s3166_s0 + $0xd0] ss:$52 sps:$4 sm:$0xff]   ;;  %v2409_v45 = vld [vmem:[%s3166_s0 + $0x138] ss:$52 sps:$4 sm:$0x1f]   ;;  %v667_v48 = vand.u32 %v2411_v42, %v2560_v7  ;;  %vm2084_vm4 = vcmask 256000  }
   0xe   :  { %371 = vmatprep.mubr.bf16.mxu1 %v2522_v3  ;;  %v2408_v44 = vld [vmem:[%s3166_s0 + $0x30] ss:$52 sps:$4 sm:$0xff]   ;;  %v2412_v46 = vld [vmem:[%s3166_s0 + $0x98] ss:$52 sps:$4 sm:$0x1f]   ;;  %v664_v52 = vand.u32 %v2409_v45, %v2560_v7 }
   0xf   :  { %301 = vmatpush1.bf16.msra.mxu0 %v190_v27  ;;  %v2415_v49 = vld [vmem:[%s3166_s0 + $0xdc] ss:$52 sps:$4 sm:$0xff]   ;;  %v2418_v50 = vld [vmem:[%s3166_s0 + $0xe4] ss:$52 sps:$4 sm:$0xff]   ;;  %v214_v51 = vand.u32 %v2412_v46, %v2560_v7  ;;  %v2416_v56 = vld [vmem:[%s3166_s0 + $0xe0] ss:$52 sps:$4 sm:$0xff]  }
  0x10   :  { %342 = vmatpush1.bf16.msra.mxu1 %v196_v28  ;;  %380 = vmatprep.subr.bf16.mxu0 %v2395_v29  ;;  %v2421_v53 = vld [vmem:[%s3166_s0 + $0x144] ss:$52 sps:$4 sm:$0x1f]   ;;  %v2424_v54 = vld [vmem:[%s3166_s0 + $0x14c] ss:$52 sps:$4 sm:$0x1f]  }
  0x11   :  { %421 = vmatprep.subr.bf16.mxu1 %v2398_v30  ;;  %v2413_v55 = vld [vmem:[%s3166_s0 + $0xd8] ss:$52 sps:$4 sm:$0xff]   ;;  %v2419_v57 = vld [vmem:[%s3166_s0 + $0x140] ss:$52 sps:$4 sm:$0x1f]   ;;  %v673_v59 = vand.u32 %v2421_v53, %v2560_v7  ;;  %v679_v60 = vand.u32 %v2424_v54, %v2560_v7 }
  0x12   :  { %2118 = vmatmul.mubr.msk.bf16.vlgmr.msra.gmra.mrb[4].mxu0 %vm169_vm2, %v2581_v16  ;;  %v2422_v58 = vld [vmem:[%s3166_s0 + $0x148] ss:$52 sps:$4 sm:$0x1f]   ;;  %v2427_v61 = vld [vmem:[%s3166_s0 + $0xec] ss:$52 sps:$4 sm:$0xff]   ;;  %v670_v63 = vand.u32 %v2419_v57, %v2560_v7 }
  0x13   :  { %2119 = vmatmul.mubr.msk.bf16.vlgmr.msra.gmra.mrb[4].mxu1 %vm169_vm2, %v2581_v16  ;;  %381 = vmatpush1.bf16.msra.mxu0 %v2393_v31  ;;  %v2430_v62 = vld [vmem:[%s3166_s0 + $0xf4] ss:$52 sps:$4 sm:$0xff]   ;;  %v676_v0 = vand.u32 %v2422_v58, %v2560_v7  ;;  %v2436_v2 = vld [vmem:[%s3166_s0 + $0x15c] ss:$52 sps:$4 sm:$0x1f]  }
  0x14   :  { %422 = vmatpush1.bf16.msra.mxu1 %v2396_v32  ;;  %382 = vmatprep.subr.bf16.mxu0 %v205_v37  ;;  %v2433_v1 = vld [vmem:[%s3166_s0 + $0x154] ss:$52 sps:$4 sm:$0x1f]   ;;  %v2428_v5 = vld [vmem:[%s3166_s0 + $0xf0] ss:$52 sps:$4 sm:$0xff]   ;;  %v691_v10 = vand.u32 %v2436_v2, %v2560_v7 }
  0x15   :  { %423 = vmatprep.subr.bf16.mxu1 %v211_v38  ;;  %412 = vmatprep.mubr.bf16.mxu0 %v2522_v3  ;;  %v2425_v4 = vld [vmem:[%s3166_s0 + $0xe8] ss:$52 sps:$4 sm:$0xff]   ;;  %v2431_v6 = vld [vmem:[%s3166_s0 + $0x150] ss:$52 sps:$4 sm:$0x1f]   ;;  %v685_v9 = vand.u32 %v2433_v1, %v2560_v7 }
  0x16   :  { %453 = vmatprep.mubr.bf16.mxu1 %v2522_v3  ;;  %v2434_v8 = vld [vmem:[%s3166_s0 + $0x158] ss:$52 sps:$4 sm:$0x1f]   ;;  %v682_v11 = vand.u32 %v2431_v6, %v2560_v7  ;;  %v2439_v13 = vld [vmem:[%s3166_s0 + $0xfc] ss:$52 sps:$4 sm:$0xff]  }
  0x17   :  { %383 = vmatpush1.bf16.msra.mxu0 %v202_v39  ;;  %v688_v12 = vand.u32 %v2434_v8, %v2560_v7  ;;  %v2443_v14 = vld [vmem:[%s3166_s0 + $0x164] ss:$52 sps:$4 sm:$0x1f]   ;;  %v2440_v17 = vld [vmem:[%s3166_s0 + $0x100] ss:$52 sps:$4 sm:$0xff]  }
  0x18   :  { %424 = vmatpush1.bf16.msra.mxu1 %v208_v40  ;;  %2332 = vmatprep.subr.bf16.mxu0 %v2523_v47  ;;  %v2437_v15 = vld [vmem:[%s3166_s0 + $0xf8] ss:$52 sps:$4 sm:$0xff]   ;;  %v2441_v18 = vld [vmem:[%s3166_s0 + $0x160] ss:$52 sps:$4 sm:$0x1f]   ;;  %v697_v20 = vand.u32 %v2443_v14, %v2560_v7 }
  0x19   :  { %702 = vmatprep.subr.bf16.mxu1 %v2407_v41  ;;  %v2444_v19 = vld [vmem:[%s3166_s0 + $0x168] ss:$52 sps:$4 sm:$0x1f]   ;;  %v2447_v21 = vld [vmem:[%s3166_s0 + $0x1a4] ss:$52 sps:$4 sm:$0xff]   ;;  %v694_v22 = vand.u32 %v2441_v18, %v2560_v7 }
  0x1a   :  { %2120 = vmatmul.mubr.msk.bf16.vlgmr.msra.gmra.mrb[8].mxu0 %vm169_vm2, %v2581_v16  ;;  %v700_v23 = vand.u32 %v2444_v19, %v2560_v7  ;;  %v2450_v24 = vld [vmem:[%s3166_s0 + $0x1ac] ss:$52 sps:$4 sm:$0xff]   ;;  %v2456_v26 = vld [vmem:[%s3166_s0 + $0x214] ss:$52 sps:$4 sm:$0x1f]  }
  0x1b   :  { %2121 = vmatmul.mubr.msk.bf16.vlgmr.msra.gmra.mrb[8].mxu1 %vm169_vm2, %v2581_v16  ;;  %2333 = vmatpush3.bf16.msra.mxu0 %v2408_v44  ;;  %v2453_v25 = vld [vmem:[%s3166_s0 + $0x20c] ss:$52 sps:$4 sm:$0x1f]   ;;  %v2451_v28 = vld [vmem:[%s3166_s0 + $0x208] ss:$52 sps:$4 sm:$0x1f]   ;;  %v1172_v32 = vand.u32 %v2456_v26, %v2560_v7 }
  0x1c   :  { %703 = vmatpush1.bf16.msra.mxu1 %v2405_v43  ;;  %2334 = vmatprep.subr.bf16.mxu0 %v2523_v47  ;;  %v2445_v27 = vld [vmem:[%s3166_s0 + $0x1a0] ss:$52 sps:$4 sm:$0xff]   ;;  %v2448_v29 = vld [vmem:[%s3166_s0 + $0x1a8] ss:$52 sps:$4 sm:$0xff]   ;;  %v1166_v31 = vand.u32 %v2453_v25, %v2560_v7  ;;  %v1163_v34 = vand.u32 %v2451_v28, %v2560_v7  ;;  %v2457_v39 = vld [vmem:[%s3166_s0 + $0x1b0] ss:$52 sps:$4 sm:$0xff]  }
  0x1d   :  { %704 = vmatprep.subr.bf16.mxu1 %v667_v48  ;;  %2336 = vmatprep.mubr.msk.bf16.mxu0 %vm2524_vm3, %v2523_v47  ;;  %v2454_v30 = vld [vmem:[%s3166_s0 + $0x210] ss:$52 sps:$4 sm:$0x1f]   ;;  %v2459_v33 = vld [vmem:[%s3166_s0 + $0x1b4] ss:$52 sps:$4 sm:$0xff]  }
  0x1e   :  { %734 = vmatprep.mubr.bf16.mxu1 %v2522_v3  ;;  %v1169_v35 = vand.u32 %v2454_v30, %v2560_v7  ;;  %v2465_v36 = vld [vmem:[%s3166_s0 + $0x21c] ss:$52 sps:$4 sm:$0x1f]   ;;  %v2468_v38 = vld [vmem:[%s3166_s0 + $0x224] ss:$52 sps:$4 sm:$0x1f]  }
  0x1f   :  { %2335 = vmatpush3.bf16.msra.mxu0 %v214_v51  ;;  %v2462_v37 = vld [vmem:[%s3166_s0 + $0x1bc] ss:$52 sps:$4 sm:$0xff]   ;;  %v2460_v40 = vld [vmem:[%s3166_s0 + $0x1b8] ss:$52 sps:$4 sm:$0xff]   ;;  %v1178_v43 = vand.u32 %v2465_v36, %v2560_v7  ;;  %v1184_v44 = vand.u32 %v2468_v38, %v2560_v7  ;;  %v16_v45 = vld [vmem:[%s3168_s2] sm:$0x3f] }
  0x20   :  { %705 = vmatpush1.bf16.msra.mxu1 %v664_v52  ;;  %743 = vmatprep.subr.bf16.mxu0 %v2415_v49  ;;  %v2463_v41 = vld [vmem:[%s3166_s0 + $0x218] ss:$52 sps:$4 sm:$0x1f]   ;;  %v2466_v42 = vld [vmem:[%s3166_s0 + $0x220] ss:$52 sps:$4 sm:$0x1f]  }
  0x21   :  { %784 = vmatprep.subr.bf16.mxu1 %v2418_v50  ;;  %47 = vperm.xlu0 %2368, %v16_v45   ;;  %v2471_v46 = vld [vmem:[%s3166_s0 + $0x1c4] ss:$52 sps:$4 sm:$0xff]   ;;  %v2474_v48 = vld [vmem:[%s3166_s0 + $0x1cc] ss:$52 sps:$4 sm:$0xff]   ;;  %v1175_v49 = vand.u32 %v2463_v41, %v2560_v7  ;;  %v1181_v50 = vand.u32 %v2466_v42, %v2560_v7  ;;  %v2491_v8 = vld [vmem:[%s3166_s0 + $0x27c] ss:$52 sps:$4 sm:$0xff]  }
  0x22   :  { %2337 = vmatmul.mubr.msk.bf16.vlgmr.msra.gmra.mrb[12].mxu0 %vm169_vm2, %v2581_v16  ;;  %v2477_v51 = vld [vmem:[%s3166_s0 + $0x22c] ss:$52 sps:$4 sm:$0x1f]   ;;  %v2480_v52 = vld [vmem:[%s3166_s0 + $0x234] ss:$52 sps:$4 sm:$0x1f]  }
  0x23   :  { %2177 = vmatmul.mubr.msk.bf16.vlgmr.msra.gmra.mrb[12].mxu1 %vm169_vm2, %v2581_v16  ;;  %744 = vmatpush1.bf16.msra.mxu0 %v2413_v55  ;;  %v2475_v53 = vld [vmem:[%s3166_s0 + $0x228] ss:$52 sps:$4 sm:$0x1f]   ;;  %v2469_v54 = vld [vmem:[%s3166_s0 + $0x1c0] ss:$52 sps:$4 sm:$0xff]   ;;  %v1190_v57 = vand.u32 %v2477_v51, %v2560_v7  ;;  %v1196_v58 = vand.u32 %v2480_v52, %v2560_v7 }
  0x24   :  { %785 = vmatpush1.bf16.msra.mxu1 %v2416_v56  ;;  %745 = vmatprep.subr.bf16.mxu0 %v673_v59  ;;  %v2478_v55 = vld [vmem:[%s3166_s0 + $0x230] ss:$52 sps:$4 sm:$0x1f]   ;;  %v2472_v56 = vld [vmem:[%s3166_s0 + $0x1c8] ss:$52 sps:$4 sm:$0xff]   ;;  %v1187_v59 = vand.u32 %v2475_v53, %v2560_v7 }
  0x25   :  { %786 = vmatprep.subr.bf16.mxu1 %v679_v60  ;;  %775 = vmatprep.mubr.bf16.mxu0 %v2522_v3  ;;  %v1193_v60 = vand.u32 %v2478_v55, %v2560_v7  ;;  %v2485_v1 = vld [vmem:[%s3166_s0 + $0x2d8] ss:$52 sps:$4 sm:$0x1f]   ;;  %v2495_v14 = vld [vmem:[%s3166_s0 + $0x2e0] ss:$52 sps:$4 sm:$0x1f]  }
  0x26   :  { %816 = vmatprep.mubr.bf16.mxu1 %v2522_v3  ;;  %v2488_v2 = vld [vmem:[%s3166_s0 + $0x238] ss:$52 sps:$4 sm:$0x1f]   ;;  %v1662_v6 = vand.u32 %v2485_v1, %v2560_v7  ;;  %v1668_v19 = vand.u32 %v2495_v14, %v2560_v7  ;;  %v2501_v25 = vld [vmem:[%s3166_s0 + $0x288] ss:$52 sps:$4 sm:$0xff]  }
  0x27   :  { %746 = vmatpush1.bf16.msra.mxu0 %v670_v63  ;;  %v2481_v63 = vld [vmem:[%s3166_s0 + $0x270] ss:$52 sps:$4 sm:$0xff]   ;;  %v2510_v28 = vld [vmem:[%s3166_s0 + $0x2f8] ss:$52 sps:$4 sm:$0x1f]  }
  0x28   :  { %787 = vmatpush1.bf16.msra.mxu1 %v676_v0  ;;  %825 = vmatprep.subr.bf16.mxu0 %v2427_v61  ;;  %v2483_v61 = vld [vmem:[%s3166_s0 + $0x274] ss:$52 sps:$4 sm:$0xff]   ;;  %v2484_v0 = vld [vmem:[%s3166_s0 + $0x1d0] ss:$52 sps:$4 sm:$0xff]  }
  0x29   :  { %866 = vmatprep.subr.bf16.mxu1 %v2430_v62  ;;  %v2487_v62 = vld [vmem:[%s3166_s0 + $0x2dc] ss:$52 sps:$4 sm:$0x1f]   ;;  %v2516_v36 = vld [vmem:[%s3166_s0 + $0x2a0] ss:$52 sps:$4 sm:$0xff]  }
  0x2a   :  { %2178 = vmatmul.mubr.msk.bf16.vlgmr.msra.gmra.mrb[16].mxu0 %vm169_vm2, %v2581_v16  ;;  %v2504_v26 = vld [vmem:[%s3166_s0 + $0x290] ss:$52 sps:$4 sm:$0xff]   ;;  %v2520_v38 = vld [vmem:[%s3166_s0 + $0x308] ss:$52 sps:$4 sm:$0x1f]  }
  0x2b   :  { %2179 = vmatmul.mubr.msk.bf16.vlgmr.msra.gmra.mrb[16].mxu1 %vm169_vm2, %v2581_v16  ;;  %826 = vmatpush1.bf16.msra.mxu0 %v2425_v4  ;;  %v1665_v4 = vand.u32 %v2487_v62, %v2560_v7  ;;  %v1698_v41 = vand.u32 %v2520_v38, %v2560_v7 }
  0x2c   :  { %867 = vmatpush1.bf16.msra.mxu1 %v2428_v5  ;;  %827 = vmatprep.subr.bf16.mxu0 %v685_v9  ;;  %v1199_v5 = vand.u32 %v2488_v2, %v2560_v7  ;;  %v2494_v9 = vld [vmem:[%s3166_s0 + $0x284] ss:$52 sps:$4 sm:$0xff]  }
  0x2d   :  { %868 = vmatprep.subr.bf16.mxu1 %v691_v10  ;;  %857 = vmatprep.mubr.bf16.mxu0 %v2522_v3  ;;  %v2497_v10 = vld [vmem:[%s3166_s0 + $0x2e4] ss:$52 sps:$4 sm:$0x1f]  }
  0x2e   :  { %898 = vmatprep.mubr.bf16.mxu1 %v2522_v3 }
  0x2f   :  { %828 = vmatpush1.bf16.msra.mxu0 %v682_v11  ;;  %v2500_v11 = vld [vmem:[%s3166_s0 + $0x2ec] ss:$52 sps:$4 sm:$0x1f]  }
  0x30   :  { %869 = vmatpush1.bf16.msra.mxu1 %v688_v12  ;;  %907 = vmatprep.subr.bf16.mxu0 %v2439_v13  ;;  %v2489_v12 = vld [vmem:[%s3166_s0 + $0x278] ss:$52 sps:$4 sm:$0xff]   ;;  %v2492_v13 = vld [vmem:[%s3166_s0 + $0x280] ss:$52 sps:$4 sm:$0xff]   ;;  %v1677_v18 = vand.u32 %v2500_v11, %v2560_v7 }
  0x31   :  { %2340 = vmatprep.subr.bf16.mxu1 %v2523_v47 }
  0x32   :  { %2180 = vmatmul.mubr.msk.bf16.vlgmr.msra.gmra.mrb[20].mxu0 %vm169_vm2, %v2581_v16 }
  0x33   :  { %2181 = vmatmul.mubr.msk.bf16.vlgmr.msra.gmra.mrb[20].mxu1 %vm169_vm2, %v2581_v16  ;;  %908 = vmatpush1.bf16.msra.mxu0 %v2437_v15  ;;  %v2498_v15 = vld [vmem:[%s3166_s0 + $0x2e8] ss:$52 sps:$4 sm:$0x1f]  }
  0x34   :  { %2341 = vmatpush3.bf16.msra.mxu1 %v2440_v17  ;;  %909 = vmatprep.subr.bf16.mxu0 %v697_v20  ;;  %v1671_v17 = vand.u32 %v2497_v10, %v2560_v7  ;;  %v1674_v20 = vand.u32 %v2498_v15, %v2560_v7 }
  0x35   :  { %2342 = vmatprep.subr.bf16.mxu1 %v2523_v47  ;;  %939 = vmatprep.mubr.bf16.mxu0 %v2522_v3 }
  0x36   :  { %2344 = vmatprep.mubr.msk.bf16.mxu1 %vm2524_vm3, %v2523_v47 }
  0x37   :  { %910 = vmatpush1.bf16.msra.mxu0 %v694_v22  ;;  %v2506_v22 = vld [vmem:[%s3166_s0 + $0x294] ss:$52 sps:$4 sm:$0xff]  }
  0x38   :  { %2343 = vmatpush3.bf16.msra.mxu1 %v700_v23  ;;  %1201 = vmatprep.subr.bf16.mxu0 %v2447_v21  ;;  %v2503_v21 = vld [vmem:[%s3166_s0 + $0x28c] ss:$52 sps:$4 sm:$0xff]   ;;  %v2509_v23 = vld [vmem:[%s3166_s0 + $0x2f4] ss:$52 sps:$4 sm:$0x1f]  }
  0x39   :  { %1242 = vmatprep.subr.bf16.mxu1 %v2450_v24  ;;  %v2512_v24 = vld [vmem:[%s3166_s0 + $0x2fc] ss:$52 sps:$4 sm:$0x1f]  }
  0x3a   :  { %2182 = vmatmul.mubr.msk.bf16.vlgmr.msra.gmra.mrb[24].mxu0 %vm169_vm2, %v2581_v16  ;;  %v1689_v30 = vand.u32 %v2512_v24, %v2560_v7 }
  0x3b   :  { %2345 = vmatmul.mubr.msk.bf16.vlgmr.msra.gmra.mrb[24].mxu1 %vm169_vm2, %v2581_v16  ;;  %1202 = vmatpush1.bf16.msra.mxu0 %v2445_v27  ;;  %v2507_v27 = vld [vmem:[%s3166_s0 + $0x2f0] ss:$52 sps:$4 sm:$0x1f]  }
  0x3c   :  { %1243 = vmatpush1.bf16.msra.mxu1 %v2448_v29  ;;  %1203 = vmatprep.subr.bf16.mxu0 %v1166_v31  ;;  %v1683_v29 = vand.u32 %v2509_v23, %v2560_v7  ;;  %v1680_v31 = vand.u32 %v2507_v27, %v2560_v7 }
  0x3d   :  { %1244 = vmatprep.subr.bf16.mxu1 %v1172_v32  ;;  %1233 = vmatprep.mubr.bf16.mxu0 %v2522_v3  ;;  %v1686_v32 = vand.u32 %v2510_v28, %v2560_v7 }
  0x3e   :  { %1274 = vmatprep.mubr.bf16.mxu1 %v2522_v3 }
  0x3f   :  { %1204 = vmatpush1.bf16.msra.mxu0 %v1163_v34  ;;  %v2519_v34 = vld [vmem:[%s3166_s0 + $0x304] ss:$52 sps:$4 sm:$0x1f]  }
  0x40   :  { %1245 = vmatpush1.bf16.msra.mxu1 %v1169_v35  ;;  %1283 = vmatprep.subr.bf16.mxu0 %v2459_v33  ;;  %v2515_v33 = vld [vmem:[%s3166_s0 + $0x29c] ss:$52 sps:$4 sm:$0xff]   ;;  %v2513_v35 = vld [vmem:[%s3166_s0 + $0x298] ss:$52 sps:$4 sm:$0xff]  }
  0x41   :  { %1324 = vmatprep.subr.bf16.mxu1 %v2462_v37  ;;  %v2517_v37 = vld [vmem:[%s3166_s0 + $0x300] ss:$52 sps:$4 sm:$0x1f]  }
  0x42   :  { %2238 = vmatmul.mubr.msk.bf16.vlgmr.msra.gmra.mrb[28].mxu0 %vm169_vm2, %v2581_v16 }
  0x43   :  { %2239 = vmatmul.mubr.msk.bf16.vlgmr.msra.gmra.mrb[28].mxu1 %vm169_vm2, %v2581_v16  ;;  %1284 = vmatpush1.bf16.msra.mxu0 %v2457_v39  ;;  %v1695_v39 = vand.u32 %v2519_v34, %v2560_v7 }
  0x44   :  { %1325 = vmatpush1.bf16.msra.mxu1 %v2460_v40  ;;  %1285 = vmatprep.subr.bf16.mxu0 %v1178_v43  ;;  %v1692_v40 = vand.u32 %v2517_v37, %v2560_v7 }
  0x45   :  { %1326 = vmatprep.subr.bf16.mxu1 %v1184_v44  ;;  %1315 = vmatprep.mubr.bf16.mxu0 %v2522_v3 }
  0x46   :  { %1356 = vmatprep.mubr.bf16.mxu1 %v2522_v3 }
  0x47   :  { %1286 = vmatpush1.bf16.msra.mxu0 %v1175_v49 }
  0x48   :  { %1327 = vmatpush1.bf16.msra.mxu1 %v1181_v50  ;;  %1365 = vmatprep.subr.bf16.mxu0 %v2471_v46 }
  0x49   :  { %1406 = vmatprep.subr.bf16.mxu1 %v2474_v48 }
  0x4a   :  { %2240 = vmatmul.mubr.msk.bf16.vlgmr.msra.gmra.mrb[32].mxu0 %vm169_vm2, %v2581_v16 }
  0x4b   :  { %2241 = vmatmul.mubr.msk.bf16.vlgmr.msra.gmra.mrb[32].mxu1 %vm169_vm2, %v2581_v16  ;;  %1366 = vmatpush1.bf16.msra.mxu0 %v2469_v54 }
  0x4c   :  { %1407 = vmatpush1.bf16.msra.mxu1 %v2472_v56  ;;  %1367 = vmatprep.subr.bf16.mxu0 %v1190_v57 }
  0x4d   :  { %1408 = vmatprep.subr.bf16.mxu1 %v1196_v58  ;;  %1397 = vmatprep.mubr.bf16.mxu0 %v2522_v3 }
  0x4e   :  { %1438 = vmatprep.mubr.bf16.mxu1 %v2522_v3 }
  0x4f   :  { %1368 = vmatpush1.bf16.msra.mxu0 %v1187_v59 }
  0x50   :  { %1409 = vmatpush1.bf16.msra.mxu1 %v1193_v60  ;;  %2348 = vmatprep.subr.bf16.mxu0 %v2523_v47 }
  0x51   :  { %1700 = vmatprep.subr.bf16.mxu1 %v2483_v61 }
  0x52   :  { %2242 = vmatmul.mubr.msk.bf16.vlgmr.msra.gmra.mrb[36].mxu0 %vm169_vm2, %v2581_v16 }
  0x53   :  { %2243 = vmatmul.mubr.msk.bf16.vlgmr.msra.gmra.mrb[36].mxu1 %vm169_vm2, %v2581_v16  ;;  %2349 = vmatpush3.bf16.msra.mxu0 %v2484_v0 }
  0x54   :  { %1701 = vmatpush1.bf16.msra.mxu1 %v2481_v63  ;;  %2350 = vmatprep.subr.bf16.mxu0 %v2523_v47 }
  0x55   :  { %1702 = vmatprep.subr.bf16.mxu1 %v1665_v4  ;;  %2352 = vmatprep.mubr.msk.bf16.mxu0 %vm2524_vm3, %v2523_v47 }
  0x56   :  { %1732 = vmatprep.mubr.bf16.mxu1 %v2522_v3 }
  0x57   :  { %2351 = vmatpush3.bf16.msra.mxu0 %v1199_v5 }
  0x58   :  { %1703 = vmatpush1.bf16.msra.mxu1 %v1662_v6  ;;  %1741 = vmatprep.subr.bf16.mxu0 %v2491_v8 }
  0x59   :  { %1782 = vmatprep.subr.bf16.mxu1 %v2494_v9 }
  0x5a   :  { %2353 = vmatmul.mubr.msk.bf16.vlgmr.msra.gmra.mrb[40].mxu0 %vm169_vm2, %v2581_v16 }
  0x5b   :  { %2299 = vmatmul.mubr.msk.bf16.vlgmr.msra.gmra.mrb[40].mxu1 %vm169_vm2, %v2581_v16  ;;  %1742 = vmatpush1.bf16.msra.mxu0 %v2489_v12 }
  0x5c   :  { %1783 = vmatpush1.bf16.msra.mxu1 %v2492_v13  ;;  %1743 = vmatprep.subr.bf16.mxu0 %v1671_v17 }
  0x5d   :  { %1784 = vmatprep.subr.bf16.mxu1 %v1677_v18  ;;  %1773 = vmatprep.mubr.bf16.mxu0 %v2522_v3 }
  0x5e   :  { %1814 = vmatprep.mubr.bf16.mxu1 %v2522_v3 }
  0x5f   :  { %1744 = vmatpush1.bf16.msra.mxu0 %v1668_v19 }
  0x60   :  { %1785 = vmatpush1.bf16.msra.mxu1 %v1674_v20  ;;  %1823 = vmatprep.subr.bf16.mxu0 %v2503_v21 }
  0x61   :  { %1864 = vmatprep.subr.bf16.mxu1 %v2506_v22 }
  0x62   :  { %2300 = vmatmul.mubr.msk.bf16.vlgmr.msra.gmra.mrb[44].mxu0 %vm169_vm2, %v2581_v16 }
  0x63   :  { %2301 = vmatmul.mubr.msk.bf16.vlgmr.msra.gmra.mrb[44].mxu1 %vm169_vm2, %v2581_v16  ;;  %1824 = vmatpush1.bf16.msra.mxu0 %v2501_v25 }
  0x64   :  { %1865 = vmatpush1.bf16.msra.mxu1 %v2504_v26  ;;  %1825 = vmatprep.subr.bf16.mxu0 %v1683_v29 }
  0x65   :  { %1866 = vmatprep.subr.bf16.mxu1 %v1689_v30  ;;  %1855 = vmatprep.mubr.bf16.mxu0 %v2522_v3 }
  0x66   :  { %1896 = vmatprep.mubr.bf16.mxu1 %v2522_v3 }
  0x67   :  { %1826 = vmatpush1.bf16.msra.mxu0 %v1680_v31 }
  0x68   :  { %1867 = vmatpush1.bf16.msra.mxu1 %v1686_v32  ;;  %1905 = vmatprep.subr.bf16.mxu0 %v2515_v33 }
  0x69   :  { %2356 = vmatprep.subr.bf16.mxu1 %v2523_v47 }
  0x6a   :  { %2302 = vmatmul.mubr.msk.bf16.vlgmr.msra.gmra.mrb[48].mxu0 %vm169_vm2, %v2581_v16 }
  0x6b   :  { %2303 = vmatmul.mubr.msk.bf16.vlgmr.msra.gmra.mrb[48].mxu1 %vm169_vm2, %v2581_v16  ;;  %1906 = vmatpush1.bf16.msra.mxu0 %v2513_v35 }
  0x6c   :  { %2357 = vmatpush3.bf16.msra.mxu1 %v2516_v36  ;;  %1907 = vmatprep.subr.bf16.mxu0 %v1695_v39 }
  0x6d   :  { %2358 = vmatprep.subr.bf16.mxu1 %v2523_v47  ;;  %1937 = vmatprep.mubr.bf16.mxu0 %v2522_v3 }
  0x6e   :  { %2360 = vmatprep.mubr.msk.bf16.mxu1 %vm2524_vm3, %v2523_v47 }
  0x6f   :  { %1908 = vmatpush1.bf16.msra.mxu0 %v1692_v40 }
  0x70   :  { %2359 = vmatpush3.bf16.msra.mxu1 %v1698_v41 }
  0x72   :  { %2304 = vmatmul.mubr.msk.bf16.vlgmr.msra.gmra.mrb[52].mxu0 %vm169_vm2, %v2581_v16 }
  0x73   :  { %2361 = vmatmul.mubr.msk.bf16.vlgmr.msra.gmra.mrb[52].mxu1 %vm169_vm2, %v2581_v16 }
  0xa0   :  { %v3020_v63 = vpop.permute.xlu0 %47 }
  0xdd   :  { %v250_v42 = vpop.f32.mrb[0].mxu0 }
  0xde   :  { %v291_v43 = vpop.f32.mrb[0].mxu1  ;;  %v252_v44 = vpop.f32.mrb[1].mxu0  ;;  %v251_v0 = vadd.f32 %v250_v42, %v3020_v63 }
  0xdf   :  { %v293_v7 = vpop.f32.mrb[1].mxu1  ;;  %v254_v45 = vpop.f32.mrb[2].mxu0  ;;  %v253_v1 = vadd.f32 %v252_v44, %v3020_v63  ;;  %v292_v22 = vadd.f32 %v291_v43, %v3020_v63 }
  0xe0   :  { %v295_v46 = vpop.f32.mrb[2].mxu1  ;;  %v255_v48 = vpop.f32.mrb[3].mxu0  ;;  %v502_v12 = vmax.f32 %v251_v0, 0.0  ;;  %v294_v23 = vadd.f32 %v293_v7, %v3020_v63 }
  0xe1   :  { %v296_v49 = vpop.f32.mrb[3].mxu1  ;;  %v503_v17 = vmax.f32 %v253_v1, 0.0  ;;  %v504_v36 = vmax.f32 %v292_v22, 0.0 }
  0xe2   :  { %v505_v41 = vmax.f32 %v294_v23, 0.0 }
  0xe5   :  { %v332_v3 = vpop.f32.mrb[4].mxu0 }
  0xe6   :  { %v373_v50 = vpop.f32.mrb[4].mxu1  ;;  %v334_v51 = vpop.f32.mrb[5].mxu0  ;;  %v333_v21 = vadd.f32 %v332_v3, %v3020_v63 }
  0xe7   :  { %v375_v47 = vpop.f32.mrb[5].mxu1  ;;  %v336_v52 = vpop.f32.mrb[6].mxu0  ;;  %v335_v24 = vadd.f32 %v334_v51, %v3020_v63  ;;  %v374_v49 = vadd.f32 %v373_v50, %v3020_v63 }
  0xe8   :  { %v377_v53 = vpop.f32.mrb[6].mxu1  ;;  %v337_v54 = vpop.f32.mrb[7].mxu0  ;;  %v506_v35 = vmax.f32 %v333_v21, 0.0  ;;  %v376_v51 = vadd.f32 %v375_v47, %v3020_v63 }
  0xe9   :  { %v378_v55 = vpop.f32.mrb[7].mxu1  ;;  %v507_v42 = vmax.f32 %v335_v24, 0.0 }
  0xed   :  { %v414_v56 = vpop.f32.mrb[8].mxu0 }
  0xee   :  { %v3016_v57 = vpop.f32.mrb[8].mxu1  ;;  %v416_v16 = vpop.f32.mrb[9].mxu0  ;;  %v415_v3 = vadd.f32 %v414_v56, %v3020_v63 }
  0xef   :  { %v3018_v58 = vpop.f32.mrb[9].mxu1  ;;  %v418_v59 = vpop.f32.mrb[10].mxu0  ;;  %v417_v52 = vadd.f32 %v416_v16, %v3020_v63 }
  0xf0   :  { %v459_v60 = vpop.f32.mrb[10].mxu1  ;;  %v419_v61 = vpop.f32.mrb[11].mxu0  ;;  %v510_v56 = vmax.f32 %v415_v3, 0.0  ;;  %v458_v21 = vadd.f32 %v3018_v58, %v3020_v63 }
  0xf1   :  { %v460_v62 = vpop.f32.mrb[11].mxu1 }
  0xf5   :  { %v3024_v2 = vpop.f32.mrb[12].mxu0 }
  0xf6   :  { %v736_v4 = vpop.f32.mrb[12].mxu1  ;;  %v2338_v6 = vpop.f32.mrb[13].mxu0 }
  0xf7   :  { %v737_v5 = vadd.f32 %v736_v4, %v3020_v63  ;;  %v738_v8 = vpop.f32.mrb[13].mxu1  ;;  %v499_v10 = vpop.f32.mrb[14].mxu0  ;;  %v508_v4 = vmax.f32 %v374_v49, 0.0 }
  0xf8   :  { %v739_v9 = vadd.f32 %v738_v8, %v3020_v63  ;;  %v740_v11 = vpop.f32.mrb[14].mxu1  ;;  %v2339_v14 = vpop.f32.mrb[15].mxu0  ;;  %v509_v8 = vmax.f32 %v376_v51, 0.0 }
  0xf9   :  { %v988_v13 = vmax.f32 %v737_v5, 0.0  ;;  %v741_v15 = vpop.f32.mrb[15].mxu1 }
  0xfa   :  { %v989_v18 = vmax.f32 %v739_v9, 0.0  ;;  %v511_v9 = vmax.f32 %v417_v52, 0.0 }
  0xfb   :  { %v3028_v19 = vadd.f32 %v988_v13, %v502_v12 }
  0xfc   :  { %v3030_v20 = vadd.f32 %v989_v18, %v503_v17  ;;  %v456_v17 = vadd.f32 %v3016_v57, %v3020_v63  ;;  %v497_v18 = vadd.f32 %v3024_v2, %v3020_v63 }
  0xfd   :  { %v777_v25 = vpop.f32.mrb[16].mxu0 }
  0xfe   :  { %v818_v26 = vpop.f32.mrb[16].mxu1  ;;  %v778_v27 = vadd.f32 %v777_v25, %v3020_v63  ;;  %v779_v29 = vpop.f32.mrb[17].mxu0  ;;  %v514_v57 = vmax.f32 %v497_v18, 0.0 }
  0xff   :  { %v819_v28 = vadd.f32 %v818_v26, %v3020_v63  ;;  %v820_v30 = vpop.f32.mrb[17].mxu1  ;;  %v780_v31 = vadd.f32 %v779_v29, %v3020_v63  ;;  %v781_v33 = vpop.f32.mrb[18].mxu0 }
 0x100   :  { %v821_v32 = vadd.f32 %v820_v30, %v3020_v63  ;;  %v822_v34 = vpop.f32.mrb[18].mxu1  ;;  %v990_v37 = vmax.f32 %v778_v27, 0.0  ;;  %v782_v39 = vpop.f32.mrb[19].mxu0 }
 0x101   :  { %v992_v38 = vmax.f32 %v819_v28, 0.0  ;;  %v823_v40 = vpop.f32.mrb[19].mxu1  ;;  %v991_v43 = vmax.f32 %v780_v31, 0.0  ;;  %v512_v31 = vmax.f32 %v456_v17, 0.0 }
 0x102   :  { %v993_v44 = vmax.f32 %v821_v32, 0.0  ;;  %v3040_v7 = vadd.f32 %v990_v37, %v504_v36 }
 0x103   :  { %v3042_v45 = vadd.f32 %v992_v38, %v506_v35  ;;  %v3044_v46 = vadd.f32 %v991_v43, %v505_v41  ;;  %v513_v35 = vmax.f32 %v458_v21, 0.0 }
 0x104   :  { %v3046_v48 = vadd.f32 %v993_v44, %v507_v42 }
 0x105   :  { %v859_v53 = vpop.f32.mrb[20].mxu0 }
 0x106   :  { %v900_v54 = vpop.f32.mrb[20].mxu1  ;;  %v860_v55 = vadd.f32 %v859_v53, %v3020_v63  ;;  %v861_v60 = vpop.f32.mrb[21].mxu0 }
 0x107   :  { %v901_v59 = vadd.f32 %v900_v54, %v3020_v63  ;;  %v902_v61 = vpop.f32.mrb[21].mxu1  ;;  %v862_v62 = vadd.f32 %v861_v60, %v3020_v63  ;;  %v863_v1 = vpop.f32.mrb[22].mxu0 }
 0x108   :  { %v903_v0 = vadd.f32 %v902_v61, %v3020_v63  ;;  %v904_v50 = vpop.f32.mrb[22].mxu1  ;;  %v994_v5 = vmax.f32 %v860_v55, 0.0  ;;  %v864_v6 = vpop.f32.mrb[23].mxu0 }
 0x109   :  { %v996_v47 = vmax.f32 %v901_v59, 0.0  ;;  %v905_v16 = vpop.f32.mrb[23].mxu1  ;;  %v995_v10 = vmax.f32 %v862_v62, 0.0 }
 0x10a   :  { %v997_v11 = vmax.f32 %v903_v0, 0.0  ;;  %v3056_v12 = vadd.f32 %v994_v5, %v508_v4 }
 0x10b   :  { %v3058_v13 = vadd.f32 %v996_v47, %v510_v56  ;;  %v3060_v14 = vadd.f32 %v995_v10, %v509_v8 }
 0x10c   :  { %v3062_v15 = vadd.f32 %v997_v11, %v511_v9 }
 0x10d   :  { %v941_v22 = vpop.f32.mrb[24].mxu0 }
 0x10e   :  { %v982_v23 = vpop.f32.mrb[24].mxu1  ;;  %v942_v24 = vadd.f32 %v941_v22, %v3020_v63  ;;  %v943_v26 = vpop.f32.mrb[25].mxu0 }
 0x10f   :  { %v983_v25 = vadd.f32 %v982_v23, %v3020_v63  ;;  %v2346_v27 = vpop.f32.mrb[25].mxu1  ;;  %v944_v28 = vadd.f32 %v943_v26, %v3020_v63  ;;  %v945_v29 = vpop.f32.mrb[26].mxu0 }
 0x110   :  { %v985_v30 = vpop.f32.mrb[26].mxu1  ;;  %v998_v32 = vmax.f32 %v942_v24, 0.0  ;;  %v946_v2 = vpop.f32.mrb[27].mxu0 }
 0x111   :  { %v1000_v33 = vmax.f32 %v983_v25, 0.0  ;;  %v2347_v34 = vpop.f32.mrb[27].mxu1  ;;  %v999_v58 = vmax.f32 %v944_v28, 0.0 }
 0x112   :  { %v1011_v36 = vadd.f32 %v998_v32, %v512_v31 }
 0x113   :  { %v3073_v37 = vadd.f32 %v1000_v33, %v514_v57  ;;  %v1012_v38 = vadd.f32 %v999_v58, %v513_v35 }
 0x115   :  { %v1235_v39 = vpop.f32.mrb[28].mxu0 }
 0x116   :  { %v1276_v40 = vpop.f32.mrb[28].mxu1  ;;  %v1236_v41 = vadd.f32 %v1235_v39, %v3020_v63  ;;  %v1237_v43 = vpop.f32.mrb[29].mxu0 }
 0x117   :  { %v1277_v42 = vadd.f32 %v1276_v40, %v3020_v63  ;;  %v1278_v44 = vpop.f32.mrb[29].mxu1  ;;  %v1238_v49 = vadd.f32 %v1237_v43, %v3020_v63  ;;  %v1239_v51 = vpop.f32.mrb[30].mxu0 }
 0x118   :  { %v1279_v3 = vadd.f32 %v1278_v44, %v3020_v63  ;;  %v1280_v52 = vpop.f32.mrb[30].mxu1  ;;  %v1487_v53 = vmax.f32 %v1236_v41, 0.0  ;;  %v1240_v55 = vpop.f32.mrb[31].mxu0 }
 0x119   :  { %v1489_v54 = vmax.f32 %v1277_v42, 0.0  ;;  %v1281_v59 = vpop.f32.mrb[31].mxu1  ;;  %v1488_v60 = vmax.f32 %v1238_v49, 0.0 }
 0x11a   :  { %v1490_v61 = vmax.f32 %v1279_v3, 0.0  ;;  %v1500_v62 = vadd.f32 %v1487_v53, %v3028_v19 }
 0x11b   :  { %v3081_v0 = vadd.f32 %v1489_v54, %v3040_v7  ;;  %v1501_v1 = vadd.f32 %v1488_v60, %v3030_v20 }
 0x11c   :  { %v3085_v50 = vadd.f32 %v1490_v61, %v3044_v46 }
 0x11d   :  { %v1317_v4 = vpop.f32.mrb[32].mxu0 }
 0x11e   :  { %v1358_v56 = vpop.f32.mrb[32].mxu1  ;;  %v1318_v5 = vadd.f32 %v1317_v4, %v3020_v63  ;;  %v1319_v6 = vpop.f32.mrb[33].mxu0 }
 0x11f   :  { %v1359_v47 = vadd.f32 %v1358_v56, %v3020_v63  ;;  %v1360_v16 = vpop.f32.mrb[33].mxu1  ;;  %v1320_v8 = vadd.f32 %v1319_v6, %v3020_v63  ;;  %v1321_v9 = vpop.f32.mrb[34].mxu0 }
 0x120   :  { %v1361_v19 = vadd.f32 %v1360_v16, %v3020_v63  ;;  %v1362_v7 = vpop.f32.mrb[34].mxu1  ;;  %v1491_v10 = vmax.f32 %v1318_v5, 0.0  ;;  %v1322_v20 = vpop.f32.mrb[35].mxu0 }
 0x121   :  { %v1493_v11 = vmax.f32 %v1359_v47, 0.0  ;;  %v1363_v17 = vpop.f32.mrb[35].mxu1  ;;  %v1492_v46 = vmax.f32 %v1320_v8, 0.0 }
 0x122   :  { %v1494_v18 = vmax.f32 %v1361_v19, 0.0  ;;  %v3092_v21 = vadd.f32 %v1491_v10, %v3042_v45 }
 0x123   :  { %v3095_v22 = vadd.f32 %v1493_v11, %v3056_v12  ;;  %v3098_v23 = vadd.f32 %v1492_v46, %v3046_v48 }
 0x124   :  { %v3101_v24 = vadd.f32 %v1494_v18, %v3060_v14 }
 0x125   :  { %v1399_v25 = vpop.f32.mrb[36].mxu0 }
 0x126   :  { %v1440_v26 = vpop.f32.mrb[36].mxu1  ;;  %v1400_v27 = vadd.f32 %v1399_v25, %v3020_v63  ;;  %v1401_v29 = vpop.f32.mrb[37].mxu0 }
 0x127   :  { %v1441_v28 = vadd.f32 %v1440_v26, %v3020_v63  ;;  %v1442_v30 = vpop.f32.mrb[37].mxu1  ;;  %v1402_v45 = vadd.f32 %v1401_v29, %v3020_v63  ;;  %v1403_v12 = vpop.f32.mrb[38].mxu0 }
 0x128   :  { %v1443_v31 = vadd.f32 %v1442_v30, %v3020_v63  ;;  %v1444_v57 = vpop.f32.mrb[38].mxu1  ;;  %v1495_v32 = vmax.f32 %v1400_v27, 0.0  ;;  %v1404_v33 = vpop.f32.mrb[39].mxu0 }
 0x129   :  { %v1497_v48 = vmax.f32 %v1441_v28, 0.0  ;;  %v1445_v2 = vpop.f32.mrb[39].mxu1  ;;  %v1496_v14 = vmax.f32 %v1402_v45, 0.0 }
 0x12a   :  { %v1498_v34 = vmax.f32 %v1443_v31, 0.0  ;;  %v3108_v35 = vadd.f32 %v1495_v32, %v3058_v13 }
 0x12b   :  { %v3110_v58 = vadd.f32 %v1497_v48, %v1011_v36  ;;  %v3113_v39 = vadd.f32 %v1496_v14, %v3062_v15 }
 0x12c   :  { %v3115_v40 = vadd.f32 %v1498_v34, %v1012_v38 }
 0x12d   :  { %v1481_v41 = vpop.f32.mrb[40].mxu0 }
 0x12e   :  { %v1734_v42 = vpop.f32.mrb[40].mxu1  ;;  %v1482_v43 = vadd.f32 %v1481_v41, %v3020_v63  ;;  %v2354_v49 = vpop.f32.mrb[41].mxu0 }
 0x12f   :  { %v1735_v44 = vadd.f32 %v1734_v42, %v3020_v63  ;;  %v1736_v3 = vpop.f32.mrb[41].mxu1  ;;  %v1484_v52 = vpop.f32.mrb[42].mxu0 }
 0x130   :  { %v1737_v51 = vadd.f32 %v1736_v3, %v3020_v63  ;;  %v1738_v13 = vpop.f32.mrb[42].mxu1  ;;  %v1499_v53 = vmax.f32 %v1482_v43, 0.0  ;;  %v2355_v54 = vpop.f32.mrb[43].mxu0 }
 0x131   :  { %v1986_v36 = vmax.f32 %v1735_v44, 0.0  ;;  %v1739_v55 = vpop.f32.mrb[43].mxu1 }
 0x132   :  { %v1987_v15 = vmax.f32 %v1737_v51, 0.0  ;;  %v3121_v38 = vadd.f32 %v1499_v53, %v3073_v37 }
 0x133   :  { %v1999_v59 = vadd.f32 %v1986_v36, %v1500_v62 }
 0x134   :  { %v2000_v60 = vadd.f32 %v1987_v15, %v1501_v1 }
 0x135   :  { %v2012_v61 = vmul.f32 0.25, %v1999_v59  ;;  %v1775_v56 = vpop.f32.mrb[44].mxu0 }
 0x136   :  { %v2013_v4 = vmul.f32 0.25, %v2000_v60  ;;  %v1816_v5 = vpop.f32.mrb[44].mxu1  ;;  %v1776_v47 = vadd.f32 %v1775_v56, %v3020_v63  ;;  %v1777_v16 = vpop.f32.mrb[45].mxu0 }
 0x137   :  { %v1817_v6 = vadd.f32 %v1816_v5, %v3020_v63  ;;  %v1818_v8 = vpop.f32.mrb[45].mxu1  ;;  %v1778_v9 = vadd.f32 %v1777_v16, %v3020_v63  ;;  %v1779_v10 = vpop.f32.mrb[46].mxu0 }
 0x138   :  { %v2313_v19 = vpack.c.bf16 %v2013_v4, %v2012_v61  ;;  %v1819_v7 = vadd.f32 %v1818_v8, %v3020_v63  ;;  %v1820_v37 = vpop.f32.mrb[46].mxu1  ;;  %v1988_v11 = vmax.f32 %v1776_v47, 0.0  ;;  %v1780_v1 = vpop.f32.mrb[47].mxu0 }
 0x139   :  { %v1990_v62 = vmax.f32 %v1817_v6, 0.0  ;;  %v1821_v20 = vpop.f32.mrb[47].mxu1  ;;  %v1989_v17 = vmax.f32 %v1778_v9, 0.0 }
 0x13a   :  { %2078 = vst [vmem:[%s3169_s3] sm:$0x77] %v2313_v19  ;;  %v1991_v46 = vmax.f32 %v1819_v7, 0.0  ;;  %v2001_v18 = vadd.f32 %v1988_v11, %v3081_v0 }
 0x13b   :  { %v2003_v25 = vadd.f32 %v1990_v62, %v3092_v21  ;;  %v2002_v26 = vadd.f32 %v1989_v17, %v3085_v50 }
 0x13c   :  { %v2004_v27 = vadd.f32 %v1991_v46, %v3098_v23  ;;  %v2014_v28 = vmul.f32 0.25, %v2001_v18 }
 0x13d   :  { %v2016_v29 = vmul.f32 0.25, %v2003_v25  ;;  %v2015_v30 = vmul.f32 0.25, %v2002_v26  ;;  %v1857_v31 = vpop.f32.mrb[48].mxu0 }
 0x13e   :  { %v2017_v45 = vmul.f32 0.25, %v2004_v27  ;;  %v1898_v12 = vpop.f32.mrb[48].mxu1  ;;  %v1858_v57 = vadd.f32 %v1857_v31, %v3020_v63  ;;  %v1859_v48 = vpop.f32.mrb[49].mxu0 }
 0x13f   :  { %v1899_v32 = vadd.f32 %v1898_v12, %v3020_v63  ;;  %v1900_v33 = vpop.f32.mrb[49].mxu1  ;;  %v2314_v2 = vpack.c.bf16 %v2015_v30, %v2014_v28  ;;  %v1860_v21 = vadd.f32 %v1859_v48, %v3020_v63  ;;  %v1861_v14 = vpop.f32.mrb[50].mxu0 }
 0x140   :  { %v2315_v0 = vpack.c.bf16 %v2017_v45, %v2016_v29  ;;  %v1901_v50 = vadd.f32 %v1900_v33, %v3020_v63  ;;  %v1902_v23 = vpop.f32.mrb[50].mxu1  ;;  %v1992_v34 = vmax.f32 %v1858_v57, 0.0  ;;  %v1862_v42 = vpop.f32.mrb[51].mxu0 }
 0x141   :  { %v1994_v41 = vmax.f32 %v1899_v32, 0.0  ;;  %v1903_v43 = vpop.f32.mrb[51].mxu1  ;;  %2079 = vst [vmem:[%s3169_s3 + $0x8] sm:$0x77] %v2314_v2  ;;  %v1993_v44 = vmax.f32 %v1860_v21, 0.0 }
 0x142   :  { %2080 = vst [vmem:[%s3169_s3 + $0x10] sm:$0x77] %v2315_v0  ;;  %v1995_v49 = vmax.f32 %v1901_v50, 0.0  ;;  %v2005_v3 = vadd.f32 %v1992_v34, %v3095_v22 }
 0x143   :  { %v2007_v51 = vadd.f32 %v1994_v41, %v3108_v35  ;;  %v2006_v52 = vadd.f32 %v1993_v44, %v3101_v24 }
 0x144   :  { %v2008_v13 = vadd.f32 %v1995_v49, %v3113_v39  ;;  %v2018_v53 = vmul.f32 0.25, %v2005_v3 }
 0x145   :  { %v2020_v36 = vmul.f32 0.25, %v2007_v51  ;;  %v2019_v54 = vmul.f32 0.25, %v2006_v52  ;;  %v1939_v15 = vpop.f32.mrb[52].mxu0 }
 0x146   :  { %v2021_v55 = vmul.f32 0.25, %v2008_v13  ;;  %v1980_v59 = vpop.f32.mrb[52].mxu1  ;;  %v1940_v60 = vadd.f32 %v1939_v15, %v3020_v63  ;;  %v1941_v4 = vpop.f32.mrb[53].mxu0 }
 0x147   :  { %v1981_v61 = vadd.f32 %v1980_v59, %v3020_v63  ;;  %v2362_v56 = vpop.f32.mrb[53].mxu1  ;;  %v2316_v5 = vpack.c.bf16 %v2019_v54, %v2018_v53  ;;  %v1942_v35 = vadd.f32 %v1941_v4, %v3020_v63  ;;  %v1943_v47 = vpop.f32.mrb[54].mxu0 }
 0x148   :  { %v2317_v22 = vpack.c.bf16 %v2021_v55, %v2020_v36  ;;  %v1983_v24 = vpop.f32.mrb[54].mxu1  ;;  %v1996_v6 = vmax.f32 %v1940_v60, 0.0  ;;  %v1944_v16 = vpop.f32.mrb[55].mxu0 }
 0x149   :  { %v1998_v39 = vmax.f32 %v1981_v61, 0.0  ;;  %v2363_v8 = vpop.f32.mrb[55].mxu1  ;;  %2081 = vst [vmem:[%s3169_s3 + $0x18] sm:$0x77] %v2316_v5  ;;  %v1997_v19 = vmax.f32 %v1942_v35, 0.0 }
 0x14a   :  { %2082 = vst [vmem:[%s3169_s3 + $0x20] sm:$0x77] %v2317_v22  ;;  %v2009_v9 = vadd.f32 %v1996_v6, %v3110_v58 }
 0x14b   :  { %v2011_v7 = vadd.f32 %v1998_v39, %v3121_v38  ;;  %v2010_v63 = vadd.f32 %v1997_v19, %v3115_v40 }
 0x14c   :  { %v2022_v10 = vmul.f32 0.25, %v2009_v9 }
 0x14d   :  { %v2024_v37 = vmul.f32 0.25, %v2011_v7  ;;  %v2023_v11 = vmul.f32 0.25, %v2010_v63 }
 0x14f   :  { %v2319_v62 = vpack.c.bf16 %v2024_v37, %v2024_v37  ;;  %v2318_v1 = vpack.c.bf16 %v2023_v11, %v2022_v10 }
 0x151   :  { %2085 = vst.msk [vmem:[%s3169_s3 + $0x30] sm:$0x7] %vm2084_vm4, %v2319_v62  ;;  %2083 = vst [vmem:[%s3169_s3 + $0x28] sm:$0x77] %v2318_v1 }

// kernel: lenet5_forward.3
= control target key start
LH: loop header
LB: loop body
LE: loop exit
PB: predicated region body
PF: predicated region fallthrough
CT: control target
= control target key end

     0   :  { %v3762_v1 = vmov 0   ;;  %vm667_vm0 = vcmask 179200   ;;  %vm818_vm1 = vcmask 1042432   ;;  %s4820_s0 = inlined_call_operand.vmem [shape: bf16[800,150], index: 0, kind: input, shape index: {}]   ;;  %s4821_s1 = inlined_call_operand.vmem [shape: bf16[150,16], index: 1, kind: input, shape index: {}]   ;;  %s4822_s2 = inlined_call_operand.vmem [shape: f32[1,16], index: 2, kind: input, shape index: {}]   ;;  %s4823_s3 = inlined_call_operand.vmem [shape: bf16[400,120], index: 3, kind: input, shape index: {}]   ;;  %s4824_s4 = inlined_call_operand.vmem [shape: f32[1,120], index: 4, kind: input, shape index: {}]   ;;  %s4825_s5 = inlined_call_operand.vmem [shape: bf16[120,84], index: 5, kind: input, shape index: {}]   ;;  %s4826_s6 = inlined_call_operand.vmem [shape: f32[1,84], index: 6, kind: input, shape index: {}]   ;;  %s4827_s7 = inlined_call_operand.vmem [shape: bf16[84,10], index: 7, kind: input, shape index: {}]   ;;  %s4828_s8 = inlined_call_operand.vmem [shape: f32[1,10], index: 8, kind: input, shape index: {}]   ;;  %s4829_s9 = inlined_call_operand.hbm [shape: f32[8,10], index: 9, kind: output, shape index: {}]  }
   0x1   :  { %v3539_v0 = vld [vmem:[%s4821_s1] sm:$0xff]   ;;  %822 = vmatprep.subr.bf16.mxu0 %v3762_v1  ;;  %3515 = vmatprep.subr.bf16.mxu1 %v3762_v1  ;;  %v3540_v2 = vld [vmem:[%s4821_s1 + $0x8] sm:$0xff]   ;;  %v3541_v3 = vld [vmem:[%s4821_s1 + $0x10] sm:$0xff]  }
   0x2   :  { %823 = vmatpush1.bf16.msra.mxu0 %v3539_v0  ;;  %3525 = vmatpush1.bf16.msra.mxu1 %v3539_v0  ;;  %v3542_v4 = vld [vmem:[%s4821_s1 + $0x18] sm:$0xff]   ;;  %v3551_v5 = vld [vmem:[%s4820_s0 + $0x4] ss:$8 sps:$4 sm:$0xff]   ;;  %v3545_v8 = vld [vmem:[%s4821_s1 + $0x30] sm:$0xff]  }
   0x3   :  { %824 = vmatprep.subr.bf16.mxu0 %v3762_v1  ;;  %3516 = vmatprep.subr.bf16.mxu1 %v3762_v1  ;;  %v3543_v6 = vld [vmem:[%s4821_s1 + $0x20] sm:$0xff]   ;;  %v3544_v7 = vld [vmem:[%s4821_s1 + $0x28] sm:$0xff]   ;;  %v3546_v9 = vld [vmem:[%s4821_s1 + $0x38] sm:$0xff]  }
   0x4   :  { %3144 = vmatprep.mubr.msk.bf16.mxu0 %vm667_vm0, %v3551_v5  ;;  %v3547_v10 = vld [vmem:[%s4821_s1 + $0x40] sm:$0xff]   ;;  %v3548_v11 = vld [vmem:[%s4821_s1 + $0x48] ss:$0 sps:$4 sm:$0x77]   ;;  %v3552_v14 = vld [vmem:[%s4820_s0 + $0x14] ss:$8 sps:$4 sm:$0xff]  }
   0x5   :  { %v820_v12 = vsel %vm818_vm1, %v3548_v11, 0  ;;  %v3549_v13 = vld [vmem:[%s4820_s0] ss:$8 sps:$4 sm:$0xff]   ;;  %v3554_v15 = vld [vmem:[%s4820_s0 + $0x10] ss:$8 sps:$4 sm:$0xff]  }
   0x6   :  { %825 = vmatpush1.bf16.msra.mxu0 %v3540_v2  ;;  %3526 = vmatpush1.bf16.msra.mxu1 %v3540_v2  ;;  %v3555_v16 = vld [vmem:[%s4820_s0 + $0x24] ss:$8 sps:$4 sm:$0xff]   ;;  %v3557_v17 = vld [vmem:[%s4820_s0 + $0x20] ss:$8 sps:$4 sm:$0xff]   ;;  %v3558_v18 = vld [vmem:[%s4820_s0 + $0x34] ss:$8 sps:$4 sm:$0xff]  }
   0x7   :  { %826 = vmatprep.subr.bf16.mxu0 %v3762_v1  ;;  %3517 = vmatprep.subr.bf16.mxu1 %v3762_v1  ;;  %v3560_v19 = vld [vmem:[%s4820_s0 + $0x30] ss:$8 sps:$4 sm:$0xff]   ;;  %v3561_v20 = vld [vmem:[%s4820_s0 + $0x44] ss:$8 sps:$4 sm:$0xff]   ;;  %v3563_v21 = vld [vmem:[%s4820_s0 + $0x40] ss:$8 sps:$4 sm:$0xff]  }
   0x8   :  { %v3564_v22 = vld [vmem:[%s4820_s0 + $0x54] ss:$8 sps:$4 sm:$0xff]   ;;  %v3566_v23 = vld [vmem:[%s4820_s0 + $0x50] ss:$8 sps:$4 sm:$0xff]   ;;  %v3567_v24 = vld [vmem:[%s4820_s0 + $0x64] ss:$8 sps:$4 sm:$0xff]  }
   0xa   :  { %827 = vmatpush1.bf16.msra.mxu0 %v3541_v3  ;;  %3527 = vmatpush1.bf16.msra.mxu1 %v3541_v3 }
   0xb   :  { %828 = vmatprep.subr.bf16.mxu0 %v3762_v1  ;;  %3518 = vmatprep.subr.bf16.mxu1 %v3762_v1 }
   0xe   :  { %829 = vmatpush1.bf16.msra.mxu0 %v3542_v4  ;;  %3528 = vmatpush1.bf16.msra.mxu1 %v3542_v4 }
   0xf   :  { %830 = vmatprep.subr.bf16.mxu0 %v3762_v1  ;;  %3519 = vmatprep.subr.bf16.mxu1 %v3762_v1 }
  0x12   :  { %831 = vmatpush1.bf16.msra.mxu0 %v3543_v6  ;;  %3529 = vmatpush1.bf16.msra.mxu1 %v3543_v6 }
  0x13   :  { %832 = vmatprep.subr.bf16.mxu0 %v3762_v1  ;;  %3520 = vmatprep.subr.bf16.mxu1 %v3762_v1 }
  0x16   :  { %833 = vmatpush1.bf16.msra.mxu0 %v3544_v7  ;;  %3530 = vmatpush1.bf16.msra.mxu1 %v3544_v7 }
  0x17   :  { %834 = vmatprep.subr.bf16.mxu0 %v3762_v1  ;;  %3521 = vmatprep.subr.bf16.mxu1 %v3762_v1 }
  0x1a   :  { %835 = vmatpush1.bf16.msra.mxu0 %v3545_v8  ;;  %3531 = vmatpush1.bf16.msra.mxu1 %v3545_v8 }
  0x1b   :  { %836 = vmatprep.subr.bf16.mxu0 %v3762_v1  ;;  %3522 = vmatprep.subr.bf16.mxu1 %v3762_v1 }
  0x1e   :  { %837 = vmatpush1.bf16.msra.mxu0 %v3546_v9  ;;  %3532 = vmatpush1.bf16.msra.mxu1 %v3546_v9 }
  0x1f   :  { %838 = vmatprep.subr.bf16.mxu0 %v3762_v1  ;;  %3523 = vmatprep.subr.bf16.mxu1 %v3762_v1 }
  0x22   :  { %839 = vmatpush1.bf16.msra.mxu0 %v3547_v10  ;;  %3533 = vmatpush1.bf16.msra.mxu1 %v3547_v10 }
  0x23   :  { %840 = vmatprep.subr.bf16.mxu0 %v3762_v1  ;;  %3524 = vmatprep.subr.bf16.mxu1 %v3762_v1 }
  0x26   :  { %841 = vmatpush1.bf16.msra.mxu0 %v820_v12  ;;  %3534 = vmatpush1.bf16.msra.mxu1 %v820_v12 }
  0x29   :  { %855 = vmatmul.mubr.bf16.vlgmr.msra.gmra.mrb[0].mxu0 %v3549_v13 }
  0x2a   :  { %3145 = vmatprep.mubr.msk.bf16.mxu0 %vm667_vm0, %v3552_v14 }
  0x31   :  { %863 = vmatmul.mubr.bf16.gmra.mrb[4].mxu0 %v3554_v15 }
  0x32   :  { %3146 = vmatprep.mubr.msk.bf16.mxu0 %vm667_vm0, %v3555_v16 }
  0x39   :  { %871 = vmatmul.mubr.bf16.gmra.mrb[8].mxu0 %v3557_v17 }
  0x3a   :  { %3147 = vmatprep.mubr.msk.bf16.mxu0 %vm667_vm0, %v3558_v18 }
  0x41   :  { %879 = vmatmul.mubr.bf16.gmra.mrb[12].mxu0 %v3560_v19 }
  0x42   :  { %3148 = vmatprep.mubr.msk.bf16.mxu0 %vm667_vm0, %v3561_v20 }
  0x49   :  { %887 = vmatmul.mubr.bf16.gmra.mrb[16].mxu0 %v3563_v21 }
  0x4a   :  { %3149 = vmatprep.mubr.msk.bf16.mxu0 %vm667_vm0, %v3564_v22 }
  0x51   :  { %895 = vmatmul.mubr.bf16.gmra.mrb[20].mxu0 %v3566_v23 }
  0x52   :  { %3150 = vmatprep.mubr.msk.bf16.mxu0 %vm667_vm0, %v3567_v24 }
  0x53   :  { %14 = vsyncpa [#allocation3], 0  ;;  %v3569_v25 = vld [vmem:[%s4820_s0 + $0x60] ss:$8 sps:$4 sm:$0xff]   ;;  %v3570_v26 = vld [vmem:[%s4820_s0 + $0x74] ss:$8 sps:$4 sm:$0xff]  }
  0x54   :  { %v3572_v27 = vld [vmem:[%s4820_s0 + $0x70] ss:$8 sps:$4 sm:$0xff]   ;;  %v3573_v28 = vld [vmem:[%s4820_s0 + $0x84] ss:$8 sps:$4 sm:$0xff]   ;;  %v3575_v29 = vld [vmem:[%s4820_s0 + $0x80] ss:$8 sps:$4 sm:$0xff]  }
  0x55   :  { %v3576_v30 = vld [vmem:[%s4820_s0 + $0x94] ss:$8 sps:$4 sm:$0xff]   ;;  %v3578_v31 = vld [vmem:[%s4820_s0 + $0x90] ss:$8 sps:$4 sm:$0xff]   ;;  %v3579_v32 = vld [vmem:[%s4820_s0 + $0xa4] ss:$8 sps:$4 sm:$0xff]  }
  0x56   :  { %v3581_v33 = vld [vmem:[%s4820_s0 + $0xa0] ss:$8 sps:$4 sm:$0xff]   ;;  %v3582_v34 = vld [vmem:[%s4820_s0 + $0xb4] ss:$8 sps:$4 sm:$0xff]   ;;  %v3584_v35 = vld [vmem:[%s4820_s0 + $0xb0] ss:$8 sps:$4 sm:$0xff]  }
  0x57   :  { %v3585_v36 = vld [vmem:[%s4820_s0 + $0xc4] ss:$8 sps:$4 sm:$0xff]   ;;  %v3587_v37 = vld [vmem:[%s4820_s0 + $0xc0] ss:$8 sps:$4 sm:$0xff]   ;;  %v3588_v38 = vld [vmem:[%s4820_s0 + $0xd4] ss:$8 sps:$4 sm:$0xff]  }
  0x58   :  { %v3638_v39 = vld [vmem:[%s4820_s0 + $0x294] ss:$8 sps:$4 sm:$0xff]   ;;  %v3636_v40 = vld [vmem:[%s4820_s0 + $0x290] ss:$8 sps:$4 sm:$0xff]   ;;  %v3591_v42 = vld [vmem:[%s4820_s0 + $0xe4] ss:$8 sps:$4 sm:$0xff]  }
  0x59   :  { %903 = vmatmul.mubr.bf16.gmra.mrb[24].mxu0 %v3569_v25  ;;  %3185 = vmatprep.mubr.msk.bf16.mxu1 %vm667_vm0, %v3638_v39  ;;  %v3590_v41 = vld [vmem:[%s4820_s0 + $0xd0] ss:$8 sps:$4 sm:$0xff]   ;;  %v3642_v43 = vld [vmem:[%s4820_s0 + $0x2a4] ss:$8 sps:$4 sm:$0xff]   ;;  %v3644_v44 = vld [vmem:[%s4820_s0 + $0x2a0] ss:$8 sps:$4 sm:$0xff]  }
  0x5a   :  { %3151 = vmatprep.mubr.msk.bf16.mxu0 %vm667_vm0, %v3570_v26  ;;  %1183 = vmatmul.mubr.bf16.vlgmr.msra.gmra.mrb[0].mxu1 %v3636_v40  ;;  %v3593_v45 = vld [vmem:[%s4820_s0 + $0xe0] ss:$8 sps:$4 sm:$0xff]   ;;  %v3594_v46 = vld [vmem:[%s4820_s0 + $0xf4] ss:$8 sps:$4 sm:$0xff]   ;;  %v3650_v48 = vld [vmem:[%s4820_s0 + $0x2b0] ss:$8 sps:$4 sm:$0xff]  }
  0x5b   :  { %3186 = vmatprep.mubr.msk.bf16.mxu1 %vm667_vm0, %v3642_v43  ;;  %v3648_v47 = vld [vmem:[%s4820_s0 + $0x2b4] ss:$8 sps:$4 sm:$0xff]   ;;  %v3596_v49 = vld [vmem:[%s4820_s0 + $0xf0] ss:$8 sps:$4 sm:$0xff]   ;;  %v3597_v50 = vld [vmem:[%s4820_s0 + $0x104] ss:$8 sps:$4 sm:$0xff]  }
  0x5c   :  { %v3654_v51 = vld [vmem:[%s4820_s0 + $0x2c4] ss:$8 sps:$4 sm:$0xff]   ;;  %v3656_v52 = vld [vmem:[%s4820_s0 + $0x2c0] ss:$8 sps:$4 sm:$0xff]   ;;  %v3600_v54 = vld [vmem:[%s4820_s0 + $0x114] ss:$8 sps:$4 sm:$0xff]  }
  0x5d   :  { %v3599_v53 = vld [vmem:[%s4820_s0 + $0x100] ss:$8 sps:$4 sm:$0xff]   ;;  %v3660_v55 = vld [vmem:[%s4820_s0 + $0x2d4] ss:$8 sps:$4 sm:$0xff]   ;;  %v3662_v56 = vld [vmem:[%s4820_s0 + $0x2d0] ss:$8 sps:$4 sm:$0xff]  }
  0x5e   :  { %v3602_v57 = vld [vmem:[%s4820_s0 + $0x110] ss:$8 sps:$4 sm:$0xff]   ;;  %v3603_v58 = vld [vmem:[%s4820_s0 + $0x124] ss:$8 sps:$4 sm:$0xff]   ;;  %v3668_v60 = vld [vmem:[%s4820_s0 + $0x2e0] ss:$8 sps:$4 sm:$0xff]  }
  0x5f   :  { %v3666_v59 = vld [vmem:[%s4820_s0 + $0x2e4] ss:$8 sps:$4 sm:$0xff]   ;;  %v3605_v61 = vld [vmem:[%s4820_s0 + $0x120] ss:$8 sps:$4 sm:$0xff]   ;;  %v3606_v62 = vld [vmem:[%s4820_s0 + $0x134] ss:$8 sps:$4 sm:$0xff]  }
  0x60   :  { %v3672_v63 = vld [vmem:[%s4820_s0 + $0x2f4] ss:$8 sps:$4 sm:$0xff]   ;;  %v3674_v0 = vld [vmem:[%s4820_s0 + $0x2f0] ss:$8 sps:$4 sm:$0xff]   ;;  %v3609_v2 = vld [vmem:[%s4820_s0 + $0x144] ss:$8 sps:$4 sm:$0xff]  }
  0x61   :  { %911 = vmatmul.mubr.bf16.gmra.mrb[28].mxu0 %v3572_v27  ;;  %v3608_v1 = vld [vmem:[%s4820_s0 + $0x130] ss:$8 sps:$4 sm:$0xff]   ;;  %v3678_v3 = vld [vmem:[%s4820_s0 + $0x304] ss:$8 sps:$4 sm:$0xff]   ;;  %v3680_v4 = vld [vmem:[%s4820_s0 + $0x300] ss:$8 sps:$4 sm:$0xff]  }
  0x62   :  { %3152 = vmatprep.mubr.msk.bf16.mxu0 %vm667_vm0, %v3573_v28  ;;  %1191 = vmatmul.mubr.bf16.gmra.mrb[4].mxu1 %v3644_v44  ;;  %v3611_v5 = vld [vmem:[%s4820_s0 + $0x140] ss:$8 sps:$4 sm:$0xff]   ;;  %v3612_v6 = vld [vmem:[%s4820_s0 + $0x154] ss:$8 sps:$4 sm:$0xff]   ;;  %v3686_v8 = vld [vmem:[%s4820_s0 + $0x310] ss:$8 sps:$4 sm:$0xff]  }
  0x63   :  { %3187 = vmatprep.mubr.msk.bf16.mxu1 %vm667_vm0, %v3648_v47  ;;  %v3684_v7 = vld [vmem:[%s4820_s0 + $0x314] ss:$8 sps:$4 sm:$0xff]   ;;  %v3614_v9 = vld [vmem:[%s4820_s0 + $0x150] ss:$8 sps:$4 sm:$0xff]   ;;  %v3615_v10 = vld [vmem:[%s4820_s0 + $0x164] ss:$8 sps:$4 sm:$0xff]  }
  0x64   :  { %v3617_v11 = vld [vmem:[%s4820_s0 + $0x160] ss:$8 sps:$4 sm:$0xff]   ;;  %v3618_v12 = vld [vmem:[%s4820_s0 + $0x174] ss:$8 sps:$4 sm:$0xff]   ;;  %v3620_v13 = vld [vmem:[%s4820_s0 + $0x170] ss:$8 sps:$4 sm:$0xff]  }
  0x65   :  { %v3621_v14 = vld [vmem:[%s4820_s0 + $0x184] ss:$8 sps:$4 sm:$0xff]   ;;  %v3623_v15 = vld [vmem:[%s4820_s0 + $0x180] ss:$8 sps:$4 sm:$0xff]   ;;  %v3624_v16 = vld [vmem:[%s4820_s0 + $0x194] ss:$8 sps:$4 sm:$0xff]  }
  0x66   :  { %v3626_v17 = vld [vmem:[%s4820_s0 + $0x190] ss:$8 sps:$4 sm:$0xff]   ;;  %v3627_v18 = vld [vmem:[%s4820_s0 + $0x1a4] ss:$8 sps:$4 sm:$0xff]   ;;  %v3629_v19 = vld [vmem:[%s4820_s0 + $0x1a0] ss:$8 sps:$4 sm:$0xff]  }
  0x67   :  { %v3630_v20 = vld [vmem:[%s4820_s0 + $0x1b4] ss:$8 sps:$4 sm:$0xff]   ;;  %v3632_v23 = vld [vmem:[%s4820_s0 + $0x1b0] ss:$8 sps:$4 sm:$0xff]   ;;  %v3633_v25 = vld [vmem:[%s4820_s0 + $0x1c4] ss:$8 sps:$4 sm:$0xff]  }
  0x68   :  { %v3651_v43 = vld [vmem:[%s4820_s0 + $0x1f4] ss:$8 sps:$4 sm:$0xff]   ;;  %v3653_v47 = vld [vmem:[%s4820_s0 + $0x1f0] ss:$8 sps:$4 sm:$0xff]   ;;  %vm3764_vm2 = vmmov 0   ;;  %vm1480_vm3 = vcmask 130048  }
  0x69   :  { %919 = vmatmul.mubr.bf16.gmra.mrb[32].mxu0 %v3575_v29  ;;  %v3635_v29 = vld [vmem:[%s4820_s0 + $0x1c0] ss:$8 sps:$4 sm:$0xff]   ;;  %vm2872_vm4 = vcmask 1043456   ;;  %vm2868_vm5 = vcmask 982016   ;;  %vm2973_vm6 = vcmask 1041408   ;;  %vm2969_vm7 = vcmask 687104  }
  0x6a   :  { %3153 = vmatprep.mubr.msk.bf16.mxu0 %vm667_vm0, %v3576_v30  ;;  %1199 = vmatmul.mubr.bf16.gmra.mrb[8].mxu1 %v3650_v48  ;;  %vm3017_vm8 = vcmask 80896  }
  0x6b   :  { %3188 = vmatprep.mubr.msk.bf16.mxu1 %vm667_vm0, %v3654_v51 }
  0x71   :  { %927 = vmatmul.mubr.bf16.gmra.mrb[36].mxu0 %v3578_v31  ;;  %v3639_v31 = vld [vmem:[%s4820_s0 + $0x1d4] ss:$8 sps:$4 sm:$0xff]  }
  0x72   :  { %3154 = vmatprep.mubr.msk.bf16.mxu0 %vm667_vm0, %v3579_v32  ;;  %1207 = vmatmul.mubr.bf16.gmra.mrb[12].mxu1 %v3656_v52 }
  0x73   :  { %3189 = vmatprep.mubr.msk.bf16.mxu1 %vm667_vm0, %v3660_v55  ;;  %v3663_v55 = vld [vmem:[%s4820_s0 + $0x214] ss:$8 sps:$4 sm:$0xff]  }
  0x79   :  { %935 = vmatmul.mubr.bf16.gmra.mrb[40].mxu0 %v3581_v33 }
  0x7a   :  { %3155 = vmatprep.mubr.msk.bf16.mxu0 %vm667_vm0, %v3582_v34  ;;  %1215 = vmatmul.mubr.bf16.gmra.mrb[16].mxu1 %v3662_v56 }
  0x7b   :  { %3190 = vmatprep.mubr.msk.bf16.mxu1 %vm667_vm0, %v3666_v59  ;;  %v3665_v59 = vld [vmem:[%s4820_s0 + $0x210] ss:$8 sps:$4 sm:$0xff]  }
  0x81   :  { %943 = vmatmul.mubr.bf16.gmra.mrb[44].mxu0 %v3584_v35  ;;  %v3641_v35 = vld [vmem:[%s4820_s0 + $0x1d0] ss:$8 sps:$4 sm:$0xff]  }
  0x82   :  { %3156 = vmatprep.mubr.msk.bf16.mxu0 %vm667_vm0, %v3585_v36  ;;  %1223 = vmatmul.mubr.bf16.gmra.mrb[20].mxu1 %v3668_v60 }
  0x83   :  { %3191 = vmatprep.mubr.msk.bf16.mxu1 %vm667_vm0, %v3672_v63 }
  0x89   :  { %951 = vmatmul.mubr.bf16.gmra.mrb[48].mxu0 %v3587_v37  ;;  %v3645_v37 = vld [vmem:[%s4820_s0 + $0x1e4] ss:$8 sps:$4 sm:$0xff]  }
  0x8a   :  { %3157 = vmatprep.mubr.msk.bf16.mxu0 %vm667_vm0, %v3588_v38  ;;  %1231 = vmatmul.mubr.bf16.gmra.mrb[24].mxu1 %v3674_v0 }
  0x8b   :  { %3192 = vmatprep.mubr.msk.bf16.mxu1 %vm667_vm0, %v3678_v3  ;;  %v3675_v3 = vld [vmem:[%s4820_s0 + $0x234] ss:$8 sps:$4 sm:$0xff]  }
  0x91   :  { %959 = vmatmul.mubr.bf16.gmra.mrb[52].mxu0 %v3590_v41  ;;  %v3647_v41 = vld [vmem:[%s4820_s0 + $0x1e0] ss:$8 sps:$4 sm:$0xff]  }
  0x92   :  { %3158 = vmatprep.mubr.msk.bf16.mxu0 %vm667_vm0, %v3591_v42  ;;  %1239 = vmatmul.mubr.bf16.gmra.mrb[28].mxu1 %v3680_v4 }
  0x93   :  { %3193 = vmatprep.mubr.msk.bf16.mxu1 %vm667_vm0, %v3684_v7  ;;  %v3677_v7 = vld [vmem:[%s4820_s0 + $0x230] ss:$8 sps:$4 sm:$0xff]  }
  0x99   :  { %967 = vmatmul.mubr.bf16.gmra.mrb[56].mxu0 %v3593_v45 }
  0x9a   :  { %3159 = vmatprep.mubr.msk.bf16.mxu0 %vm667_vm0, %v3594_v46  ;;  %1247 = vmatmul.mubr.bf16.gmra.mrb[32].mxu1 %v3686_v8 }
  0xa1   :  { %975 = vmatmul.mubr.bf16.gmra.mrb[60].mxu0 %v3596_v49  ;;  %v3657_v49 = vld [vmem:[%s4820_s0 + $0x204] ss:$8 sps:$4 sm:$0xff]  }
  0xa2   :  { %3160 = vmatprep.mubr.msk.bf16.mxu0 %vm667_vm0, %v3597_v50 }
  0xa9   :  { %983 = vmatmul.mubr.bf16.gmra.mrb[64].mxu0 %v3599_v53  ;;  %v3659_v53 = vld [vmem:[%s4820_s0 + $0x200] ss:$8 sps:$4 sm:$0xff]  }
  0xaa   :  { %3161 = vmatprep.mubr.msk.bf16.mxu0 %vm667_vm0, %v3600_v54 }
  0xb1   :  { %991 = vmatmul.mubr.bf16.gmra.mrb[68].mxu0 %v3602_v57 }
  0xb2   :  { %3162 = vmatprep.mubr.msk.bf16.mxu0 %vm667_vm0, %v3603_v58 }
  0xb9   :  { %999 = vmatmul.mubr.bf16.gmra.mrb[72].mxu0 %v3605_v61  ;;  %v3669_v61 = vld [vmem:[%s4820_s0 + $0x224] ss:$8 sps:$4 sm:$0xff]  }
  0xba   :  { %3163 = vmatprep.mubr.msk.bf16.mxu0 %vm667_vm0, %v3606_v62 }
  0xc1   :  { %1007 = vmatmul.mubr.bf16.gmra.mrb[76].mxu0 %v3608_v1  ;;  %v3671_v1 = vld [vmem:[%s4820_s0 + $0x220] ss:$8 sps:$4 sm:$0xff]  }
  0xc2   :  { %3164 = vmatprep.mubr.msk.bf16.mxu0 %vm667_vm0, %v3609_v2 }
  0xc9   :  { %1015 = vmatmul.mubr.bf16.gmra.mrb[80].mxu0 %v3611_v5 }
  0xca   :  { %3165 = vmatprep.mubr.msk.bf16.mxu0 %vm667_vm0, %v3612_v6 }
  0xd1   :  { %1023 = vmatmul.mubr.bf16.gmra.mrb[84].mxu0 %v3614_v9  ;;  %v3681_v9 = vld [vmem:[%s4820_s0 + $0x244] ss:$8 sps:$4 sm:$0xff]  }
  0xd2   :  { %3166 = vmatprep.mubr.msk.bf16.mxu0 %vm667_vm0, %v3615_v10 }
  0xd9   :  { %1031 = vmatmul.mubr.bf16.gmra.mrb[88].mxu0 %v3617_v11 }
  0xda   :  { %3167 = vmatprep.mubr.msk.bf16.mxu0 %vm667_vm0, %v3618_v12 }
  0xe1   :  { %1039 = vmatmul.mubr.bf16.gmra.mrb[92].mxu0 %v3620_v13  ;;  %v3683_v13 = vld [vmem:[%s4820_s0 + $0x240] ss:$8 sps:$4 sm:$0xff]  }
  0xe2   :  { %3168 = vmatprep.mubr.msk.bf16.mxu0 %vm667_vm0, %v3621_v14 }
  0xe9   :  { %1047 = vmatmul.mubr.bf16.gmra.mrb[96].mxu0 %v3623_v15  ;;  %v3687_v15 = vld [vmem:[%s4820_s0 + $0x254] ss:$8 sps:$4 sm:$0xff]  }
  0xea   :  { %3169 = vmatprep.mubr.msk.bf16.mxu0 %vm667_vm0, %v3624_v16 }
  0xf1   :  { %1055 = vmatmul.mubr.bf16.gmra.mrb[100].mxu0 %v3626_v17 }
  0xf2   :  { %3170 = vmatprep.mubr.msk.bf16.mxu0 %vm667_vm0, %v3627_v18 }
  0xf9   :  { %1063 = vmatmul.mubr.bf16.gmra.mrb[104].mxu0 %v3629_v19  ;;  %v3689_v19 = vld [vmem:[%s4820_s0 + $0x250] ss:$8 sps:$4 sm:$0xff]  }
  0xfa   :  { %3171 = vmatprep.mubr.msk.bf16.mxu0 %vm667_vm0, %v3630_v20 }
  0xfc   :  { %v4102_v21 = vpop.f32.mrb[0].mxu0 }
  0xfd   :  { %v858_v22 = vpop.f32.mrb[1].mxu0 }
  0xfe   :  { %v4107_v24 = vpop.f32.mrb[2].mxu0  ;;  %v3690_v22 = vld [vmem:[%s4820_s0 + $0x264] ss:$8 sps:$4 sm:$0xff]  }
  0xff   :  { %v861_v26 = vpop.f32.mrb[3].mxu0 }
 0x101   :  { %1071 = vmatmul.mubr.bf16.gmra.mrb[108].mxu0 %v3632_v23 }
 0x102   :  { %3172 = vmatprep.mubr.msk.bf16.mxu0 %vm667_vm0, %v3633_v25 }
 0x104   :  { %v4113_v27 = vpop.f32.mrb[4].mxu0 }
 0x105   :  { %v866_v28 = vpop.f32.mrb[5].mxu0 }
 0x106   :  { %v4118_v30 = vpop.f32.mrb[6].mxu0  ;;  %v3692_v28 = vld [vmem:[%s4820_s0 + $0x260] ss:$8 sps:$4 sm:$0xff]  }
 0x107   :  { %v869_v32 = vpop.f32.mrb[7].mxu0 }
 0x109   :  { %1079 = vmatmul.mubr.bf16.gmra.mrb[112].mxu0 %v3635_v29 }
 0x10a   :  { %3173 = vmatprep.mubr.msk.bf16.mxu0 %vm667_vm0, %v3639_v31  ;;  %v3693_v31 = vld [vmem:[%s4820_s0 + $0x274] ss:$8 sps:$4 sm:$0xff]  }
 0x10c   :  { %v4124_v33 = vpop.f32.mrb[8].mxu0 }
 0x10d   :  { %v874_v34 = vpop.f32.mrb[9].mxu0 }
 0x10e   :  { %v4129_v36 = vpop.f32.mrb[10].mxu0  ;;  %v4236_v34 = vld [vmem:[%s4822_s2] ss:$0 sm:$0xff] }
 0x10f   :  { %v877_v38 = vpop.f32.mrb[11].mxu0 }
 0x111   :  { %1087 = vmatmul.mubr.bf16.gmra.mrb[116].mxu0 %v3641_v35 }
 0x112   :  { %3174 = vmatprep.mubr.msk.bf16.mxu0 %vm667_vm0, %v3645_v37  ;;  %v857_v37 = vadd.f32 %v4236_v34, %v4102_v21  ;;  %v860_v21 = vadd.f32 %v4236_v34, %v4107_v24 }
 0x114   :  { %v4135_v39 = vpop.f32.mrb[12].mxu0 }
 0x115   :  { %v882_v40 = vpop.f32.mrb[13].mxu0 }
 0x116   :  { %v4140_v42 = vpop.f32.mrb[14].mxu0  ;;  %v3695_v40 = vld [vmem:[%s4820_s0 + $0x270] ss:$8 sps:$4 sm:$0xff]  }
 0x117   :  { %v885_v44 = vpop.f32.mrb[15].mxu0 }
 0x119   :  { %1095 = vmatmul.mubr.bf16.gmra.mrb[120].mxu0 %v3647_v41 }
 0x11a   :  { %3175 = vmatprep.mubr.msk.bf16.mxu0 %vm667_vm0, %v3651_v43  ;;  %v3696_v43 = vld [vmem:[%s4820_s0 + $0x284] ss:$8 sps:$4 sm:$0xff]  }
 0x11c   :  { %v4146_v45 = vpop.f32.mrb[16].mxu0 }
 0x11d   :  { %v890_v46 = vpop.f32.mrb[17].mxu0 }
 0x11e   :  { %v4151_v48 = vpop.f32.mrb[18].mxu0 }
 0x11f   :  { %v893_v50 = vpop.f32.mrb[19].mxu0 }
 0x121   :  { %1103 = vmatmul.mubr.bf16.gmra.mrb[124].mxu0 %v3653_v47 }
 0x122   :  { %3176 = vmatprep.mubr.msk.bf16.mxu0 %vm667_vm0, %v3657_v49  ;;  %v1255_v49 = vmax.f32 %v857_v37, 0.0 }
 0x124   :  { %v4157_v51 = vpop.f32.mrb[20].mxu0 }
 0x125   :  { %v898_v52 = vpop.f32.mrb[21].mxu0 }
 0x126   :  { %v4162_v54 = vpop.f32.mrb[22].mxu0 }
 0x127   :  { %v901_v56 = vpop.f32.mrb[23].mxu0 }
 0x128   :  { %v865_v56 = vadd.f32 %v4236_v34, %v4113_v27 }
 0x129   :  { %1111 = vmatmul.mubr.bf16.gmra.mrb[128].mxu0 %v3659_v53 }
 0x12a   :  { %3177 = vmatprep.mubr.msk.bf16.mxu0 %vm667_vm0, %v3663_v55 }
 0x12c   :  { %v4168_v57 = vpop.f32.mrb[24].mxu0 }
 0x12d   :  { %v906_v58 = vpop.f32.mrb[25].mxu0  ;;  %v4250_v47 = vpop.f32.mrb[0].mxu1 }
 0x12e   :  { %v4173_v60 = vpop.f32.mrb[26].mxu0  ;;  %v1186_v52 = vpop.f32.mrb[1].mxu1 }
 0x12f   :  { %v909_v62 = vpop.f32.mrb[27].mxu0 }
 0x131   :  { %1119 = vmatmul.mubr.bf16.gmra.mrb[132].mxu0 %v3665_v59 }
 0x132   :  { %3178 = vmatprep.mubr.msk.bf16.mxu0 %vm667_vm0, %v3669_v61  ;;  %v3698_v61 = vld [vmem:[%s4820_s0 + $0x280] ss:$8 sps:$4 sm:$0xff]  }
 0x134   :  { %v4179_v63 = vpop.f32.mrb[28].mxu0 }
 0x135   :  { %v914_v0 = vpop.f32.mrb[29].mxu0 }
 0x136   :  { %v4184_v2 = vpop.f32.mrb[30].mxu0  ;;  %v4263_v0 = vpop.f32.mrb[2].mxu1 }
 0x137   :  { %v917_v4 = vpop.f32.mrb[31].mxu0 }
 0x139   :  { %1127 = vmatmul.mubr.bf16.gmra.mrb[136].mxu0 %v3671_v1  ;;  %v1256_v1 = vmax.f32 %v860_v21, 0.0 }
 0x13a   :  { %3179 = vmatprep.mubr.msk.bf16.mxu0 %vm667_vm0, %v3675_v3 }
 0x13c   :  { %v4190_v5 = vpop.f32.mrb[32].mxu0 }
 0x13d   :  { %v922_v6 = vpop.f32.mrb[33].mxu0 }
 0x13e   :  { %v4195_v8 = vpop.f32.mrb[34].mxu0  ;;  %v1189_v6 = vpop.f32.mrb[3].mxu1 }
 0x13f   :  { %v925_v10 = vpop.f32.mrb[35].mxu0 }
 0x141   :  { %1135 = vmatmul.mubr.bf16.gmra.mrb[140].mxu0 %v3677_v7  ;;  %v4266_v7 = vpop.f32.mrb[4].mxu1 }
 0x142   :  { %3180 = vmatprep.mubr.msk.bf16.mxu0 %vm667_vm0, %v3681_v9  ;;  %v1257_v9 = vmax.f32 %v865_v56, 0.0 }
 0x144   :  { %v4201_v11 = vpop.f32.mrb[36].mxu0 }
 0x145   :  { %v930_v12 = vpop.f32.mrb[37].mxu0 }
 0x146   :  { %v4206_v14 = vpop.f32.mrb[38].mxu0  ;;  %v1194_v12 = vpop.f32.mrb[5].mxu1 }
 0x147   :  { %v933_v16 = vpop.f32.mrb[39].mxu0 }
 0x149   :  { %1143 = vmatmul.mubr.bf16.gmra.mrb[144].mxu0 %v3683_v13  ;;  %v868_v13 = vadd.f32 %v4236_v34, %v4118_v30 }
 0x14a   :  { %3181 = vmatprep.mubr.msk.bf16.mxu0 %vm667_vm0, %v3687_v15 }
 0x14c   :  { %v4212_v17 = vpop.f32.mrb[40].mxu0 }
 0x14d   :  { %v938_v18 = vpop.f32.mrb[41].mxu0 }
 0x14e   :  { %v4217_v20 = vpop.f32.mrb[42].mxu0  ;;  %v873_v18 = vadd.f32 %v4236_v34, %v4124_v33  ;;  %v876_v33 = vadd.f32 %v4236_v34, %v4129_v36 }
 0x14f   :  { %v941_v23 = vpop.f32.mrb[43].mxu0 }
 0x150   :  { %v1259_v30 = vmax.f32 %v873_v18, 0.0 }
 0x151   :  { %1151 = vmatmul.mubr.bf16.gmra.mrb[148].mxu0 %v3689_v19 }
 0x152   :  { %3182 = vmatprep.mubr.msk.bf16.mxu0 %vm667_vm0, %v3690_v22 }
 0x154   :  { %v4223_v25 = vpop.f32.mrb[44].mxu0 }
 0x155   :  { %v946_v26 = vpop.f32.mrb[45].mxu0 }
 0x156   :  { %v4228_v29 = vpop.f32.mrb[46].mxu0  ;;  %v4277_v26 = vpop.f32.mrb[6].mxu1 }
 0x157   :  { %v949_v32 = vpop.f32.mrb[47].mxu0 }
 0x159   :  { %1159 = vmatmul.mubr.bf16.gmra.mrb[152].mxu0 %v3692_v28  ;;  %v1258_v28 = vmax.f32 %v868_v13, 0.0  ;;  %v3763_v13 = vmov 0.0  }
 0x15a   :  { %3183 = vmatprep.mubr.msk.bf16.mxu0 %vm667_vm0, %v3693_v31  ;;  %3329 = vmatprep.subr.bf16.mxu1 %v3763_v13 }
 0x15b   :  { %3331 = vmatprep.mubr.msk.bf16.mxu1 %vm3764_vm2, %v3763_v13 }
 0x15c   :  { %v4239_v35 = vpop.f32.mrb[48].mxu0 }
 0x15d   :  { %v954_v38 = vpop.f32.mrb[49].mxu0 }
 0x15e   :  { %v955_v41 = vpop.f32.mrb[50].mxu0  ;;  %v1197_v38 = vpop.f32.mrb[7].mxu1 }
 0x15f   :  { %v956_v44 = vadd.f32 %v4236_v34, %v955_v41  ;;  %v957_v46 = vpop.f32.mrb[51].mxu0 }
 0x161   :  { %v1280_v50 = vmax.f32 %v956_v44, 0.0  ;;  %1167 = vmatmul.mubr.bf16.gmra.mrb[156].mxu0 %v3695_v40  ;;  %v4280_v40 = vpop.f32.mrb[8].mxu1 }
 0x162   :  { %3184 = vmatprep.mubr.msk.bf16.mxu0 %vm667_vm0, %v3696_v43  ;;  %v1202_v44 = vpop.f32.mrb[9].mxu1 }
 0x163   :  { %v4255_v53 = vadd.f32 %v1280_v50, %v1255_v49  ;;  %v881_v50 = vadd.f32 %v4236_v34, %v4135_v39  ;;  %v4291_v56 = vpop.f32.mrb[10].mxu1  ;;  %v884_v39 = vadd.f32 %v4236_v34, %v4140_v42 }
 0x164   :  { %v960_v55 = vpop.f32.mrb[52].mxu0 }
 0x165   :  { %v961_v58 = vadd.f32 %v4236_v34, %v960_v55  ;;  %v962_v59 = vpop.f32.mrb[53].mxu0  ;;  %v1261_v36 = vmax.f32 %v881_v50, 0.0  ;;  %v1262_v42 = vmax.f32 %v884_v39, 0.0 }
 0x166   :  { %v963_v62 = vpop.f32.mrb[54].mxu0 }
 0x167   :  { %v1281_v3 = vmax.f32 %v961_v58, 0.0  ;;  %v964_v24 = vadd.f32 %v4236_v34, %v963_v62  ;;  %v965_v4 = vpop.f32.mrb[55].mxu0  ;;  %v1260_v58 = vmax.f32 %v876_v33, 0.0  ;;  %v892_v33 = vadd.f32 %v4236_v34, %v4151_v48 }
 0x169   :  { %v4268_v27 = vadd.f32 %v1281_v3, %v1256_v1  ;;  %v1282_v10 = vmax.f32 %v964_v24, 0.0  ;;  %1175 = vmatmul.mubr.bf16.gmra.mrb[160].mxu0 %v3698_v61  ;;  %v1205_v1 = vpop.f32.mrb[11].mxu1 }
 0x16a   :  { %v4294_v3 = vpop.f32.mrb[12].mxu1 }
 0x16b   :  { %v4272_v15 = vadd.f32 %v1282_v10, %v1257_v9  ;;  %v1210_v6 = vpop.f32.mrb[13].mxu1  ;;  %v3699_v10 = vld [vmem:[%s4823_s3 + $0x8] sm:$0xff]  }
 0x16c   :  { %v968_v16 = vpop.f32.mrb[56].mxu0  ;;  %3330 = vmatpush3.bf16.msra.mxu1 %v3699_v10 }
 0x16d   :  { %v969_v19 = vadd.f32 %v4236_v34, %v968_v16  ;;  %v970_v22 = vpop.f32.mrb[57].mxu0  ;;  %v889_v16 = vadd.f32 %v4236_v34, %v4146_v45  ;;  %3335 = vmatprep.subr.bf16.mxu1 %v3763_v13 }
 0x16e   :  { %v971_v23 = vpop.f32.mrb[58].mxu0 }
 0x16f   :  { %v1283_v31 = vmax.f32 %v969_v19, 0.0  ;;  %v972_v32 = vadd.f32 %v4236_v34, %v971_v23  ;;  %v973_v37 = vpop.f32.mrb[59].mxu0  ;;  %v4309_v23 = vpop.f32.mrb[14].mxu1 }
 0x170   :  { %v1213_v37 = vpop.f32.mrb[15].mxu1 }
 0x171   :  { %v4282_v41 = vadd.f32 %v1283_v31, %v1258_v28  ;;  %v1284_v43 = vmax.f32 %v972_v32, 0.0  ;;  %v4313_v38 = vpop.f32.mrb[16].mxu1 }
 0x172   :  { %v1218_v44 = vpop.f32.mrb[17].mxu1 }
 0x173   :  { %v4286_v46 = vadd.f32 %v1284_v43, %v1259_v30  ;;  %v1263_v30 = vmax.f32 %v889_v16, 0.0 }
 0x174   :  { %v976_v49 = vpop.f32.mrb[60].mxu0 }
 0x175   :  { %v977_v52 = vadd.f32 %v4236_v34, %v976_v49  ;;  %v978_v21 = vpop.f32.mrb[61].mxu0 }
 0x176   :  { %v979_v55 = vpop.f32.mrb[62].mxu0 }
 0x177   :  { %v1285_v59 = vmax.f32 %v977_v52, 0.0  ;;  %v980_v61 = vadd.f32 %v4236_v34, %v979_v55  ;;  %v981_v62 = vpop.f32.mrb[63].mxu0  ;;  %v897_v52 = vadd.f32 %v4236_v34, %v4157_v51  ;;  %v900_v51 = vadd.f32 %v4236_v34, %v4162_v54 }
 0x179   :  { %v4296_v24 = vadd.f32 %v1285_v59, %v1260_v58  ;;  %v1286_v4 = vmax.f32 %v980_v61, 0.0  ;;  %v4324_v59 = vpop.f32.mrb[18].mxu1  ;;  %v1264_v61 = vmax.f32 %v892_v33, 0.0  ;;  %v1265_v48 = vmax.f32 %v897_v52, 0.0 }
 0x17b   :  { %v4300_v9 = vadd.f32 %v1286_v4, %v1261_v36  ;;  %v1221_v4 = vpop.f32.mrb[19].mxu1 }
 0x17c   :  { %v984_v12 = vpop.f32.mrb[64].mxu0  ;;  %v4327_v6 = vpop.f32.mrb[20].mxu1 }
 0x17d   :  { %v985_v18 = vadd.f32 %v4236_v34, %v984_v12  ;;  %v986_v19 = vpop.f32.mrb[65].mxu0  ;;  %v1226_v12 = vpop.f32.mrb[21].mxu1 }
 0x17e   :  { %v987_v22 = vpop.f32.mrb[66].mxu0  ;;  %v905_v19 = vadd.f32 %v4236_v34, %v4168_v57  ;;  %v908_v57 = vadd.f32 %v4236_v34, %v4173_v60 }
 0x17f   :  { %v1287_v28 = vmax.f32 %v985_v18, 0.0  ;;  %v988_v31 = vadd.f32 %v4236_v34, %v987_v22  ;;  %v989_v32 = vpop.f32.mrb[67].mxu0 }
 0x180   :  { %v1266_v32 = vmax.f32 %v900_v51, 0.0  ;;  %v1267_v54 = vmax.f32 %v905_v19, 0.0 }
 0x181   :  { %v4315_v43 = vadd.f32 %v1287_v28, %v1262_v42  ;;  %v1288_v45 = vmax.f32 %v988_v31, 0.0  ;;  %v4338_v31 = vpop.f32.mrb[22].mxu1 }
 0x182   :  { %v1229_v44 = vpop.f32.mrb[23].mxu1 }
 0x183   :  { %v4319_v49 = vadd.f32 %v1288_v45, %v1263_v30  ;;  %v4341_v33 = vpop.f32.mrb[24].mxu1 }
 0x184   :  { %v992_v50 = vpop.f32.mrb[68].mxu0 }
 0x185   :  { %v993_v21 = vadd.f32 %v4236_v34, %v992_v50  ;;  %v994_v55 = vpop.f32.mrb[69].mxu0 }
 0x186   :  { %v995_v58 = vpop.f32.mrb[70].mxu0 }
 0x187   :  { %v1289_v62 = vmax.f32 %v993_v21, 0.0  ;;  %v996_v1 = vadd.f32 %v4236_v34, %v995_v58  ;;  %v997_v36 = vpop.f32.mrb[71].mxu0  ;;  %v1234_v21 = vpop.f32.mrb[25].mxu1 }
 0x188   :  { %v4352_v4 = vpop.f32.mrb[26].mxu1 }
 0x189   :  { %v4329_v39 = vadd.f32 %v1289_v62, %v1264_v61  ;;  %v1290_v10 = vmax.f32 %v996_v1, 0.0  ;;  %v913_v61 = vadd.f32 %v4236_v34, %v4179_v63  ;;  %v916_v63 = vadd.f32 %v4236_v34, %v4184_v2 }
 0x18b   :  { %v4333_v16 = vadd.f32 %v1290_v10, %v1265_v48  ;;  %v1268_v48 = vmax.f32 %v908_v57, 0.0  ;;  %v1269_v60 = vmax.f32 %v913_v61, 0.0  ;;  %v1270_v21 = vmax.f32 %v916_v63, 0.0 }
 0x18c   :  { %v1000_v18 = vpop.f32.mrb[72].mxu0 }
 0x18d   :  { %v1001_v22 = vadd.f32 %v4236_v34, %v1000_v18  ;;  %v1002_v42 = vpop.f32.mrb[73].mxu0  ;;  %v1237_v18 = vpop.f32.mrb[27].mxu1 }
 0x18e   :  { %v1003_v28 = vpop.f32.mrb[74].mxu0  ;;  %v4355_v19 = vpop.f32.mrb[28].mxu1  ;;  %v929_v18 = vadd.f32 %v4236_v34, %v4201_v11 }
 0x18f   :  { %v1291_v37 = vmax.f32 %v1001_v22, 0.0  ;;  %v1004_v30 = vadd.f32 %v4236_v34, %v1003_v28  ;;  %v1005_v45 = vpop.f32.mrb[75].mxu0  ;;  %v1242_v28 = vpop.f32.mrb[29].mxu1 }
 0x191   :  { %v4343_v50 = vadd.f32 %v1291_v37, %v1266_v32  ;;  %v1292_v52 = vmax.f32 %v1004_v30, 0.0  ;;  %v921_v30 = vadd.f32 %v4236_v34, %v4190_v5  ;;  %v924_v5 = vadd.f32 %v4236_v34, %v4195_v8 }
 0x193   :  { %v4347_v55 = vadd.f32 %v1292_v52, %v1267_v54  ;;  %v4366_v52 = vpop.f32.mrb[30].mxu1  ;;  %v1271_v2 = vmax.f32 %v921_v30, 0.0 }
 0x194   :  { %v1008_v58 = vpop.f32.mrb[76].mxu0 }
 0x195   :  { %v1009_v62 = vadd.f32 %v4236_v34, %v1008_v58  ;;  %v1010_v1 = vpop.f32.mrb[77].mxu0 }
 0x196   :  { %v1011_v36 = vpop.f32.mrb[78].mxu0 }
 0x197   :  { %v1293_v10 = vmax.f32 %v1009_v62, 0.0  ;;  %v1012_v12 = vadd.f32 %v4236_v34, %v1011_v36  ;;  %v1013_v51 = vpop.f32.mrb[79].mxu0  ;;  %v1245_v62 = vpop.f32.mrb[31].mxu1 }
 0x198   :  { %v4369_v1 = vpop.f32.mrb[32].mxu1  ;;  %v937_v62 = vadd.f32 %v4236_v34, %v4212_v17  ;;  %v945_v17 = vadd.f32 %v4236_v34, %v4223_v25  ;;  %v948_v25 = vadd.f32 %v4236_v34, %v4228_v29 }
 0x199   :  { %v4357_v22 = vadd.f32 %v1293_v10, %v1268_v48  ;;  %v1294_v42 = vmax.f32 %v1012_v12, 0.0  ;;  %v1250_v10 = vpop.f32.mrb[33].mxu1 }
 0x19a   :  { %v4380_v63 = vpop.f32.mrb[34].mxu1 }
 0x19b   :  { %v4361_v32 = vadd.f32 %v1294_v42, %v1269_v60 }
 0x19c   :  { %v1016_v37 = vpop.f32.mrb[80].mxu0 }
 0x19d   :  { %v1017_v45 = vadd.f32 %v4236_v34, %v1016_v37  ;;  %v1018_v44 = vpop.f32.mrb[81].mxu0  ;;  %v1272_v37 = vmax.f32 %v924_v5, 0.0 }
 0x19e   :  { %v1019_v54 = vpop.f32.mrb[82].mxu0 }
 0x19f   :  { %v1295_v57 = vmax.f32 %v1017_v45, 0.0  ;;  %v1020_v58 = vadd.f32 %v4236_v34, %v1019_v54  ;;  %v1021_v61 = vpop.f32.mrb[83].mxu0  ;;  %v1253_v54 = vpop.f32.mrb[35].mxu1 }
 0x1a1   :  { %v4371_v36 = vadd.f32 %v1295_v57, %v1270_v21  ;;  %v1296_v48 = vmax.f32 %v1020_v58, 0.0  ;;  %v1273_v21 = vmax.f32 %v929_v18, 0.0  ;;  %v932_v58 = vadd.f32 %v4236_v34, %v4206_v14 }
 0x1a2   :  { %v940_v14 = vadd.f32 %v4236_v34, %v4217_v20  ;;  %v1277_v20 = vmax.f32 %v945_v17, 0.0 }
 0x1a3   :  { %v4375_v12 = vadd.f32 %v1296_v48, %v1271_v2  ;;  %v1274_v5 = vmax.f32 %v932_v58, 0.0 }
 0x1a4   :  { %v1024_v51 = vpop.f32.mrb[84].mxu0 }
 0x1a5   :  { %v1025_v60 = vadd.f32 %v4236_v34, %v1024_v51  ;;  %v1026_v42 = vpop.f32.mrb[85].mxu0 }
 0x1a6   :  { %v1027_v28 = vpop.f32.mrb[86].mxu0  ;;  %v1275_v42 = vmax.f32 %v937_v62, 0.0 }
 0x1a7   :  { %v1297_v30 = vmax.f32 %v1025_v60, 0.0  ;;  %v1028_v45 = vadd.f32 %v4236_v34, %v1027_v28  ;;  %v1029_v44 = vpop.f32.mrb[87].mxu0 }
 0x1a9   :  { %v4383_v8 = vadd.f32 %v1297_v30, %v1272_v37  ;;  %v1298_v57 = vmax.f32 %v1028_v45, 0.0 }
 0x1ab   :  { %v4387_v11 = vadd.f32 %v1298_v57, %v1273_v21  ;;  %v1276_v57 = vmax.f32 %v940_v14, 0.0 }
 0x1ac   :  { %v1032_v61 = vpop.f32.mrb[88].mxu0 }
 0x1ad   :  { %v1033_v2 = vadd.f32 %v4236_v34, %v1032_v61  ;;  %v1034_v48 = vpop.f32.mrb[89].mxu0 }
 0x1ae   :  { %v1035_v10 = vpop.f32.mrb[90].mxu0 }
 0x1af   :  { %v1299_v51 = vmax.f32 %v1033_v2, 0.0  ;;  %v1036_v18 = vadd.f32 %v4236_v34, %v1035_v10  ;;  %v1037_v60 = vpop.f32.mrb[91].mxu0 }
 0x1b1   :  { %v4393_v28 = vadd.f32 %v1299_v51, %v1274_v5  ;;  %v1300_v37 = vmax.f32 %v1036_v18, 0.0  ;;  %v953_v51 = vadd.f32 %v4236_v34, %v4239_v35 }
 0x1b3   :  { %v4397_v30 = vadd.f32 %v1300_v37, %v1275_v42  ;;  %v1278_v37 = vmax.f32 %v948_v25, 0.0 }
 0x1b4   :  { %v1040_v45 = vpop.f32.mrb[92].mxu0 }
 0x1b5   :  { %v1041_v44 = vadd.f32 %v4236_v34, %v1040_v45  ;;  %v1042_v54 = vpop.f32.mrb[93].mxu0 }
 0x1b6   :  { %v1043_v21 = vpop.f32.mrb[94].mxu0 }
 0x1b7   :  { %v1301_v58 = vmax.f32 %v1041_v44, 0.0  ;;  %v1044_v61 = vadd.f32 %v4236_v34, %v1043_v21  ;;  %v1045_v62 = vpop.f32.mrb[95].mxu0  ;;  %v1279_v44 = vmax.f32 %v953_v51, 0.0 }
 0x1b9   :  { %v4405_v2 = vadd.f32 %v1301_v58, %v1276_v57  ;;  %v1302_v48 = vmax.f32 %v1044_v61, 0.0 }
 0x1bb   :  { %v4409_v10 = vadd.f32 %v1302_v48, %v1277_v20 }
 0x1bc   :  { %v1048_v5 = vpop.f32.mrb[96].mxu0 }
 0x1bd   :  { %v1049_v18 = vadd.f32 %v4236_v34, %v1048_v5  ;;  %v1050_v60 = vpop.f32.mrb[97].mxu0 }
 0x1be   :  { %v1051_v42 = vpop.f32.mrb[98].mxu0 }
 0x1bf   :  { %v1303_v14 = vmax.f32 %v1049_v18, 0.0  ;;  %v1052_v45 = vadd.f32 %v4236_v34, %v1051_v42  ;;  %v1053_v17 = vpop.f32.mrb[99].mxu0 }
 0x1c1   :  { %v4415_v54 = vadd.f32 %v1303_v14, %v1278_v37  ;;  %v1304_v21 = vmax.f32 %v1052_v45, 0.0 }
 0x1c3   :  { %v4417_v29 = vadd.f32 %v1304_v21, %v1279_v44 }
 0x1c4   :  { %v1056_v57 = vpop.f32.mrb[100].mxu0 }
 0x1c5   :  { %v1057_v58 = vadd.f32 %v4236_v34, %v1056_v57  ;;  %v1058_v61 = vpop.f32.mrb[101].mxu0 }
 0x1c6   :  { %v1059_v35 = vpop.f32.mrb[102].mxu0 }
 0x1c7   :  { %v1305_v62 = vmax.f32 %v1057_v58, 0.0  ;;  %v1060_v20 = vadd.f32 %v4236_v34, %v1059_v35  ;;  %v1061_v48 = vpop.f32.mrb[103].mxu0 }
 0x1c9   :  { %v4422_v25 = vadd.f32 %v4255_v53, %v1305_v62  ;;  %v1306_v5 = vmax.f32 %v1060_v20, 0.0 }
 0x1cb   :  { %v4425_v51 = vadd.f32 %v4268_v27, %v1306_v5 }
 0x1cc   :  { %v1064_v18 = vpop.f32.mrb[104].mxu0 }
 0x1cd   :  { %v1065_v60 = vadd.f32 %v4236_v34, %v1064_v18  ;;  %v1066_v42 = vpop.f32.mrb[105].mxu0 }
 0x1ce   :  { %v1067_v37 = vpop.f32.mrb[106].mxu0  ;;  %v1185_v42 = vadd.f32 %v4236_v34, %v4250_v47 }
 0x1cf   :  { %v1307_v14 = vmax.f32 %v1065_v60, 0.0  ;;  %v1068_v45 = vadd.f32 %v4236_v34, %v1067_v37  ;;  %v1069_v17 = vpop.f32.mrb[107].mxu0 }
 0x1d1   :  { %v4430_v44 = vadd.f32 %v4272_v15, %v1307_v14  ;;  %v1308_v21 = vmax.f32 %v1068_v45, 0.0 }
 0x1d3   :  { %v4433_v53 = vadd.f32 %v4282_v41, %v1308_v21 }
 0x1d4   :  { %v1072_v57 = vpop.f32.mrb[108].mxu0 }
 0x1d5   :  { %v1073_v27 = vadd.f32 %v4236_v34, %v1072_v57  ;;  %v1074_v58 = vpop.f32.mrb[109].mxu0  ;;  %v1337_v57 = vmax.f32 %v1185_v42, 0.0 }
 0x1d6   :  { %v1075_v61 = vpop.f32.mrb[110].mxu0 }
 0x1d7   :  { %v1309_v35 = vmax.f32 %v1073_v27, 0.0  ;;  %v1076_v62 = vadd.f32 %v4236_v34, %v1075_v61  ;;  %v1077_v20 = vpop.f32.mrb[111].mxu0  ;;  %v1188_v27 = vadd.f32 %v4236_v34, %v4263_v0  ;;  %v1196_v0 = vadd.f32 %v4236_v34, %v4277_v26 }
 0x1d9   :  { %v4438_v48 = vadd.f32 %v4286_v46, %v1309_v35  ;;  %v1310_v5 = vmax.f32 %v1076_v62, 0.0  ;;  %v1193_v62 = vadd.f32 %v4236_v34, %v4266_v7 }
 0x1db   :  { %v4441_v15 = vadd.f32 %v4296_v24, %v1310_v5  ;;  %v1339_v42 = vmax.f32 %v1193_v62, 0.0 }
 0x1dc   :  { %v1080_v18 = vpop.f32.mrb[112].mxu0 }
 0x1dd   :  { %v1081_v41 = vadd.f32 %v4236_v34, %v1080_v18  ;;  %v1082_v60 = vpop.f32.mrb[113].mxu0  ;;  %v1338_v18 = vmax.f32 %v1188_v27, 0.0  ;;  %v1340_v27 = vmax.f32 %v1196_v0, 0.0  ;;  %v1209_v0 = vadd.f32 %v4236_v34, %v4294_v3 }
 0x1de   :  { %v1083_v37 = vpop.f32.mrb[114].mxu0 }
 0x1df   :  { %v1311_v14 = vmax.f32 %v1081_v41, 0.0  ;;  %v1084_v45 = vadd.f32 %v4236_v34, %v1083_v37  ;;  %v1085_v17 = vpop.f32.mrb[115].mxu0 }
 0x1e1   :  { %v4448_v21 = vadd.f32 %v4300_v9, %v1311_v14  ;;  %v1312_v46 = vmax.f32 %v1084_v45, 0.0 }
 0x1e3   :  { %v1387_v24 = vadd.f32 %v4315_v43, %v1312_v46 }
 0x1e4   :  { %v1088_v58 = vpop.f32.mrb[116].mxu0 }
 0x1e5   :  { %v4453_v61 = vadd.f32 %v1387_v24, %v1337_v57  ;;  %v1089_v47 = vadd.f32 %v4236_v34, %v1088_v58  ;;  %v1090_v35 = vpop.f32.mrb[117].mxu0  ;;  %v1201_v57 = vadd.f32 %v4236_v34, %v4280_v40 }
 0x1e6   :  { %v1091_v20 = vpop.f32.mrb[118].mxu0 }
 0x1e7   :  { %v1313_v5 = vmax.f32 %v1089_v47, 0.0  ;;  %v1092_v9 = vadd.f32 %v4236_v34, %v1091_v20  ;;  %v1093_v41 = vpop.f32.mrb[119].mxu0 }
 0x1e9   :  { %v1388_v43 = vadd.f32 %v4319_v49, %v1313_v5  ;;  %v1314_v60 = vmax.f32 %v1092_v9, 0.0  ;;  %v1341_v5 = vmax.f32 %v1201_v57, 0.0  ;;  %v1204_v9 = vadd.f32 %v4236_v34, %v4291_v56 }
 0x1eb   :  { %v1389_v37 = vadd.f32 %v4329_v39, %v1314_v60  ;;  %v1413_v14 = vadd.f32 %v1388_v43, %v1338_v18 }
 0x1ec   :  { %v1096_v45 = vpop.f32.mrb[120].mxu0 }
 0x1ed   :  { %v1414_v17 = vadd.f32 %v1389_v37, %v1339_v42  ;;  %v1097_v7 = vadd.f32 %v4236_v34, %v1096_v45  ;;  %v1098_v46 = vpop.f32.mrb[121].mxu0  ;;  %v1438_v58 = vmul.f32 0.25, %v1413_v14  ;;  %v1342_v14 = vmax.f32 %v1204_v9, 0.0 }
 0x1ee   :  { %v1099_v24 = vpop.f32.mrb[122].mxu0 }
 0x1ef   :  { %v1439_v49 = vmul.f32 0.25, %v1414_v17  ;;  %v1315_v47 = vmax.f32 %v1097_v7, 0.0  ;;  %v1100_v35 = vadd.f32 %v4236_v34, %v1099_v24  ;;  %v1101_v62 = vpop.f32.mrb[123].mxu0  ;;  %v1343_v24 = vmax.f32 %v1209_v0, 0.0 }
 0x1f1   :  { %v4467_v26 = vpack.c.bf16 %v1439_v49, %v1438_v58  ;;  %v1390_v39 = vadd.f32 %v4333_v16, %v1315_v47  ;;  %v1316_v20 = vmax.f32 %v1100_v35, 0.0 }
 0x1f3   :  { %v1391_v18 = vadd.f32 %v4343_v50, %v1316_v20  ;;  %v1415_v40 = vadd.f32 %v1390_v39, %v1340_v27  ;;  %v1212_v27 = vadd.f32 %v4236_v34, %v4309_v23  ;;  %v1217_v39 = vadd.f32 %v4236_v34, %v4313_v38 }
 0x1f4   :  { %v1104_v41 = vpop.f32.mrb[124].mxu0 }
 0x1f5   :  { %v1416_v43 = vadd.f32 %v1391_v18, %v1341_v5  ;;  %v1105_v60 = vadd.f32 %v4236_v34, %v1104_v41  ;;  %v1106_v42 = vpop.f32.mrb[125].mxu0  ;;  %v1440_v45 = vmul.f32 0.25, %v1415_v40  ;;  %v1344_v5 = vmax.f32 %v1212_v27, 0.0 }
 0x1f6   :  { %v1107_v37 = vpop.f32.mrb[126].mxu0  ;;  %v1220_v42 = vadd.f32 %v4236_v34, %v4324_v59 }
 0x1f7   :  { %v1441_v16 = vmul.f32 0.25, %v1416_v43  ;;  %v1317_v17 = vmax.f32 %v1105_v60, 0.0  ;;  %v1108_v7 = vadd.f32 %v4236_v34, %v1107_v37  ;;  %v1109_v46 = vpop.f32.mrb[127].mxu0  ;;  %v1345_v60 = vmax.f32 %v1217_v39, 0.0 }
 0x1f8   :  { %v1346_v46 = vmax.f32 %v1220_v42, 0.0  ;;  %v1236_v42 = vadd.f32 %v4236_v34, %v4352_v4 }
 0x1f9   :  { %v4477_v56 = vpack.c.bf16 %v1441_v16, %v1440_v45  ;;  %v1392_v50 = vadd.f32 %v4347_v55, %v1317_v17  ;;  %v1318_v57 = vmax.f32 %v1108_v7, 0.0  ;;  %v1225_v17 = vadd.f32 %v4236_v34, %v4327_v6 }
 0x1fb   :  { %v1393_v58 = vadd.f32 %v4357_v22, %v1318_v57  ;;  %v1417_v3 = vadd.f32 %v1392_v50, %v1342_v14 }
 0x1fc   :  { %v1112_v49 = vpop.f32.mrb[128].mxu0 }
 0x1fd   :  { %v1418_v47 = vadd.f32 %v1393_v58, %v1343_v24  ;;  %v1113_v35 = vadd.f32 %v4236_v34, %v1112_v49  ;;  %v1114_v62 = vpop.f32.mrb[129].mxu0  ;;  %v1442_v9 = vmul.f32 0.25, %v1417_v3  ;;  %v1347_v3 = vmax.f32 %v1225_v17, 0.0 }
 0x1fe   :  { %v1115_v20 = vpop.f32.mrb[130].mxu0  ;;  %v1228_v49 = vadd.f32 %v4236_v34, %v4338_v31 }
 0x1ff   :  { %v1443_v55 = vmul.f32 0.25, %v1418_v47  ;;  %v1319_v18 = vmax.f32 %v1113_v35, 0.0  ;;  %v1116_v40 = vadd.f32 %v4236_v34, %v1115_v20  ;;  %v1117_v41 = vpop.f32.mrb[131].mxu0 }
 0x201   :  { %v4487_v23 = vpack.c.bf16 %v1443_v55, %v1442_v9  ;;  %v1394_v22 = vadd.f32 %v4361_v32, %v1319_v18  ;;  %v1320_v43 = vmax.f32 %v1116_v40, 0.0  ;;  %v1348_v55 = vmax.f32 %v1228_v49, 0.0 }
 0x203   :  { %v1395_v0 = vadd.f32 %v4371_v36, %v1320_v43  ;;  %v1419_v38 = vadd.f32 %v1394_v22, %v1344_v5  ;;  %v1233_v5 = vadd.f32 %v4236_v34, %v4341_v33 }
 0x204   :  { %v1120_v37 = vpop.f32.mrb[132].mxu0 }
 0x205   :  { %v1420_v14 = vadd.f32 %v1395_v0, %v1345_v60  ;;  %v1121_v45 = vadd.f32 %v4236_v34, %v1120_v37  ;;  %v1122_v16 = vpop.f32.mrb[133].mxu0  ;;  %v1444_v50 = vmul.f32 0.25, %v1419_v38  ;;  %v1349_v60 = vmax.f32 %v1233_v5, 0.0 }
 0x206   :  { %v1123_v7 = vpop.f32.mrb[134].mxu0  ;;  %v1241_v16 = vadd.f32 %v4236_v34, %v4355_v19 }
 0x207   :  { %v1445_v32 = vmul.f32 0.25, %v1420_v14  ;;  %v1321_v57 = vmax.f32 %v1121_v45, 0.0  ;;  %v1124_v24 = vadd.f32 %v4236_v34, %v1123_v7  ;;  %v1125_v27 = vpop.f32.mrb[135].mxu0  ;;  %v1350_v7 = vmax.f32 %v1236_v42, 0.0 }
 0x208   :  { %v1351_v27 = vmax.f32 %v1241_v16, 0.0 }
 0x209   :  { %v4497_v59 = vpack.c.bf16 %v1445_v32, %v1444_v50  ;;  %v1396_v36 = vadd.f32 %v4375_v12, %v1321_v57  ;;  %v1322_v58 = vmax.f32 %v1124_v24, 0.0 }
 0x20b   :  { %v1397_v47 = vadd.f32 %v4383_v8, %v1322_v58  ;;  %v1421_v6 = vadd.f32 %v1396_v36, %v1346_v46  ;;  %v1244_v36 = vadd.f32 %v4236_v34, %v4366_v52 }
 0x20c   :  { %v1128_v35 = vpop.f32.mrb[136].mxu0 }
 0x20d   :  { %v1422_v62 = vadd.f32 %v1397_v47, %v1347_v3  ;;  %v1129_v39 = vadd.f32 %v4236_v34, %v1128_v35  ;;  %v1130_v20 = vpop.f32.mrb[137].mxu0  ;;  %v1446_v18 = vmul.f32 0.25, %v1421_v6  ;;  %v1249_v35 = vadd.f32 %v4236_v34, %v4369_v1 }
 0x20e   :  { %v1131_v9 = vpop.f32.mrb[138].mxu0 }
 0x20f   :  { %v1447_v12 = vmul.f32 0.25, %v1422_v62  ;;  %v1323_v40 = vmax.f32 %v1129_v39, 0.0  ;;  %v1132_v41 = vadd.f32 %v4236_v34, %v1131_v9  ;;  %v1133_v22 = vpop.f32.mrb[139].mxu0  ;;  %v1352_v39 = vmax.f32 %v1244_v36, 0.0 }
 0x211   :  { %v4507_v31 = vpack.c.bf16 %v1447_v12, %v1446_v18  ;;  %v1398_v8 = vadd.f32 %v4387_v11, %v1323_v40  ;;  %v1324_v43 = vmax.f32 %v1132_v41, 0.0  ;;  %v1353_v12 = vmax.f32 %v1249_v35, 0.0 }
 0x212   :  { %v1252_v40 = vadd.f32 %v4236_v34, %v4380_v63 }
 0x213   :  { %v1399_v0 = vadd.f32 %v4393_v28, %v1324_v43  ;;  %v1423_v33 = vadd.f32 %v1398_v8, %v1348_v55 }
 0x214   :  { %v1136_v38 = vpop.f32.mrb[140].mxu0 }
 0x215   :  { %v1424_v37 = vadd.f32 %v1399_v0, %v1349_v60  ;;  %v1137_v14 = vadd.f32 %v4236_v34, %v1136_v38  ;;  %v1138_v45 = vpop.f32.mrb[141].mxu0  ;;  %v1448_v46 = vmul.f32 0.25, %v1423_v33  ;;  %v1354_v0 = vmax.f32 %v1252_v40, 0.0 }
 0x216   :  { %v1139_v17 = vpop.f32.mrb[142].mxu0 }
 0x217   :  { %v1449_v11 = vmul.f32 0.25, %v1424_v37  ;;  %v1325_v50 = vmax.f32 %v1137_v14, 0.0  ;;  %v1140_v32 = vadd.f32 %v4236_v34, %v1139_v17  ;;  %v1141_v57 = vpop.f32.mrb[143].mxu0 }
 0x219   :  { %v4517_v4 = vpack.c.bf16 %v1449_v11, %v1448_v46  ;;  %v1400_v28 = vadd.f32 %v4397_v30, %v1325_v50  ;;  %v1326_v24 = vmax.f32 %v1140_v32, 0.0 }
 0x21b   :  { %v1401_v58 = vadd.f32 %v4405_v2, %v1326_v24  ;;  %v1425_v19 = vadd.f32 %v1400_v28, %v1350_v7 }
 0x21c   :  { %v1144_v3 = vpop.f32.mrb[144].mxu0 }
 0x21d   :  { %v1426_v49 = vadd.f32 %v1401_v58, %v1351_v27  ;;  %v1145_v47 = vadd.f32 %v4236_v34, %v1144_v3  ;;  %v1146_v6 = vpop.f32.mrb[145].mxu0  ;;  %v1450_v20 = vmul.f32 0.25, %v1425_v19 }
 0x21e   :  { %v1147_v62 = vpop.f32.mrb[146].mxu0  ;;  %v3700_v6 = vld [vmem:[%s4823_s3] sm:$0xff]  }
 0x21f   :  { %v1451_v30 = vmul.f32 0.25, %v1426_v49  ;;  %v1327_v5 = vmax.f32 %v1145_v47, 0.0  ;;  %v1148_v9 = vadd.f32 %v4236_v34, %v1147_v62  ;;  %v1149_v55 = vpop.f32.mrb[147].mxu0 }
 0x221   :  { %v4527_v52 = vpack.c.bf16 %v1451_v30, %v1450_v20  ;;  %v1402_v2 = vadd.f32 %v4409_v10, %v1327_v5  ;;  %v1328_v18 = vmax.f32 %v1148_v9, 0.0 }
 0x223   :  { %v1403_v41 = vadd.f32 %v4415_v54, %v1328_v18  ;;  %v1427_v1 = vadd.f32 %v1402_v2, %v1352_v39 }
 0x224   :  { %v1152_v22 = vpop.f32.mrb[148].mxu0 }
 0x225   :  { %v1428_v8 = vadd.f32 %v1403_v41, %v1353_v12  ;;  %v1153_v43 = vadd.f32 %v4236_v34, %v1152_v22  ;;  %v1154_v60 = vpop.f32.mrb[149].mxu0  ;;  %v1452_v33 = vmul.f32 0.25, %v1427_v1 }
 0x226   :  { %v1155_v42 = vpop.f32.mrb[150].mxu0 }
 0x227   :  { %v1453_v38 = vmul.f32 0.25, %v1428_v8  ;;  %v1329_v37 = vmax.f32 %v1153_v43, 0.0  ;;  %v1156_v10 = vadd.f32 %v4236_v34, %v1155_v42  ;;  %v1157_v14 = vpop.f32.mrb[151].mxu0 }
 0x229   :  { %v4535_v45 = vpack.c.bf16 %v1453_v38, %v1452_v33  ;;  %v1404_v63 = vadd.f32 %v4417_v29, %v1329_v37  ;;  %v1330_v16 = vmax.f32 %v1156_v10, 0.0  ;;  %v3704_v37 = vld [vmem:[%s4823_s3 + $0x28] sm:$0xff]   ;;  %v3705_v10 = vld [vmem:[%s4823_s3 + $0x30] sm:$0xff]  }
 0x22b   :  { %v1405_v54 = vadd.f32 %v4422_v25, %v1330_v16  ;;  %v4539_v17 = vadd.f32 %v1404_v63, %v1354_v0  ;;  %v1437_v0 = vmul.f32 0.25, %v4453_v61  ;;  %v3706_v63 = vld [vmem:[%s4823_s3 + $0x38] sm:$0xff]   ;;  %v3707_v16 = vld [vmem:[%s4823_s3 + $0x40] sm:$0xff]  }
 0x22c   :  { %v1160_v7 = vpop.f32.mrb[152].mxu0 }
 0x22d   :  { %v1161_v46 = vadd.f32 %v4236_v34, %v1160_v7  ;;  %v1162_v11 = vpop.f32.mrb[153].mxu0  ;;  %v1430_v36 = vmul.f32 0.25, %v1405_v54  ;;  %v3708_v7 = vld [vmem:[%s4823_s3 + $0x48] sm:$0xff]  }
 0x22e   :  { %v1163_v50 = vpop.f32.mrb[154].mxu0  ;;  %v1946_v11 = vrot.slane %v4467_v26, 4 }
 0x22f   :  { %v1331_v32 = vmax.f32 %v1161_v46, 0.0  ;;  %v1164_v57 = vadd.f32 %v4236_v34, %v1163_v50  ;;  %v1165_v28 = vpop.f32.mrb[155].mxu0  ;;  %v3709_v46 = vld [vmem:[%s4823_s3 + $0x50] sm:$0xff]   ;;  %v3710_v50 = vld [vmem:[%s4823_s3 + $0x58] sm:$0xff]  }
 0x230   :  { %v2158_v28 = vrot.slane %v4487_v23, 4 }
 0x231   :  { %v1406_v24 = vadd.f32 %v4425_v51, %v1331_v32  ;;  %v1332_v27 = vmax.f32 %v1164_v57, 0.0  ;;  %v2052_v32 = vrot.slane %v4477_v56, 4  ;;  %v3712_v57 = vld [vmem:[%s4823_s3 + $0x68] sm:$0xff]  }
 0x233   :  { %v1431_v58 = vmul.f32 0.25, %v1406_v24  ;;  %v1407_v29 = vadd.f32 %v4430_v44, %v1332_v27  ;;  %v3714_v24 = vld [vmem:[%s4823_s3 + $0x78] sm:$0xff]   ;;  %v2264_v27 = vrot.slane %v4497_v59, 4 }
 0x234   :  { %v1168_v19 = vpop.f32.mrb[156].mxu0 }
 0x235   :  { %v1455_v25 = vpack.c.bf16 %v1431_v58, %v1430_v36  ;;  %v1169_v3 = vadd.f32 %v4236_v34, %v1168_v19  ;;  %v1170_v49 = vpop.f32.mrb[157].mxu0  ;;  %v1432_v44 = vmul.f32 0.25, %v1407_v29  ;;  %v3716_v36 = vld [vmem:[%s4823_s3 + $0x88] sm:$0xff]   ;;  %v2370_v58 = vrot.slane %v4507_v31, 4  ;;  %v3718_v29 = vld [vmem:[%s4823_s3 + $0x98] sm:$0xff]  }
 0x236   :  { %v1171_v47 = vpop.f32.mrb[158].mxu0  ;;  %v2476_v19 = vrot.slane %v4517_v4, 4  ;;  %v3722_v49 = vld [vmem:[%s4823_s3 + $0xb8] sm:$0xff]  }
 0x237   :  { %v1473_v35 = vrot.slane %v1455_v25, 4  ;;  %v1333_v62 = vmax.f32 %v1169_v3, 0.0  ;;  %v1172_v51 = vadd.f32 %v4236_v34, %v1171_v47  ;;  %v1173_v39 = vpop.f32.mrb[159].mxu0  ;;  %v2582_v3 = vrot.slane %v4527_v52, 4 }
 0x238   :  { %v2688_v47 = vrot.slane %v4535_v45, 4 }
 0x239   :  { %v1408_v20 = vadd.f32 %v4433_v53, %v1333_v62  ;;  %v1334_v30 = vmax.f32 %v1172_v51, 0.0  ;;  %3332 = vmatmul.mubr.msk.bf16.vlgmr.msra.gmra.mrb[36].mxu1 %vm1480_vm3, %v1473_v35  ;;  %v3701_v53 = vld [vmem:[%s4823_s3 + $0x10] sm:$0xff]  }
 0x23a   :  { %3336 = vmatpush3.bf16.msra.mxu1 %v3700_v6  ;;  %3337 = vmatprep.mubr.msk.bf16.mxu1 %vm3764_vm2, %v3763_v13  ;;  %v1454_v6 = vmul.f32 0.25, %v4539_v17 }
 0x23b   :  { %v1433_v5 = vmul.f32 0.25, %v1408_v20  ;;  %v1409_v9 = vadd.f32 %v4438_v48, %v1334_v30  ;;  %3341 = vmatprep.subr.bf16.mxu1 %v3763_v13 }
 0x23c   :  { %v1176_v55 = vpop.f32.mrb[160].mxu0  ;;  %v1467_v35 = vpack.c.bf16 %v1454_v6, %v1454_v6 }
 0x23d   :  { %v1456_v2 = vpack.c.bf16 %v1433_v5, %v1432_v44  ;;  %v1177_v18 = vadd.f32 %v4236_v34, %v1176_v55  ;;  %v1178_v12 = vpop.f32.mrb[161].mxu0  ;;  %v1434_v48 = vmul.f32 0.25, %v1409_v9 }
 0x23e   :  { %v1179_v40 = vpop.f32.mrb[162].mxu0 }
 0x23f   :  { %v1335_v41 = vmax.f32 %v1177_v18, 0.0  ;;  %v1180_v1 = vadd.f32 %v4236_v34, %v1179_v40  ;;  %v1181_v22 = vpop.f32.mrb[163].mxu0  ;;  %v1628_v61 = vrot.slane %v1456_v2, 4 }
 0x241   :  { %v1410_v8 = vadd.f32 %v4441_v15, %v1335_v41  ;;  %v1336_v43 = vmax.f32 %v1180_v1, 0.0  ;;  %3338 = vmatmul.mubr.msk.bf16.vlgmr.msra.gmra.mrb[40].mxu1 %vm1480_vm3, %v1455_v25  ;;  %v3702_v15 = vld [vmem:[%s4823_s3 + $0x18] sm:$0xff]   ;;  %v3720_v25 = vld [vmem:[%s4823_s3 + $0xa8] sm:$0xff]  }
 0x242   :  { %3342 = vmatpush3.bf16.msra.mxu1 %v3701_v53  ;;  %3343 = vmatprep.mubr.msk.bf16.mxu1 %vm3764_vm2, %v3763_v13 }
 0x243   :  { %v1435_v60 = vmul.f32 0.25, %v1410_v8  ;;  %v1411_v42 = vadd.f32 %v4448_v21, %v1336_v43  ;;  %3347 = vmatprep.subr.bf16.mxu1 %v3763_v13  ;;  %v3703_v21 = vld [vmem:[%s4823_s3 + $0x20] sm:$0xff]  }
 0x245   :  { %v1457_v33 = vpack.c.bf16 %v1435_v60, %v1434_v48  ;;  %v1436_v34 = vmul.f32 0.25, %v1411_v42 }
 0x247   :  { %v1458_v38 = vpack.c.bf16 %v1437_v0, %v1436_v34  ;;  %v1734_v14 = vrot.slane %v1457_v33, 4 }
 0x249   :  { %3344 = vmatmul.mubr.msk.bf16.vlgmr.msra.gmra.mrb[44].mxu1 %vm1480_vm3, %v1456_v2  ;;  %v1840_v54 = vrot.slane %v1458_v38, 4 }
 0x24a   :  { %3348 = vmatpush3.bf16.msra.mxu1 %v3702_v15  ;;  %3349 = vmatprep.mubr.msk.bf16.mxu1 %vm3764_vm2, %v3763_v13 }
 0x24b   :  { %3353 = vmatprep.subr.bf16.mxu1 %v3763_v13 }
 0x251   :  { %3350 = vmatmul.mubr.msk.bf16.vlgmr.msra.gmra.mrb[48].mxu1 %vm1480_vm3, %v1628_v61  ;;  %v3725_v61 = vld [vmem:[%s4825_s5 + $0x8] sm:$0xff]  }
 0x252   :  { %3354 = vmatpush3.bf16.msra.mxu1 %v3703_v21  ;;  %3355 = vmatprep.mubr.msk.bf16.mxu1 %vm3764_vm2, %v3763_v13 }
 0x253   :  { %3359 = vmatprep.subr.bf16.mxu1 %v3763_v13 }
 0x259   :  { %3356 = vmatmul.mubr.msk.bf16.vlgmr.msra.gmra.mrb[52].mxu1 %vm1480_vm3, %v1457_v33  ;;  %v3724_v33 = vld [vmem:[%s4825_s5] sm:$0xff]  }
 0x25a   :  { %3360 = vmatpush3.bf16.msra.mxu1 %v3704_v37  ;;  %3361 = vmatprep.mubr.msk.bf16.mxu1 %vm3764_vm2, %v3763_v13 }
 0x25b   :  { %3365 = vmatprep.subr.bf16.mxu1 %v3763_v13 }
 0x261   :  { %3362 = vmatmul.mubr.msk.bf16.vlgmr.msra.gmra.mrb[56].mxu1 %vm1480_vm3, %v1734_v14 }
 0x262   :  { %3366 = vmatpush3.bf16.msra.mxu1 %v3705_v10  ;;  %3367 = vmatprep.mubr.msk.bf16.mxu1 %vm3764_vm2, %v3763_v13  ;;  %v3726_v10 = vld [vmem:[%s4825_s5 + $0x10] sm:$0xff]  }
 0x263   :  { %3371 = vmatprep.subr.bf16.mxu1 %v3763_v13 }
 0x269   :  { %3368 = vmatmul.mubr.msk.bf16.vlgmr.msra.gmra.mrb[60].mxu1 %vm1480_vm3, %v1458_v38 }
 0x26a   :  { %3372 = vmatpush3.bf16.msra.mxu1 %v3706_v63  ;;  %3373 = vmatprep.mubr.msk.bf16.mxu1 %vm3764_vm2, %v3763_v13 }
 0x26b   :  { %3377 = vmatprep.subr.bf16.mxu1 %v3763_v13 }
 0x271   :  { %3374 = vmatmul.mubr.msk.bf16.vlgmr.msra.gmra.mrb[64].mxu1 %vm1480_vm3, %v1840_v54 }
 0x272   :  { %3378 = vmatpush3.bf16.msra.mxu1 %v3707_v16  ;;  %3379 = vmatprep.mubr.msk.bf16.mxu1 %vm3764_vm2, %v3763_v13 }
 0x273   :  { %3383 = vmatprep.subr.bf16.mxu1 %v3763_v13 }
 0x279   :  { %3380 = vmatmul.mubr.msk.bf16.vlgmr.msra.gmra.mrb[68].mxu1 %vm1480_vm3, %v4467_v26  ;;  %v3711_v26 = vld [vmem:[%s4823_s3 + $0x60] sm:$0xff]  }
 0x27a   :  { %3384 = vmatpush3.bf16.msra.mxu1 %v3708_v7  ;;  %3385 = vmatprep.mubr.msk.bf16.mxu1 %vm3764_vm2, %v3763_v13  ;;  %v3727_v7 = vld [vmem:[%s4825_s5 + $0x18] sm:$0xff]  }
 0x27b   :  { %3389 = vmatprep.subr.bf16.mxu1 %v3763_v13 }
 0x281   :  { %3386 = vmatmul.mubr.msk.bf16.vlgmr.msra.gmra.mrb[72].mxu1 %vm1480_vm3, %v1946_v11  ;;  %v3728_v11 = vld [vmem:[%s4825_s5 + $0x20] sm:$0xff]  }
 0x282   :  { %3390 = vmatpush3.bf16.msra.mxu1 %v3709_v46  ;;  %3391 = vmatprep.mubr.msk.bf16.mxu1 %vm3764_vm2, %v3763_v13 }
 0x283   :  { %3395 = vmatprep.subr.bf16.mxu1 %v3763_v13 }
 0x289   :  { %3392 = vmatmul.mubr.msk.bf16.vlgmr.msra.gmra.mrb[76].mxu1 %vm1480_vm3, %v4477_v56  ;;  %v3713_v56 = vld [vmem:[%s4823_s3 + $0x70] sm:$0xff]  }
 0x28a   :  { %3396 = vmatpush3.bf16.msra.mxu1 %v3710_v50  ;;  %3397 = vmatprep.mubr.msk.bf16.mxu1 %vm3764_vm2, %v3763_v13 }
 0x28b   :  { %3401 = vmatprep.subr.bf16.mxu1 %v3763_v13 }
 0x291   :  { %3398 = vmatmul.mubr.msk.bf16.vlgmr.msra.gmra.mrb[80].mxu1 %vm1480_vm3, %v2052_v32 }
 0x292   :  { %3402 = vmatpush3.bf16.msra.mxu1 %v3711_v26  ;;  %3403 = vmatprep.mubr.msk.bf16.mxu1 %vm3764_vm2, %v3763_v13 }
 0x293   :  { %3407 = vmatprep.subr.bf16.mxu1 %v3763_v13 }
 0x299   :  { %3404 = vmatmul.mubr.msk.bf16.vlgmr.msra.gmra.mrb[84].mxu1 %vm1480_vm3, %v4487_v23  ;;  %v3715_v23 = vld [vmem:[%s4823_s3 + $0x80] sm:$0xff]  }
 0x29a   :  { %3408 = vmatpush3.bf16.msra.mxu1 %v3712_v57  ;;  %3409 = vmatprep.mubr.msk.bf16.mxu1 %vm3764_vm2, %v3763_v13 }
 0x29b   :  { %3413 = vmatprep.subr.bf16.mxu1 %v3763_v13 }
 0x2a1   :  { %3410 = vmatmul.mubr.msk.bf16.vlgmr.msra.gmra.mrb[88].mxu1 %vm1480_vm3, %v2158_v28 }
 0x2a2   :  { %3414 = vmatpush3.bf16.msra.mxu1 %v3713_v56  ;;  %3415 = vmatprep.mubr.msk.bf16.mxu1 %vm3764_vm2, %v3763_v13  ;;  %v3729_v56 = vld [vmem:[%s4825_s5 + $0x28] sm:$0xff]  }
 0x2a3   :  { %3419 = vmatprep.subr.bf16.mxu1 %v3763_v13 }
 0x2a9   :  { %3416 = vmatmul.mubr.msk.bf16.vlgmr.msra.gmra.mrb[92].mxu1 %vm1480_vm3, %v4497_v59  ;;  %v3717_v59 = vld [vmem:[%s4823_s3 + $0x90] sm:$0xff]  }
 0x2aa   :  { %3420 = vmatpush3.bf16.msra.mxu1 %v3714_v24  ;;  %3421 = vmatprep.mubr.msk.bf16.mxu1 %vm3764_vm2, %v3763_v13  ;;  %v3730_v24 = vld [vmem:[%s4825_s5 + $0x30] sm:$0xff]  }
 0x2ab   :  { %3425 = vmatprep.subr.bf16.mxu1 %v3763_v13 }
 0x2b1   :  { %3422 = vmatmul.mubr.msk.bf16.vlgmr.msra.gmra.mrb[96].mxu1 %vm1480_vm3, %v2264_v27 }
 0x2b2   :  { %3426 = vmatpush3.bf16.msra.mxu1 %v3715_v23  ;;  %3427 = vmatprep.mubr.msk.bf16.mxu1 %vm3764_vm2, %v3763_v13 }
 0x2b3   :  { %3431 = vmatprep.subr.bf16.mxu1 %v3763_v13 }
 0x2b9   :  { %3428 = vmatmul.mubr.msk.bf16.vlgmr.msra.gmra.mrb[100].mxu1 %vm1480_vm3, %v4507_v31  ;;  %v3719_v31 = vld [vmem:[%s4823_s3 + $0xa0] sm:$0xff]  }
 0x2ba   :  { %3432 = vmatpush3.bf16.msra.mxu1 %v3716_v36  ;;  %3433 = vmatprep.mubr.msk.bf16.mxu1 %vm3764_vm2, %v3763_v13 }
 0x2bb   :  { %3437 = vmatprep.subr.bf16.mxu1 %v3763_v13 }
 0x2c1   :  { %3434 = vmatmul.mubr.msk.bf16.vlgmr.msra.gmra.mrb[104].mxu1 %vm1480_vm3, %v2370_v58  ;;  %v3731_v58 = vld [vmem:[%s4825_s5 + $0x38] ss:$0 sps:$4 sm:$0xff]  }
 0x2c2   :  { %3438 = vmatpush3.bf16.msra.mxu1 %v3717_v59  ;;  %3439 = vmatprep.mubr.msk.bf16.mxu1 %vm3764_vm2, %v3763_v13 }
 0x2c3   :  { %3443 = vmatprep.subr.bf16.mxu1 %v3763_v13 }
 0x2c9   :  { %3440 = vmatmul.mubr.msk.bf16.vlgmr.msra.gmra.mrb[108].mxu1 %vm1480_vm3, %v4517_v4  ;;  %v3721_v4 = vld [vmem:[%s4823_s3 + $0xb0] sm:$0xff]  }
 0x2ca   :  { %3444 = vmatpush3.bf16.msra.mxu1 %v3718_v29  ;;  %3445 = vmatprep.mubr.msk.bf16.mxu1 %vm3764_vm2, %v3763_v13  ;;  %v2874_v29 = vsel %vm2872_vm4, %v3731_v58, 0 }
 0x2cb   :  { %3449 = vmatprep.subr.bf16.mxu1 %v3763_v13 }
 0x2d1   :  { %3446 = vmatmul.mubr.msk.bf16.vlgmr.msra.gmra.mrb[112].mxu1 %vm1480_vm3, %v2476_v19 }
 0x2d2   :  { %3450 = vmatpush3.bf16.msra.mxu1 %v3719_v31  ;;  %3451 = vmatprep.mubr.msk.bf16.mxu1 %vm3764_vm2, %v3763_v13 }
 0x2d3   :  { %3455 = vmatprep.subr.bf16.mxu1 %v3763_v13 }
 0x2d9   :  { %3452 = vmatmul.mubr.msk.bf16.vlgmr.msra.gmra.mrb[116].mxu1 %vm1480_vm3, %v4527_v52  ;;  %v3723_v52 = vld [vmem:[%s4823_s3 + $0xc0] sm:$0xff]  }
 0x2da   :  { %3456 = vmatpush3.bf16.msra.mxu1 %v3720_v25  ;;  %3457 = vmatprep.mubr.msk.bf16.mxu1 %vm3764_vm2, %v3763_v13 }
 0x2db   :  { %3461 = vmatprep.subr.bf16.mxu1 %v3763_v13 }
 0x2e1   :  { %3458 = vmatmul.mubr.msk.bf16.vlgmr.msra.gmra.mrb[120].mxu1 %vm1480_vm3, %v2582_v3 }
 0x2e2   :  { %3462 = vmatpush3.bf16.msra.mxu1 %v3721_v4  ;;  %3463 = vmatprep.mubr.msk.bf16.mxu1 %vm3764_vm2, %v3763_v13 }
 0x2e3   :  { %3467 = vmatprep.subr.bf16.mxu1 %v3763_v13 }
 0x2e9   :  { %3464 = vmatmul.mubr.msk.bf16.vlgmr.msra.gmra.mrb[124].mxu1 %vm1480_vm3, %v4535_v45 }
 0x2ea   :  { %3468 = vmatpush3.bf16.msra.mxu1 %v3722_v49  ;;  %3469 = vmatprep.mubr.msk.bf16.mxu1 %vm3764_vm2, %v3763_v13 }
 0x2eb   :  { %3473 = vmatprep.subr.bf16.mxu1 %v3763_v13 }
 0x2f1   :  { %3470 = vmatmul.mubr.msk.bf16.vlgmr.msra.gmra.mrb[128].mxu1 %vm1480_vm3, %v2688_v47 }
 0x2f2   :  { %3474 = vmatpush3.bf16.msra.mxu1 %v3723_v52  ;;  %3475 = vmatprep.mubr.msk.bf16.mxu1 %vm3764_vm2, %v3763_v13 }
 0x2f3   :  { %3479 = vmatprep.subr.bf16.mxu1 %v3763_v13 }
 0x2f9   :  { %3476 = vmatmul.mubr.msk.bf16.vlgmr.msra.gmra.mrb[132].mxu1 %vm1480_vm3, %v1467_v35 }
 0x2fa   :  { %3495 = vmatprep.mubr.msk.bf16.mxu1 %vm3764_vm2, %v3763_v13  ;;  %3480 = vmatpush3.bf16.msra.mxu1 %v3724_v33 }
 0x2fb   :  { %3481 = vmatprep.subr.bf16.mxu1 %v3763_v13 }
 0x2fe   :  { %3482 = vmatpush3.bf16.msra.mxu1 %v3725_v61 }
 0x2ff   :  { %3483 = vmatprep.subr.bf16.mxu1 %v3763_v13 }
 0x302   :  { %3484 = vmatpush3.bf16.msra.mxu1 %v3726_v10 }
 0x303   :  { %3485 = vmatprep.subr.bf16.mxu1 %v3763_v13 }
 0x306   :  { %3486 = vmatpush3.bf16.msra.mxu1 %v3727_v7 }
 0x307   :  { %3487 = vmatprep.subr.bf16.mxu1 %v3763_v13 }
 0x30a   :  { %3488 = vmatpush3.bf16.msra.mxu1 %v3728_v11 }
 0x30b   :  { %3489 = vmatprep.subr.bf16.mxu1 %v3763_v13 }
 0x30c   :  { %v1518_v62 = vpop.f32.mrb[36].mxu1 }
 0x30d   :  { %v3333_v51 = vpop.f32.mrb[37].mxu1 }
 0x30e   :  { %v1521_v39 = vpop.f32.mrb[38].mxu1  ;;  %3490 = vmatpush3.bf16.msra.mxu1 %v3729_v56 }
 0x30f   :  { %v3334_v45 = vpop.f32.mrb[39].mxu1  ;;  %3491 = vmatprep.subr.bf16.mxu1 %v3763_v13 }
 0x312   :  { %3492 = vmatpush3.bf16.msra.mxu1 %v3730_v24 }
 0x313   :  { %3493 = vmatprep.subr.bf16.mxu1 %v3763_v13 }
 0x314   :  { %v1567_v20 = vpop.f32.mrb[40].mxu1 }
 0x315   :  { %v1568_v30 = vadd.f32 %v1567_v20, %v1518_v62  ;;  %v3339_v44 = vpop.f32.mrb[41].mxu1 }
 0x316   :  { %v1570_v5 = vpop.f32.mrb[42].mxu1  ;;  %3494 = vmatpush3.bf16.msra.mxu1 %v2874_v29 }
 0x317   :  { %v3340_v9 = vpop.f32.mrb[43].mxu1  ;;  %3499 = vmatprep.subr.bf16.mxu1 %v3763_v13 }
 0x31c   :  { %v1618_v55 = vpop.f32.mrb[44].mxu1 }
 0x31d   :  { %v1624_v2 = vadd.f32 %v1618_v55, %v1568_v30  ;;  %v3345_v17 = vpop.f32.mrb[45].mxu1 }
 0x31e   :  { %v1621_v18 = vpop.f32.mrb[46].mxu1 }
 0x31f   :  { %v3346_v12 = vpop.f32.mrb[47].mxu1 }
 0x324   :  { %v1672_v40 = vpop.f32.mrb[48].mxu1 }
 0x325   :  { %v1678_v53 = vadd.f32 %v1672_v40, %v1624_v2  ;;  %v3351_v41 = vpop.f32.mrb[49].mxu1 }
 0x326   :  { %v1675_v1 = vpop.f32.mrb[50].mxu1 }
 0x327   :  { %v3352_v22 = vpop.f32.mrb[51].mxu1 }
 0x32c   :  { %v1724_v8 = vpop.f32.mrb[52].mxu1 }
 0x32d   :  { %v1730_v43 = vadd.f32 %v1724_v8, %v1678_v53  ;;  %v3357_v48 = vpop.f32.mrb[53].mxu1 }
 0x32e   :  { %v1727_v60 = vpop.f32.mrb[54].mxu1 }
 0x32f   :  { %v3358_v42 = vpop.f32.mrb[55].mxu1 }
 0x334   :  { %v1778_v0 = vpop.f32.mrb[56].mxu1 }
 0x335   :  { %v1784_v34 = vadd.f32 %v1778_v0, %v1730_v43  ;;  %v3363_v15 = vpop.f32.mrb[57].mxu1 }
 0x336   :  { %v1781_v38 = vpop.f32.mrb[58].mxu1 }
 0x337   :  { %v3364_v21 = vpop.f32.mrb[59].mxu1 }
 0x33c   :  { %v1830_v37 = vpop.f32.mrb[60].mxu1 }
 0x33d   :  { %v1836_v14 = vadd.f32 %v1830_v37, %v1784_v34  ;;  %v3369_v63 = vpop.f32.mrb[61].mxu1 }
 0x33e   :  { %v1833_v16 = vpop.f32.mrb[62].mxu1 }
 0x33f   :  { %v3370_v54 = vpop.f32.mrb[63].mxu1 }
 0x344   :  { %v1884_v46 = vpop.f32.mrb[64].mxu1 }
 0x345   :  { %v1890_v50 = vadd.f32 %v1884_v46, %v1836_v14  ;;  %v3375_v26 = vpop.f32.mrb[65].mxu1 }
 0x346   :  { %v1887_v32 = vpop.f32.mrb[66].mxu1 }
 0x347   :  { %v3376_v57 = vpop.f32.mrb[67].mxu1 }
 0x34c   :  { %v1936_v28 = vpop.f32.mrb[68].mxu1 }
 0x34d   :  { %v1942_v23 = vadd.f32 %v1936_v28, %v1890_v50  ;;  %v3381_v27 = vpop.f32.mrb[69].mxu1 }
 0x34e   :  { %v1939_v36 = vpop.f32.mrb[70].mxu1 }
 0x34f   :  { %v3382_v59 = vpop.f32.mrb[71].mxu1 }
 0x354   :  { %v1990_v31 = vpop.f32.mrb[72].mxu1 }
 0x355   :  { %v1996_v19 = vadd.f32 %v1990_v31, %v1942_v23  ;;  %v3387_v25 = vpop.f32.mrb[73].mxu1 }
 0x356   :  { %v1993_v4 = vpop.f32.mrb[74].mxu1 }
 0x357   :  { %v3388_v3 = vpop.f32.mrb[75].mxu1 }
 0x35c   :  { %v2042_v49 = vpop.f32.mrb[76].mxu1 }
 0x35d   :  { %v2048_v52 = vadd.f32 %v2042_v49, %v1996_v19  ;;  %v3393_v47 = vpop.f32.mrb[77].mxu1 }
 0x35e   :  { %v2045_v6 = vpop.f32.mrb[78].mxu1 }
 0x35f   :  { %v3394_v35 = vpop.f32.mrb[79].mxu1 }
 0x364   :  { %v2096_v62 = vpop.f32.mrb[80].mxu1 }
 0x365   :  { %v2102_v51 = vadd.f32 %v2096_v62, %v2048_v52  ;;  %v3399_v39 = vpop.f32.mrb[81].mxu1 }
 0x366   :  { %v2099_v45 = vpop.f32.mrb[82].mxu1 }
 0x367   :  { %v3400_v20 = vpop.f32.mrb[83].mxu1  ;;  %v3244_v45 = vld [vmem:[%s4824_s4] ss:$0 sm:$0xff] }
 0x36c   :  { %v2148_v30 = vpop.f32.mrb[84].mxu1 }
 0x36d   :  { %v2154_v44 = vadd.f32 %v2148_v30, %v2102_v51  ;;  %v3405_v5 = vpop.f32.mrb[85].mxu1 }
 0x36e   :  { %v2151_v9 = vpop.f32.mrb[86].mxu1 }
 0x36f   :  { %v3406_v55 = vpop.f32.mrb[87].mxu1 }
 0x374   :  { %v2202_v2 = vpop.f32.mrb[88].mxu1 }
 0x375   :  { %v2208_v17 = vadd.f32 %v2202_v2, %v2154_v44  ;;  %v3411_v18 = vpop.f32.mrb[89].mxu1  ;;  %v3732_v2 = vld [vmem:[%s4827_s7] sm:$0xff]  }
 0x376   :  { %v2205_v12 = vpop.f32.mrb[90].mxu1  ;;  %v3733_v18 = vld [vmem:[%s4827_s7 + $0x8] sm:$0xff]  }
 0x377   :  { %v3412_v40 = vpop.f32.mrb[91].mxu1  ;;  %v3734_v12 = vld [vmem:[%s4827_s7 + $0x10] sm:$0xff]  }
 0x378   :  { %v3735_v40 = vld [vmem:[%s4827_s7 + $0x18] sm:$0xff]  }
 0x37c   :  { %v2254_v53 = vpop.f32.mrb[92].mxu1 }
 0x37d   :  { %v2260_v41 = vadd.f32 %v2254_v53, %v2208_v17  ;;  %v3417_v1 = vpop.f32.mrb[93].mxu1  ;;  %v3736_v53 = vld [vmem:[%s4827_s7 + $0x20] sm:$0xff]  }
 0x37e   :  { %v2257_v22 = vpop.f32.mrb[94].mxu1 }
 0x37f   :  { %v3418_v8 = vpop.f32.mrb[95].mxu1  ;;  %v3245_v22 = vld [vmem:[%s4826_s6] ss:$0 sm:$0xff] }
 0x384   :  { %v2308_v43 = vpop.f32.mrb[96].mxu1 }
 0x385   :  { %v2314_v48 = vadd.f32 %v2308_v43, %v2260_v41  ;;  %v3423_v60 = vpop.f32.mrb[97].mxu1  ;;  %v3737_v41 = vld [vmem:[%s4827_s7 + $0x28] ss:$0 sps:$4 sm:$0x33]   ;;  %s3765_s7 = smov [#allocation2]  }
 0x386   :  { %v2311_v42 = vpop.f32.mrb[98].mxu1  ;;  %v2975_v1 = vsel %vm2973_vm6, %v3737_v41, 0  ;;  %s3025_s17 = sshll.u32 %s3765_s7, 4  ;;  %s3026_s17 = int_to_ptr.vmem [resolvable:$true] %s3025_s17 }
 0x387   :  { %v3424_v0 = vpop.f32.mrb[99].mxu1  ;;  %s3738_s6 = scalar_lea.vmem %s3026_s17, 128  ;;  %p3743_p1 = scmp.lt.s32.totalorder %s3026_s17, %s3026_s17 }
 0x388   :  { %p3739_p0 = scmp.ne.s32.totalorder %s3026_s17, %s3738_s6  ;;  %p3744_p2 = scmp.lt.s32.totalorder %s3738_s6, %s3738_s6 }
 0x38a   :  { %p3745_p3 = por %p3744_p2, %p3743_p1 }
 0x38c   :  { %v2360_v33 = vpop.f32.mrb[100].mxu1  ;;  %p3746_p4 = pnand %p3745_p3, %p3739_p0 }
 0x38d   :  { %v2366_v34 = vadd.f32 %v2360_v33, %v2314_v48  ;;  %v3429_v15 = vpop.f32.mrb[101].mxu1 }
 0x38e   :  { %v2363_v38 = vpop.f32.mrb[102].mxu1 }
 0x38f   :  { %v3430_v21 = vpop.f32.mrb[103].mxu1 }
 0x394   :  { %v2414_v61 = vpop.f32.mrb[104].mxu1 }
 0x395   :  { %v2420_v37 = vadd.f32 %v2414_v61, %v2366_v34  ;;  %v3435_v10 = vpop.f32.mrb[105].mxu1 }
 0x396   :  { %v2417_v14 = vpop.f32.mrb[106].mxu1 }
 0x397   :  { %v3436_v63 = vpop.f32.mrb[107].mxu1 }
 0x39c   :  { %v2466_v16 = vpop.f32.mrb[108].mxu1 }
 0x39d   :  { %v2472_v54 = vadd.f32 %v2466_v16, %v2420_v37  ;;  %v3441_v7 = vpop.f32.mrb[109].mxu1 }
 0x39e   :  { %v2469_v46 = vpop.f32.mrb[110].mxu1 }
 0x39f   :  { %v3442_v11 = vpop.f32.mrb[111].mxu1 }
 0x3a4   :  { %v2520_v50 = vpop.f32.mrb[112].mxu1 }
 0x3a5   :  { %v2526_v26 = vadd.f32 %v2520_v50, %v2472_v54  ;;  %v3447_v32 = vpop.f32.mrb[113].mxu1 }
 0x3a6   :  { %v2523_v57 = vpop.f32.mrb[114].mxu1 }
 0x3a7   :  { %v3448_v56 = vpop.f32.mrb[115].mxu1 }
 0x3ac   :  { %v2572_v28 = vpop.f32.mrb[116].mxu1 }
 0x3ad   :  { %v2578_v24 = vadd.f32 %v2572_v28, %v2526_v26  ;;  %v3453_v23 = vpop.f32.mrb[117].mxu1 }
 0x3ae   :  { %v2575_v27 = vpop.f32.mrb[118].mxu1 }
 0x3af   :  { %v3454_v36 = vpop.f32.mrb[119].mxu1 }
 0x3b4   :  { %v2626_v59 = vpop.f32.mrb[120].mxu1 }
 0x3b5   :  { %v2632_v58 = vadd.f32 %v2626_v59, %v2578_v24  ;;  %v3459_v29 = vpop.f32.mrb[121].mxu1 }
 0x3b6   :  { %v2629_v31 = vpop.f32.mrb[122].mxu1 }
 0x3b7   :  { %v3460_v19 = vpop.f32.mrb[123].mxu1 }
 0x3bc   :  { %v2678_v25 = vpop.f32.mrb[124].mxu1 }
 0x3bd   :  { %v2684_v4 = vadd.f32 %v2678_v25, %v2632_v58  ;;  %v3465_v3 = vpop.f32.mrb[125].mxu1 }
 0x3be   :  { %v2681_v49 = vpop.f32.mrb[126].mxu1 }
 0x3bf   :  { %v3466_v52 = vpop.f32.mrb[127].mxu1 }
 0x3c4   :  { %v2732_v47 = vpop.f32.mrb[128].mxu1 }
 0x3c5   :  { %v2738_v6 = vadd.f32 %v2732_v47, %v2684_v4  ;;  %v3471_v35 = vpop.f32.mrb[129].mxu1 }
 0x3c6   :  { %v2735_v62 = vpop.f32.mrb[130].mxu1 }
 0x3c7   :  { %v3472_v51 = vpop.f32.mrb[131].mxu1 }
 0x3cc   :  { %v2784_v39 = vpop.f32.mrb[132].mxu1 }
 0x3cd   :  { %v2790_v20 = vadd.f32 %v2784_v39, %v2738_v6  ;;  %v3477_v30 = vpop.f32.mrb[133].mxu1 }
 0x3ce   :  { %v2787_v44 = vpop.f32.mrb[134].mxu1 }
 0x3cf   :  { %v2798_v5 = vadd.f32 %v3244_v45, %v2790_v20  ;;  %v3478_v9 = vpop.f32.mrb[135].mxu1 }
 0x3d1   :  { %v2799_v55 = vmax.f32 %v2798_v5, 0.0 }
 0x3d3   :  { %v2800_v17 = vpack.c.bf16 %v2799_v55, %v2799_v55 }
 0x3d5   :  { %3496 = vmatmul.mubr.msk.bf16.vlgmr.msra.gmra.mrb[136].mxu1 %vm2868_vm5, %v2800_v17 }
 0x3d6   :  { %3500 = vmatpush3.bf16.msra.mxu1 %v3732_v2  ;;  %3511 = vmatprep.mubr.msk.bf16.mxu1 %vm3764_vm2, %v3763_v13 }
 0x3d7   :  { %3501 = vmatprep.subr.bf16.mxu1 %v3763_v13 }
 0x3da   :  { %3502 = vmatpush3.bf16.msra.mxu1 %v3733_v18 }
 0x3db   :  { %3503 = vmatprep.subr.bf16.mxu1 %v3763_v13 }
 0x3de   :  { %3504 = vmatpush3.bf16.msra.mxu1 %v3734_v12 }
 0x3df   :  { %3505 = vmatprep.subr.bf16.mxu1 %v3763_v13 }
 0x3e2   :  { %3506 = vmatpush3.bf16.msra.mxu1 %v3735_v40 }
 0x3e3   :  { %3507 = vmatprep.subr.bf16.mxu1 %v3763_v13 }
 0x3e6   :  { %3508 = vmatpush3.bf16.msra.mxu1 %v3736_v53 }
 0x3e7   :  { %3509 = vmatprep.subr.bf16.mxu1 %v3763_v13  ;;  %v3255_v13 = vld [vmem:[%s4828_s8] ss:$0 sm:$0xff] }
 0x3ea   :  { %3510 = vmatpush3.bf16.msra.mxu1 %v2975_v1 }
 0x4a8   :  { %v2910_v8 = vpop.f32.mrb[136].mxu1 }
 0x4a9   :  { %v2911_v43 = vadd.f32 %v3245_v22, %v2910_v8  ;;  %v3497_v48 = vpop.f32.mrb[137].mxu1 }
 0x4aa   :  { %v2913_v60 = vpop.f32.mrb[138].mxu1 }
 0x4ab   :  { %v2916_v42 = vmax.f32 %v2911_v43, 0.0  ;;  %v3498_v0 = vpop.f32.mrb[139].mxu1 }
 0x4ad   :  { %v2917_v33 = vpack.c.bf16 %v2916_v42, %v2916_v42 }
 0x4af   :  { %3512 = vmatmul.mubr.msk.bf16.vlgmr.msra.gmra.mrb[140].mxu1 %vm2969_vm7, %v2917_v33 }
 0x582   :  { %v3011_v34 = vpop.f32.mrb[140].mxu1 }
 0x583   :  { %v3012_v15 = vadd.f32 %v3255_v13, %v3011_v34  ;;  %v3513_v38 = vpop.f32.mrb[141].mxu1 }
 0x584   :  { %v3014_v21 = vpop.f32.mrb[142].mxu1 }
 0x585   :  { %v3514_v61 = vpop.f32.mrb[143].mxu1  ;;  %3018 = vst.msk [vmem:[#allocation2] sm:$0xff] %vm3017_vm8, %v3012_v15 }
 0x586   :  { %3749 = shalt.err (!%p3746_p4)
}
 0x587   :  { %s3750_s8 = scalar_lea.hbm %s4829_s9, 128 }
 0x588   :  { %p3751_p5 = scmp.ne.s32.totalorder %s4829_s9, %s3750_s8  ;;  %p3754_p6 = scmp.lt.u32.totalorder %s3750_s8, %s4829_s9 }
 0x58a   :  { %p3756_p7 = pnand %p3754_p6, %p3751_p5 }
 0x58c   :  { %3759 = shalt.err (!%p3756_p7)
}
 0x58d   :  { %3028 = dma.vmem_to_hbm [thread:$0]  %s3026_s17, 128, %s4829_s9, [#allocation3]  }
 0x58e   :  { %3760 = dma.done.wait [#allocation3], 128  }
 0x58f   :  { %3761 = vsyncadd [#allocation3], 4294967168 }
 0x590   :  { %3032 = vsyncpa [#allocation3], 1 }

</bundles_post_ra>
